<compile_context>
chip_gen: v7x
topology: tpu7x:2x2x1
jax: 0.10.0
libtpu: 0.0.40
codegen_flags: <defaults>
</compile_context>

<pallas_src>
import jax
import jax.numpy as jnp
from jax import lax
from jax.experimental import pallas as pl
from jax.experimental.pallas import tpu as pltpu

# ---------------- small synthetic config (mirrors __init__ shapes) -------------
B = 2                      # batch
C_IN = 4                   # backbone_size[0]
H = W = 16                 # backbone spatial
HIDDEN = 32                # hidden_dim
SCALES = [64, 128, 256, 512]
RATIOS = [0.5, 1.0, 2.0]
A = len(SCALES) * len(RATIOS)   # num_anchors_per = 12
P = 8                      # synthetic positive anchors per image
NNEG = 8                   # synthetic negative anchors per image
LOSS_SCALE = 1.0

K9 = 9 * C_IN              # im2col depth for the 3x3 conv (36)
BHW = B * H * W            # collapsed batch*spatial row axis (512)
OUT = A * 4 + A            # real output lanes: reg(48) | conf(12) = 60
OUT_P = 128                # lane-dense padded output width (unmasked stores)
NP = B * P                 # total sampled positives (16)
NN = B * NNEG              # total sampled negatives (16)


# ---------------------------- the single Pallas kernel --------------------------
def rpn_fused_kernel(idx_ref, x_ref, w3_ref, wf_ref, bias_ref, offs_ref,
                     out_ref, loss_ref):
    """3x3 conv (im2col matmul)+ReLU, fused lane-dense 1x1 reg|conf conv,
    SMEM-index row gather and BCEWithLogits + SmoothL1 loss."""
    # ---- head ----
    b3 = bias_ref[0:1, 0:HIDDEN]                # (1, HIDDEN)
    bf = bias_ref[1:2, :]                       # (1, OUT_P)
    hid = jnp.dot(x_ref[...], w3_ref[...],
                  preferred_element_type=jnp.float32) + b3
    hid = jnp.maximum(hid, 0.0)                 # ReLU (Dropout == identity at inference)
    out = jnp.dot(hid, wf_ref[...],
                  preferred_element_type=jnp.float32) + bf
    out_ref[...] = out.astype(out_ref.dtype)    # (BHW, 128): lane-dense, unmasked stores

    # ---- sampled-anchor gather + loss (reads rows back from the VMEM output) ----
    lane = lax.broadcasted_iota(jnp.int32, (1, OUT_P), 1)   # hoisted out of the loops
    cls_acc = jnp.zeros((1, 1), jnp.float32)
    box_acc = jnp.zeros((1, 1), jnp.float32)

    # positives: BCE(target=1) on the conf lane + SmoothL1 on the 4 reg lanes
    for i in range(NP):
        r = idx_ref[i]                          # flat row into (BHW, .)
        a = idx_ref[NP + i]                     # anchor-within-cell
        row = out_ref[pl.ds(r, 1), :]           # (1, 128) dynamic single-row read
        cl = A * 4 + a
        conf_x = jnp.sum(jnp.where(lane == cl, row, 0.0),
                         axis=1, keepdims=True)                 # select BEFORE transcendentals
        cls_acc = cls_acc + (jnp.maximum(conf_x, 0.0) - conf_x
                             + jnp.log(1.0 + jnp.exp(-jnp.abs(conf_x))))
        a4 = a * 4
        offs_row = offs_ref[pl.ds(i, 1), :]                     # (1, 4), static row
        # scatter the 4 targets onto lanes [4a .. 4a+3]
        t = (offs_row[:, 0:1] * (lane == a4).astype(jnp.float32)
             + offs_row[:, 1:2] * (lane == a4 + 1).astype(jnp.float32)
             + offs_row[:, 2:3] * (lane == a4 + 2).astype(jnp.float32)
             + offs_row[:, 3:4] * (lane == a4 + 3).astype(jnp.float32))
        d = row - t
        ad = jnp.abs(d)
        sl1 = jnp.where(ad < 1.0, 0.5 * d * d, ad - 0.5)        # VALU only, finite everywhere
        inside = (lane >= a4) & (lane < a4 + 4)
        box_acc = box_acc + jnp.sum(jnp.where(inside, sl1, 0.0),
                                    axis=1, keepdims=True)

    # negatives: BCE(target=0) on the conf lane
    for j in range(NN):
        r = idx_ref[2 * NP + j]
        a = idx_ref[2 * NP + NN + j]
        row = out_ref[pl.ds(r, 1), :]
        cl = A * 4 + a
        conf_x = jnp.sum(jnp.where(lane == cl, row, 0.0),
                         axis=1, keepdims=True)
        cls_acc = cls_acc + (jnp.maximum(conf_x, 0.0)
                             + jnp.log(1.0 + jnp.exp(-jnp.abs(conf_x))))

    # identical per-image divisors -> the per-image loop of the PyTorch forward
    # reduces to a single division of the batch sums.
    loss_ref[...] = (cls_acc * (1.0 / float(P + NNEG))
                     + box_acc * (LOSS_SCALE / (P + 1e-7)))


def rpn_fused(idx, patches, w3, wf, bias, offs):
    smem = pl.BlockSpec(memory_space=pltpu.MemorySpace.SMEM)
    vmem = pl.BlockSpec(memory_space=pltpu.MemorySpace.VMEM)
    flops = 2 * BHW * K9 * HIDDEN + 2 * BHW * HIDDEN * OUT_P
    bytes_accessed = 4 * (BHW * K9 + K9 * HIDDEN + HIDDEN * OUT_P + 2 * OUT_P
                          + NP * 4 + 4 * NP + BHW * OUT_P + 1)
    return pl.pallas_call(
        rpn_fused_kernel,
        out_shape=(
            jax.ShapeDtypeStruct((BHW, OUT_P), jnp.float32),   # lane-dense reg|conf slab
            jax.ShapeDtypeStruct((1, 1), jnp.float32),         # total_loss
        ),
        in_specs=[smem, vmem, vmem, vmem, vmem, vmem],
        out_specs=(vmem, vmem),
        cost_estimate=pl.CostEstimate(flops=flops,
                                      transcendentals=2 * (NP + NN),
                                      bytes_accessed=bytes_accessed),
    )(idx, patches, w3, wf, bias, offs)


# ------------------------------ glue / wrapper ----------------------------------
def im2col_3x3(x_nhwc):
    """(B,H,W,C) -> (B*H*W, 9*C) with tap order k = dy*3+dx (matches w3 layout)."""
    x_pad = jnp.pad(x_nhwc, ((0, 0), (1, 1), (1, 1), (0, 0)))
    cols = [x_pad[:, dy:dy + H, dx:dx + W, :] for dy in range(3) for dx in range(3)]
    patches = jnp.concatenate(cols, axis=-1)                 # (B, H, W, 9*C)
    return patches.reshape(BHW, K9)


@jax.jit
def frcrpn_forward(features_nchw, params, pos_inds, neg_inds, pos_offsets):
    """Mirrors FRCRPN.forward up to (total_loss, regression, confidence)."""
    w3, b3, wr, br, wc, bc = params
    x_nhwc = jnp.transpose(features_nchw, (0, 2, 3, 1))       # NCHW -> NHWC
    patches = im2col_3x3(x_nhwc)

    # fused + lane-dense (zero-padded to 128) 1x1 reg|conf weight and packed biases
    wf = jnp.concatenate(
        [wr, wc, jnp.zeros((HIDDEN, OUT_P - OUT), jnp.float32)], axis=1)   # (HIDDEN, 128)
    bias = jnp.zeros((2, OUT_P), jnp.float32)
    bias = bias.at[0, :HIDDEN].set(b3[0])
    bias = bias.at[1, :OUT].set(jnp.concatenate([br, bc], axis=1)[0])

    # index plumbing: flat anchor index n -> (row = n // A + b*H*W, anchor = n % A)
    batch_off = (jnp.arange(B, dtype=jnp.int32) * (H * W))[:, None]
    pos_rows = (pos_inds // A + batch_off).reshape(-1).astype(jnp.int32)
    pos_anc = (pos_inds % A).reshape(-1).astype(jnp.int32)
    neg_rows = (neg_inds // A + batch_off).reshape(-1).astype(jnp.int32)
    neg_anc = (neg_inds % A).reshape(-1).astype(jnp.int32)
    idx = jnp.concatenate([pos_rows, pos_anc, neg_rows, neg_anc])          # (64,) int32 -> SMEM

    offs = pos_offsets.reshape(NP, 4).astype(jnp.float32)

    out, loss = rpn_fused(idx, patches, w3, wf, bias, offs)

    # == torch: permute(0,2,3,1).reshape(B,-1,4) / reshape(B,-1)
    regression = out[:, :A * 4].reshape(B, H * W * A, 4)
    confidence = out[:, A * 4:A * 4 + A].reshape(B, H * W * A)
    # TODO(synk): anchor_within_image_mask selection (AnchorBoxUtil) — assume all anchors valid.
    return loss[0, 0], regression, confidence


# ------------------------------ reference (pure JAX) -----------------------------
def reference(features_nchw, params, pos_inds, neg_inds, pos_offsets):
    w3, b3, wr, br, wc, bc = params
    x = jnp.transpose(features_nchw, (0, 2, 3, 1))
    w_hwio = w3.reshape(3, 3, C_IN, HIDDEN)
    hid = lax.conv_general_dilated(x, w_hwio, window_strides=(1, 1), padding="SAME",
                                   dimension_numbers=("NHWC", "HWIO", "NHWC"))
    hid = jnp.maximum(hid + b3.reshape(1, 1, 1, HIDDEN), 0.0)
    reg = jnp.einsum("bhwk,kc->bhwc", hid, wr) + br.reshape(1, 1, 1, A * 4)
    conf = jnp.einsum("bhwk,kc->bhwc", hid, wc) + bc.reshape(1, 1, 1, A)
    regression = reg.reshape(B, H * W * A, 4)
    confidence = conf.reshape(B, H * W * A)

    pos_conf = jnp.take_along_axis(confidence, pos_inds, axis=1)
    neg_conf = jnp.take_along_axis(confidence, neg_inds, axis=1)
    pos_reg = jnp.take_along_axis(regression, pos_inds[:, :, None], axis=1)

    def bce(xv, t):
        return jnp.maximum(xv, 0.0) - xv * t + jnp.log(1.0 + jnp.exp(-jnp.abs(xv)))
    class_loss = (jnp.sum(bce(pos_conf, 1.0)) + jnp.sum(bce(neg_conf, 0.0))) / float(P + NNEG)
    d = pos_reg - pos_offsets
    ad = jnp.abs(d)
    sl1 = jnp.where(ad < 1.0, 0.5 * d * d, ad - 0.5)
    bbox_loss = jnp.sum(sl1) * LOSS_SCALE / (P + 1e-7)
    return class_loss + bbox_loss, regression, confidence


# ------------------------------------ main ---------------------------------------
if __name__ == "__main__":
    key = jax.random.PRNGKey(0)
    k_feat, k_pos, k_neg, k_off = jax.random.split(key, 4)

    # inputs (PyTorch-style NCHW backbone features)
    features = jax.random.normal(k_feat, (B, C_IN, H, W), dtype=jnp.float32)

    # synthetic anchor-matching outputs (would come from AnchorBoxUtil)
    num_anchors = H * W * A
    pos_inds = jax.random.randint(k_pos, (B, P), 0, num_anchors, dtype=jnp.int32)
    neg_inds = jax.random.randint(k_neg, (B, NNEG), 0, num_anchors, dtype=jnp.int32)
    pos_offsets = 0.5 * jax.random.normal(k_off, (B, P, 4), dtype=jnp.float32)

    # deterministic parameter init (shapes implied by the module's __init__)
    pk = jax.random.PRNGKey(42)
    pk1, pk2, pk3, pk4, pk5, pk6 = jax.random.split(pk, 6)
    w3 = 0.1 * jax.random.normal(pk1, (K9, HIDDEN), dtype=jnp.float32)       # conv3x3 weight (im2col layout)
    b3 = 0.1 * jax.random.normal(pk2, (1, HIDDEN), dtype=jnp.float32)
    wr = 0.1 * jax.random.normal(pk3, (HIDDEN, A * 4), dtype=jnp.float32)    # 1x1 regression conv
    br = 0.1 * jax.random.normal(pk4, (1, A * 4), dtype=jnp.float32)
    wc = 0.1 * jax.random.normal(pk5, (HIDDEN, A), dtype=jnp.float32)        # 1x1 confidence conv
    bc = 0.1 * jax.random.normal(pk6, (1, A), dtype=jnp.float32)
    params = (w3, b3, wr, br, wc, bc)

    total_loss, regression, confidence = frcrpn_forward(
        features, params, pos_inds, neg_inds, pos_offsets)
    jax.block_until_ready((total_loss, regression, confidence))

    ref_loss, ref_reg, ref_conf = reference(features, params, pos_inds, neg_inds, pos_offsets)
    assert jnp.allclose(regression, ref_reg, atol=1e-4, rtol=1e-4), "regression mismatch"
    assert jnp.allclose(confidence, ref_conf, atol=1e-4, rtol=1e-4), "confidence mismatch"
    assert jnp.allclose(total_loss, ref_loss, atol=1e-4, rtol=1e-4), "loss mismatch"

    print("KERNEL_OK")
</pallas_src>

<mosaic_0001>
module attributes {stable_mosaic.version = 11 : i64} {
  func.func @rpn_fused_kernel(%arg0: memref<64xi32, #tpu.memory_space<smem>>, %arg1: memref<512x36xf32, #tpu.memory_space<vmem>>, %arg2: memref<36x32xf32, #tpu.memory_space<vmem>>, %arg3: memref<32x128xf32, #tpu.memory_space<vmem>>, %arg4: memref<2x128xf32, #tpu.memory_space<vmem>>, %arg5: memref<16x4xf32, #tpu.memory_space<vmem>>, %arg6: memref<512x128xf32, #tpu.memory_space<vmem>>, %arg7: memref<1x1xf32, #tpu.memory_space<vmem>>) attributes {dimension_semantics = [], scalar_prefetch = 0 : i64, scratch_operands = 0 : i64, tpu.core_type = #tpu.core_type<tc>} {
    %c0 = arith.constant 0 : index
    %c0_0 = arith.constant 0 : index
    %0 = vector.load %arg4[%c0, %c0_0] : memref<2x128xf32, #tpu.memory_space<vmem>>, vector<1x32xf32>
    %c1 = arith.constant 1 : index
    %c0_1 = arith.constant 0 : index
    %1 = vector.load %arg4[%c1, %c0_1] : memref<2x128xf32, #tpu.memory_space<vmem>>, vector<1x128xf32>
    %c0_2 = arith.constant 0 : index
    %c0_3 = arith.constant 0 : index
    %2 = vector.load %arg1[%c0_2, %c0_3] : memref<512x36xf32, #tpu.memory_space<vmem>>, vector<512x36xf32>
    %c0_4 = arith.constant 0 : index
    %c0_5 = arith.constant 0 : index
    %3 = vector.load %arg2[%c0_4, %c0_5] : memref<36x32xf32, #tpu.memory_space<vmem>>, vector<36x32xf32>
    %cst = arith.constant dense<0.000000e+00> : vector<512x32xf32>
    %4 = tpu.matmul %2, %3, %cst {dimension_numbers = #tpu.dot_dimension_numbers<[1], [0], [0], [1], [0, 0, 1, 1], [], []>} : vector<512x36xf32>, vector<36x32xf32>, vector<512x32xf32> -> vector<512x32xf32>
    %5 = vector.broadcast %0 : vector<1x32xf32> to vector<512x32xf32>
    %6 = arith.addf %4, %5 : vector<512x32xf32>
    %cst_6 = arith.constant 0.000000e+00 : f32
    %7 = vector.broadcast %cst_6 : f32 to vector<512x32xf32>
    %8 = arith.maximumf %6, %7 : vector<512x32xf32>
    %c0_7 = arith.constant 0 : index
    %c0_8 = arith.constant 0 : index
    %9 = vector.load %arg3[%c0_7, %c0_8] : memref<32x128xf32, #tpu.memory_space<vmem>>, vector<32x128xf32>
    %cst_9 = arith.constant dense<0.000000e+00> : vector<512x128xf32>
    %10 = tpu.matmul %8, %9, %cst_9 {dimension_numbers = #tpu.dot_dimension_numbers<[1], [0], [0], [1], [0, 0, 1, 1], [], []>} : vector<512x32xf32>, vector<32x128xf32>, vector<512x128xf32> -> vector<512x128xf32>
    %11 = vector.broadcast %1 : vector<1x128xf32> to vector<512x128xf32>
    %12 = arith.addf %10, %11 : vector<512x128xf32>
    %c0_10 = arith.constant 0 : index
    %c0_11 = arith.constant 0 : index
    %13 = vector.load %arg6[%c0_10, %c0_11] : memref<512x128xf32, #tpu.memory_space<vmem>>, vector<512x128xf32>
    tpu.vector_store %arg6[%c0_10, %c0_11], %12 {strides = array<i32>} : memref<512x128xf32, #tpu.memory_space<vmem>>, vector<512x128xf32>,
    %14 = tpu.iota {dimensions = array<i32: 1>} : vector<1x128xi32>
    %cst_12 = arith.constant 0.000000e+00 : f32
    %15 = vector.broadcast %cst_12 : f32 to vector<1x1xf32>
    %cst_13 = arith.constant 0.000000e+00 : f32
    %16 = vector.broadcast %cst_13 : f32 to vector<1x1xf32>
    %c0_14 = arith.constant 0 : index
    %17 = memref.load %arg0[%c0_14] : memref<64xi32, #tpu.memory_space<smem>>
    %c16 = arith.constant 16 : index
    %18 = memref.load %arg0[%c16] : memref<64xi32, #tpu.memory_space<smem>>
    %19 = arith.index_cast %17 : i32 to index
    %c0_15 = arith.constant 0 : index
    %20 = vector.load %arg6[%19, %c0_15] : memref<512x128xf32, #tpu.memory_space<vmem>>, vector<1x128xf32>
    %c48_i32 = arith.constant 48 : i32
    %21 = arith.addi %c48_i32, %18 : i32
    %22 = vector.broadcast %21 : i32 to vector<1x128xi32>
    %23 = arith.cmpi eq, %14, %22 : vector<1x128xi32>
    %cst_16 = arith.constant 0.000000e+00 : f32
    %24 = vector.broadcast %cst_16 : f32 to vector<1x128xf32>
    %25 = arith.select %23, %20, %24 : vector<1x128xi1>, vector<1x128xf32>
    %cst_17 = arith.constant dense<0.000000e+00> : vector<1xf32>
    %26 = vector.multi_reduction <add>, %25, %cst_17 [1] : vector<1x128xf32> to vector<1xf32>
    %27 = vector.shape_cast %26 : vector<1xf32> to vector<1x1xf32>
    %cst_18 = arith.constant 0.000000e+00 : f32
    %28 = vector.broadcast %cst_18 : f32 to vector<1x1xf32>
    %29 = arith.maximumf %27, %28 : vector<1x1xf32>
    %30 = arith.subf %29, %27 : vector<1x1xf32>
    %31 = math.absf %27 : vector<1x1xf32>
    %cst_19 = arith.constant 0.000000e+00 : f32
    %32 = vector.broadcast %cst_19 : f32 to vector<1x1xf32>
    %33 = arith.subf %32, %31 : vector<1x1xf32>
    %34 = math.exp %33 : vector<1x1xf32>
    %cst_20 = arith.constant 1.000000e+00 : f32
    %35 = vector.broadcast %cst_20 : f32 to vector<1x1xf32>
    %36 = arith.addf %35, %34 : vector<1x1xf32>
    %37 = math.log %36 : vector<1x1xf32>
    %38 = arith.addf %30, %37 : vector<1x1xf32>
    %39 = arith.addf %15, %38 : vector<1x1xf32>
    %c4_i32 = arith.constant 4 : i32
    %40 = arith.muli %18, %c4_i32 : i32
    %c0_21 = arith.constant 0 : index
    %c0_22 = arith.constant 0 : index
    %41 = vector.load %arg5[%c0_21, %c0_22] : memref<16x4xf32, #tpu.memory_space<vmem>>, vector<1x4xf32>
    %42 = vector.extract_strided_slice %41 {offsets = [0, 0], sizes = [1, 1], strides = [1, 1]} : vector<1x4xf32> to vector<1x1xf32>
    %43 = vector.broadcast %40 : i32 to vector<1x128xi32>
    %44 = arith.cmpi eq, %14, %43 : vector<1x128xi32>
    %45 = arith.extui %44 : vector<1x128xi1> to vector<1x128xi32>
    %46 = arith.sitofp %45 : vector<1x128xi32> to vector<1x128xf32>
    %47 = vector.broadcast %42 : vector<1x1xf32> to vector<1x128xf32>
    %48 = arith.mulf %47, %46 : vector<1x128xf32>
    %49 = vector.extract_strided_slice %41 {offsets = [0, 1], sizes = [1, 1], strides = [1, 1]} : vector<1x4xf32> to vector<1x1xf32>
    %c1_i32 = arith.constant 1 : i32
    %50 = arith.addi %40, %c1_i32 : i32
    %51 = vector.broadcast %50 : i32 to vector<1x128xi32>
    %52 = arith.cmpi eq, %14, %51 : vector<1x128xi32>
    %53 = arith.extui %52 : vector<1x128xi1> to vector<1x128xi32>
    %54 = arith.sitofp %53 : vector<1x128xi32> to vector<1x128xf32>
    %55 = vector.broadcast %49 : vector<1x1xf32> to vector<1x128xf32>
    %56 = arith.mulf %55, %54 : vector<1x128xf32>
    %57 = arith.addf %48, %56 : vector<1x128xf32>
    %58 = vector.extract_strided_slice %41 {offsets = [0, 2], sizes = [1, 1], strides = [1, 1]} : vector<1x4xf32> to vector<1x1xf32>
    %c2_i32 = arith.constant 2 : i32
    %59 = arith.addi %40, %c2_i32 : i32
    %60 = vector.broadcast %59 : i32 to vector<1x128xi32>
    %61 = arith.cmpi eq, %14, %60 : vector<1x128xi32>
    %62 = arith.extui %61 : vector<1x128xi1> to vector<1x128xi32>
    %63 = arith.sitofp %62 : vector<1x128xi32> to vector<1x128xf32>
    %64 = vector.broadcast %58 : vector<1x1xf32> to vector<1x128xf32>
    %65 = arith.mulf %64, %63 : vector<1x128xf32>
    %66 = arith.addf %57, %65 : vector<1x128xf32>
    %67 = vector.extract_strided_slice %41 {offsets = [0, 3], sizes = [1, 1], strides = [1, 1]} : vector<1x4xf32> to vector<1x1xf32>
    %c3_i32 = arith.constant 3 : i32
    %68 = arith.addi %40, %c3_i32 : i32
    %69 = vector.broadcast %68 : i32 to vector<1x128xi32>
    %70 = arith.cmpi eq, %14, %69 : vector<1x128xi32>
    %71 = arith.extui %70 : vector<1x128xi1> to vector<1x128xi32>
    %72 = arith.sitofp %71 : vector<1x128xi32> to vector<1x128xf32>
    %73 = vector.broadcast %67 : vector<1x1xf32> to vector<1x128xf32>
    %74 = arith.mulf %73, %72 : vector<1x128xf32>
    %75 = arith.addf %66, %74 : vector<1x128xf32>
    %76 = arith.subf %20, %75 : vector<1x128xf32>
    %77 = math.absf %76 : vector<1x128xf32>
    %cst_23 = arith.constant 1.000000e+00 : f32
    %78 = vector.broadcast %cst_23 : f32 to vector<1x128xf32>
    %79 = arith.cmpf olt, %77, %78 : vector<1x128xf32>
    %cst_24 = arith.constant 5.000000e-01 : f32
    %80 = vector.broadcast %cst_24 : f32 to vector<1x128xf32>
    %81 = arith.mulf %80, %76 : vector<1x128xf32>
    %82 = arith.mulf %81, %76 : vector<1x128xf32>
    %cst_25 = arith.constant 5.000000e-01 : f32
    %83 = vector.broadcast %cst_25 : f32 to vector<1x128xf32>
    %84 = arith.subf %77, %83 : vector<1x128xf32>
    %85 = arith.select %79, %82, %84 : vector<1x128xi1>, vector<1x128xf32>
    %86 = vector.broadcast %40 : i32 to vector<1x128xi32>
    %87 = arith.cmpi sge, %14, %86 : vector<1x128xi32>
    %c4_i32_26 = arith.constant 4 : i32
    %88 = arith.addi %40, %c4_i32_26 : i32
    %89 = vector.broadcast %88 : i32 to vector<1x128xi32>
    %90 = arith.cmpi slt, %14, %89 : vector<1x128xi32>
    %91 = arith.andi %87, %90 : vector<1x128xi1>
    %cst_27 = arith.constant 0.000000e+00 : f32
    %92 = vector.broadcast %cst_27 : f32 to vector<1x128xf32>
    %93 = arith.select %91, %85, %92 : vector<1x128xi1>, vector<1x128xf32>
    %cst_28 = arith.constant dense<0.000000e+00> : vector<1xf32>
    %94 = vector.multi_reduction <add>, %93, %cst_28 [1] : vector<1x128xf32> to vector<1xf32>
    %95 = vector.shape_cast %94 : vector<1xf32> to vector<1x1xf32>
    %96 = arith.addf %16, %95 : vector<1x1xf32>
    %c1_29 = arith.constant 1 : index
    %97 = memref.load %arg0[%c1_29] : memref<64xi32, #tpu.memory_space<smem>>
    %c17 = arith.constant 17 : index
    %98 = memref.load %arg0[%c17] : memref<64xi32, #tpu.memory_space<smem>>
    %99 = arith.index_cast %97 : i32 to index
    %c0_30 = arith.constant 0 : index
    %100 = vector.load %arg6[%99, %c0_30] : memref<512x128xf32, #tpu.memory_space<vmem>>, vector<1x128xf32>
    %c48_i32_31 = arith.constant 48 : i32
    %101 = arith.addi %c48_i32_31, %98 : i32
    %102 = vector.broadcast %101 : i32 to vector<1x128xi32>
    %103 = arith.cmpi eq, %14, %102 : vector<1x128xi32>
    %cst_32 = arith.constant 0.000000e+00 : f32
    %104 = vector.broadcast %cst_32 : f32 to vector<1x128xf32>
    %105 = arith.select %103, %100, %104 : vector<1x128xi1>, vector<1x128xf32>
    %cst_33 = arith.constant dense<0.000000e+00> : vector<1xf32>
    %106 = vector.multi_reduction <add>, %105, %cst_33 [1] : vector<1x128xf32> to vector<1xf32>
    %107 = vector.shape_cast %106 : vector<1xf32> to vector<1x1xf32>
    %cst_34 = arith.constant 0.000000e+00 : f32
    %108 = vector.broadcast %cst_34 : f32 to vector<1x1xf32>
    %109 = arith.maximumf %107, %108 : vector<1x1xf32>
    %110 = arith.subf %109, %107 : vector<1x1xf32>
    %111 = math.absf %107 : vector<1x1xf32>
    %cst_35 = arith.constant 0.000000e+00 : f32
    %112 = vector.broadcast %cst_35 : f32 to vector<1x1xf32>
    %113 = arith.subf %112, %111 : vector<1x1xf32>
    %114 = math.exp %113 : vector<1x1xf32>
    %cst_36 = arith.constant 1.000000e+00 : f32
    %115 = vector.broadcast %cst_36 : f32 to vector<1x1xf32>
    %116 = arith.addf %115, %114 : vector<1x1xf32>
    %117 = math.log %116 : vector<1x1xf32>
    %118 = arith.addf %110, %117 : vector<1x1xf32>
    %119 = arith.addf %39, %118 : vector<1x1xf32>
    %c4_i32_37 = arith.constant 4 : i32
    %120 = arith.muli %98, %c4_i32_37 : i32
    %c1_38 = arith.constant 1 : index
    %c0_39 = arith.constant 0 : index
    %121 = vector.load %arg5[%c1_38, %c0_39] : memref<16x4xf32, #tpu.memory_space<vmem>>, vector<1x4xf32>
    %122 = vector.extract_strided_slice %121 {offsets = [0, 0], sizes = [1, 1], strides = [1, 1]} : vector<1x4xf32> to vector<1x1xf32>
    %123 = vector.broadcast %120 : i32 to vector<1x128xi32>
    %124 = arith.cmpi eq, %14, %123 : vector<1x128xi32>
    %125 = arith.extui %124 : vector<1x128xi1> to vector<1x128xi32>
    %126 = arith.sitofp %125 : vector<1x128xi32> to vector<1x128xf32>
    %127 = vector.broadcast %122 : vector<1x1xf32> to vector<1x128xf32>
    %128 = arith.mulf %127, %126 : vector<1x128xf32>
    %129 = vector.extract_strided_slice %121 {offsets = [0, 1], sizes = [1, 1], strides = [1, 1]} : vector<1x4xf32> to vector<1x1xf32>
    %c1_i32_40 = arith.constant 1 : i32
    %130 = arith.addi %120, %c1_i32_40 : i32
    %131 = vector.broadcast %130 : i32 to vector<1x128xi32>
    %132 = arith.cmpi eq, %14, %131 : vector<1x128xi32>
    %133 = arith.extui %132 : vector<1x128xi1> to vector<1x128xi32>
    %134 = arith.sitofp %133 : vector<1x128xi32> to vector<1x128xf32>
    %135 = vector.broadcast %129 : vector<1x1xf32> to vector<1x128xf32>
    %136 = arith.mulf %135, %134 : vector<1x128xf32>
    %137 = arith.addf %128, %136 : vector<1x128xf32>
    %138 = vector.extract_strided_slice %121 {offsets = [0, 2], sizes = [1, 1], strides = [1, 1]} : vector<1x4xf32> to vector<1x1xf32>
    %c2_i32_41 = arith.constant 2 : i32
    %139 = arith.addi %120, %c2_i32_41 : i32
    %140 = vector.broadcast %139 : i32 to vector<1x128xi32>
    %141 = arith.cmpi eq, %14, %140 : vector<1x128xi32>
    %142 = arith.extui %141 : vector<1x128xi1> to vector<1x128xi32>
    %143 = arith.sitofp %142 : vector<1x128xi32> to vector<1x128xf32>
    %144 = vector.broadcast %138 : vector<1x1xf32> to vector<1x128xf32>
    %145 = arith.mulf %144, %143 : vector<1x128xf32>
    %146 = arith.addf %137, %145 : vector<1x128xf32>
    %147 = vector.extract_strided_slice %121 {offsets = [0, 3], sizes = [1, 1], strides = [1, 1]} : vector<1x4xf32> to vector<1x1xf32>
    %c3_i32_42 = arith.constant 3 : i32
    %148 = arith.addi %120, %c3_i32_42 : i32
    %149 = vector.broadcast %148 : i32 to vector<1x128xi32>
    %150 = arith.cmpi eq, %14, %149 : vector<1x128xi32>
    %151 = arith.extui %150 : vector<1x128xi1> to vector<1x128xi32>
    %152 = arith.sitofp %151 : vector<1x128xi32> to vector<1x128xf32>
    %153 = vector.broadcast %147 : vector<1x1xf32> to vector<1x128xf32>
    %154 = arith.mulf %153, %152 : vector<1x128xf32>
    %155 = arith.addf %146, %154 : vector<1x128xf32>
    %156 = arith.subf %100, %155 : vector<1x128xf32>
    %157 = math.absf %156 : vector<1x128xf32>
    %cst_43 = arith.constant 1.000000e+00 : f32
    %158 = vector.broadcast %cst_43 : f32 to vector<1x128xf32>
    %159 = arith.cmpf olt, %157, %158 : vector<1x128xf32>
    %cst_44 = arith.constant 5.000000e-01 : f32
    %160 = vector.broadcast %cst_44 : f32 to vector<1x128xf32>
    %161 = arith.mulf %160, %156 : vector<1x128xf32>
    %162 = arith.mulf %161, %156 : vector<1x128xf32>
    %cst_45 = arith.constant 5.000000e-01 : f32
    %163 = vector.broadcast %cst_45 : f32 to vector<1x128xf32>
    %164 = arith.subf %157, %163 : vector<1x128xf32>
    %165 = arith.select %159, %162, %164 : vector<1x128xi1>, vector<1x128xf32>
    %166 = vector.broadcast %120 : i32 to vector<1x128xi32>
    %167 = arith.cmpi sge, %14, %166 : vector<1x128xi32>
    %c4_i32_46 = arith.constant 4 : i32
    %168 = arith.addi %120, %c4_i32_46 : i32
    %169 = vector.broadcast %168 : i32 to vector<1x128xi32>
    %170 = arith.cmpi slt, %14, %169 : vector<1x128xi32>
    %171 = arith.andi %167, %170 : vector<1x128xi1>
    %cst_47 = arith.constant 0.000000e+00 : f32
    %172 = vector.broadcast %cst_47 : f32 to vector<1x128xf32>
    %173 = arith.select %171, %165, %172 : vector<1x128xi1>, vector<1x128xf32>
    %cst_48 = arith.constant dense<0.000000e+00> : vector<1xf32>
    %174 = vector.multi_reduction <add>, %173, %cst_48 [1] : vector<1x128xf32> to vector<1xf32>
    %175 = vector.shape_cast %174 : vector<1xf32> to vector<1x1xf32>
    %176 = arith.addf %96, %175 : vector<1x1xf32>
    %c2 = arith.constant 2 : index
    %177 = memref.load %arg0[%c2] : memref<64xi32, #tpu.memory_space<smem>>
    %c18 = arith.constant 18 : index
    %178 = memref.load %arg0[%c18] : memref<64xi32, #tpu.memory_space<smem>>
    %179 = arith.index_cast %177 : i32 to index
    %c0_49 = arith.constant 0 : index
    %180 = vector.load %arg6[%179, %c0_49] : memref<512x128xf32, #tpu.memory_space<vmem>>, vector<1x128xf32>
    %c48_i32_50 = arith.constant 48 : i32
    %181 = arith.addi %c48_i32_50, %178 : i32
    %182 = vector.broadcast %181 : i32 to vector<1x128xi32>
    %183 = arith.cmpi eq, %14, %182 : vector<1x128xi32>
    %cst_51 = arith.constant 0.000000e+00 : f32
    %184 = vector.broadcast %cst_51 : f32 to vector<1x128xf32>
    %185 = arith.select %183, %180, %184 : vector<1x128xi1>, vector<1x128xf32>
    %cst_52 = arith.constant dense<0.000000e+00> : vector<1xf32>
    %186 = vector.multi_reduction <add>, %185, %cst_52 [1] : vector<1x128xf32> to vector<1xf32>
    %187 = vector.shape_cast %186 : vector<1xf32> to vector<1x1xf32>
    %cst_53 = arith.constant 0.000000e+00 : f32
    %188 = vector.broadcast %cst_53 : f32 to vector<1x1xf32>
    %189 = arith.maximumf %187, %188 : vector<1x1xf32>
    %190 = arith.subf %189, %187 : vector<1x1xf32>
    %191 = math.absf %187 : vector<1x1xf32>
    %cst_54 = arith.constant 0.000000e+00 : f32
    %192 = vector.broadcast %cst_54 : f32 to vector<1x1xf32>
    %193 = arith.subf %192, %191 : vector<1x1xf32>
    %194 = math.exp %193 : vector<1x1xf32>
    %cst_55 = arith.constant 1.000000e+00 : f32
    %195 = vector.broadcast %cst_55 : f32 to vector<1x1xf32>
    %196 = arith.addf %195, %194 : vector<1x1xf32>
    %197 = math.log %196 : vector<1x1xf32>
    %198 = arith.addf %190, %197 : vector<1x1xf32>
    %199 = arith.addf %119, %198 : vector<1x1xf32>
    %c4_i32_56 = arith.constant 4 : i32
    %200 = arith.muli %178, %c4_i32_56 : i32
    %c2_57 = arith.constant 2 : index
    %c0_58 = arith.constant 0 : index
    %201 = vector.load %arg5[%c2_57, %c0_58] : memref<16x4xf32, #tpu.memory_space<vmem>>, vector<1x4xf32>
    %202 = vector.extract_strided_slice %201 {offsets = [0, 0], sizes = [1, 1], strides = [1, 1]} : vector<1x4xf32> to vector<1x1xf32>
    %203 = vector.broadcast %200 : i32 to vector<1x128xi32>
    %204 = arith.cmpi eq, %14, %203 : vector<1x128xi32>
    %205 = arith.extui %204 : vector<1x128xi1> to vector<1x128xi32>
    %206 = arith.sitofp %205 : vector<1x128xi32> to vector<1x128xf32>
    %207 = vector.broadcast %202 : vector<1x1xf32> to vector<1x128xf32>
    %208 = arith.mulf %207, %206 : vector<1x128xf32>
    %209 = vector.extract_strided_slice %201 {offsets = [0, 1], sizes = [1, 1], strides = [1, 1]} : vector<1x4xf32> to vector<1x1xf32>
    %c1_i32_59 = arith.constant 1 : i32
    %210 = arith.addi %200, %c1_i32_59 : i32
    %211 = vector.broadcast %210 : i32 to vector<1x128xi32>
    %212 = arith.cmpi eq, %14, %211 : vector<1x128xi32>
    %213 = arith.extui %212 : vector<1x128xi1> to vector<1x128xi32>
    %214 = arith.sitofp %213 : vector<1x128xi32> to vector<1x128xf32>
    %215 = vector.broadcast %209 : vector<1x1xf32> to vector<1x128xf32>
    %216 = arith.mulf %215, %214 : vector<1x128xf32>
    %217 = arith.addf %208, %216 : vector<1x128xf32>
    %218 = vector.extract_strided_slice %201 {offsets = [0, 2], sizes = [1, 1], strides = [1, 1]} : vector<1x4xf32> to vector<1x1xf32>
    %c2_i32_60 = arith.constant 2 : i32
    %219 = arith.addi %200, %c2_i32_60 : i32
    %220 = vector.broadcast %219 : i32 to vector<1x128xi32>
    %221 = arith.cmpi eq, %14, %220 : vector<1x128xi32>
    %222 = arith.extui %221 : vector<1x128xi1> to vector<1x128xi32>
    %223 = arith.sitofp %222 : vector<1x128xi32> to vector<1x128xf32>
    %224 = vector.broadcast %218 : vector<1x1xf32> to vector<1x128xf32>
    %225 = arith.mulf %224, %223 : vector<1x128xf32>
    %226 = arith.addf %217, %225 : vector<1x128xf32>
    %227 = vector.extract_strided_slice %201 {offsets = [0, 3], sizes = [1, 1], strides = [1, 1]} : vector<1x4xf32> to vector<1x1xf32>
    %c3_i32_61 = arith.constant 3 : i32
    %228 = arith.addi %200, %c3_i32_61 : i32
    %229 = vector.broadcast %228 : i32 to vector<1x128xi32>
    %230 = arith.cmpi eq, %14, %229 : vector<1x128xi32>
    %231 = arith.extui %230 : vector<1x128xi1> to vector<1x128xi32>
    %232 = arith.sitofp %231 : vector<1x128xi32> to vector<1x128xf32>
    %233 = vector.broadcast %227 : vector<1x1xf32> to vector<1x128xf32>
    %234 = arith.mulf %233, %232 : vector<1x128xf32>
    %235 = arith.addf %226, %234 : vector<1x128xf32>
    %236 = arith.subf %180, %235 : vector<1x128xf32>
    %237 = math.absf %236 : vector<1x128xf32>
    %cst_62 = arith.constant 1.000000e+00 : f32
    %238 = vector.broadcast %cst_62 : f32 to vector<1x128xf32>
    %239 = arith.cmpf olt, %237, %238 : vector<1x128xf32>
    %cst_63 = arith.constant 5.000000e-01 : f32
    %240 = vector.broadcast %cst_63 : f32 to vector<1x128xf32>
    %241 = arith.mulf %240, %236 : vector<1x128xf32>
    %242 = arith.mulf %241, %236 : vector<1x128xf32>
    %cst_64 = arith.constant 5.000000e-01 : f32
    %243 = vector.broadcast %cst_64 : f32 to vector<1x128xf32>
    %244 = arith.subf %237, %243 : vector<1x128xf32>
    %245 = arith.select %239, %242, %244 : vector<1x128xi1>, vector<1x128xf32>
    %246 = vector.broadcast %200 : i32 to vector<1x128xi32>
    %247 = arith.cmpi sge, %14, %246 : vector<1x128xi32>
    %c4_i32_65 = arith.constant 4 : i32
    %248 = arith.addi %200, %c4_i32_65 : i32
    %249 = vector.broadcast %248 : i32 to vector<1x128xi32>
    %250 = arith.cmpi slt, %14, %249 : vector<1x128xi32>
    %251 = arith.andi %247, %250 : vector<1x128xi1>
    %cst_66 = arith.constant 0.000000e+00 : f32
    %252 = vector.broadcast %cst_66 : f32 to vector<1x128xf32>
    %253 = arith.select %251, %245, %252 : vector<1x128xi1>, vector<1x128xf32>
    %cst_67 = arith.constant dense<0.000000e+00> : vector<1xf32>
    %254 = vector.multi_reduction <add>, %253, %cst_67 [1] : vector<1x128xf32> to vector<1xf32>
    %255 = vector.shape_cast %254 : vector<1xf32> to vector<1x1xf32>
    %256 = arith.addf %176, %255 : vector<1x1xf32>
    %c3 = arith.constant 3 : index
    %257 = memref.load %arg0[%c3] : memref<64xi32, #tpu.memory_space<smem>>
    %c19 = arith.constant 19 : index
    %258 = memref.load %arg0[%c19] : memref<64xi32, #tpu.memory_space<smem>>
    %259 = arith.index_cast %257 : i32 to index
    %c0_68 = arith.constant 0 : index
    %260 = vector.load %arg6[%259, %c0_68] : memref<512x128xf32, #tpu.memory_space<vmem>>, vector<1x128xf32>
    %c48_i32_69 = arith.constant 48 : i32
    %261 = arith.addi %c48_i32_69, %258 : i32
    %262 = vector.broadcast %261 : i32 to vector<1x128xi32>
    %263 = arith.cmpi eq, %14, %262 : vector<1x128xi32>
    %cst_70 = arith.constant 0.000000e+00 : f32
    %264 = vector.broadcast %cst_70 : f32 to vector<1x128xf32>
    %265 = arith.select %263, %260, %264 : vector<1x128xi1>, vector<1x128xf32>
    %cst_71 = arith.constant dense<0.000000e+00> : vector<1xf32>
    %266 = vector.multi_reduction <add>, %265, %cst_71 [1] : vector<1x128xf32> to vector<1xf32>
    %267 = vector.shape_cast %266 : vector<1xf32> to vector<1x1xf32>
    %cst_72 = arith.constant 0.000000e+00 : f32
    %268 = vector.broadcast %cst_72 : f32 to vector<1x1xf32>
    %269 = arith.maximumf %267, %268 : vector<1x1xf32>
    %270 = arith.subf %269, %267 : vector<1x1xf32>
    %271 = math.absf %267 : vector<1x1xf32>
    %cst_73 = arith.constant 0.000000e+00 : f32
    %272 = vector.broadcast %cst_73 : f32 to vector<1x1xf32>
    %273 = arith.subf %272, %271 : vector<1x1xf32>
    %274 = math.exp %273 : vector<1x1xf32>
    %cst_74 = arith.constant 1.000000e+00 : f32
    %275 = vector.broadcast %cst_74 : f32 to vector<1x1xf32>
    %276 = arith.addf %275, %274 : vector<1x1xf32>
    %277 = math.log %276 : vector<1x1xf32>
    %278 = arith.addf %270, %277 : vector<1x1xf32>
    %279 = arith.addf %199, %278 : vector<1x1xf32>
    %c4_i32_75 = arith.constant 4 : i32
    %280 = arith.muli %258, %c4_i32_75 : i32
    %c3_76 = arith.constant 3 : index
    %c0_77 = arith.constant 0 : index
    %281 = vector.load %arg5[%c3_76, %c0_77] : memref<16x4xf32, #tpu.memory_space<vmem>>, vector<1x4xf32>
    %282 = vector.extract_strided_slice %281 {offsets = [0, 0], sizes = [1, 1], strides = [1, 1]} : vector<1x4xf32> to vector<1x1xf32>
    %283 = vector.broadcast %280 : i32 to vector<1x128xi32>
    %284 = arith.cmpi eq, %14, %283 : vector<1x128xi32>
    %285 = arith.extui %284 : vector<1x128xi1> to vector<1x128xi32>
    %286 = arith.sitofp %285 : vector<1x128xi32> to vector<1x128xf32>
    %287 = vector.broadcast %282 : vector<1x1xf32> to vector<1x128xf32>
    %288 = arith.mulf %287, %286 : vector<1x128xf32>
    %289 = vector.extract_strided_slice %281 {offsets = [0, 1], sizes = [1, 1], strides = [1, 1]} : vector<1x4xf32> to vector<1x1xf32>
    %c1_i32_78 = arith.constant 1 : i32
    %290 = arith.addi %280, %c1_i32_78 : i32
    %291 = vector.broadcast %290 : i32 to vector<1x128xi32>
    %292 = arith.cmpi eq, %14, %291 : vector<1x128xi32>
    %293 = arith.extui %292 : vector<1x128xi1> to vector<1x128xi32>
    %294 = arith.sitofp %293 : vector<1x128xi32> to vector<1x128xf32>
    %295 = vector.broadcast %289 : vector<1x1xf32> to vector<1x128xf32>
    %296 = arith.mulf %295, %294 : vector<1x128xf32>
    %297 = arith.addf %288, %296 : vector<1x128xf32>
    %298 = vector.extract_strided_slice %281 {offsets = [0, 2], sizes = [1, 1], strides = [1, 1]} : vector<1x4xf32> to vector<1x1xf32>
    %c2_i32_79 = arith.constant 2 : i32
    %299 = arith.addi %280, %c2_i32_79 : i32
    %300 = vector.broadcast %299 : i32 to vector<1x128xi32>
    %301 = arith.cmpi eq, %14, %300 : vector<1x128xi32>
    %302 = arith.extui %301 : vector<1x128xi1> to vector<1x128xi32>
    %303 = arith.sitofp %302 : vector<1x128xi32> to vector<1x128xf32>
    %304 = vector.broadcast %298 : vector<1x1xf32> to vector<1x128xf32>
    %305 = arith.mulf %304, %303 : vector<1x128xf32>
    %306 = arith.addf %297, %305 : vector<1x128xf32>
    %307 = vector.extract_strided_slice %281 {offsets = [0, 3], sizes = [1, 1], strides = [1, 1]} : vector<1x4xf32> to vector<1x1xf32>
    %c3_i32_80 = arith.constant 3 : i32
    %308 = arith.addi %280, %c3_i32_80 : i32
    %309 = vector.broadcast %308 : i32 to vector<1x128xi32>
    %310 = arith.cmpi eq, %14, %309 : vector<1x128xi32>
    %311 = arith.extui %310 : vector<1x128xi1> to vector<1x128xi32>
    %312 = arith.sitofp %311 : vector<1x128xi32> to vector<1x128xf32>
    %313 = vector.broadcast %307 : vector<1x1xf32> to vector<1x128xf32>
    %314 = arith.mulf %313, %312 : vector<1x128xf32>
    %315 = arith.addf %306, %314 : vector<1x128xf32>
    %316 = arith.subf %260, %315 : vector<1x128xf32>
    %317 = math.absf %316 : vector<1x128xf32>
    %cst_81 = arith.constant 1.000000e+00 : f32
    %318 = vector.broadcast %cst_81 : f32 to vector<1x128xf32>
    %319 = arith.cmpf olt, %317, %318 : vector<1x128xf32>
    %cst_82 = arith.constant 5.000000e-01 : f32
    %320 = vector.broadcast %cst_82 : f32 to vector<1x128xf32>
    %321 = arith.mulf %320, %316 : vector<1x128xf32>
    %322 = arith.mulf %321, %316 : vector<1x128xf32>
    %cst_83 = arith.constant 5.000000e-01 : f32
    %323 = vector.broadcast %cst_83 : f32 to vector<1x128xf32>
    %324 = arith.subf %317, %323 : vector<1x128xf32>
    %325 = arith.select %319, %322, %324 : vector<1x128xi1>, vector<1x128xf32>
    %326 = vector.broadcast %280 : i32 to vector<1x128xi32>
    %327 = arith.cmpi sge, %14, %326 : vector<1x128xi32>
    %c4_i32_84 = arith.constant 4 : i32
    %328 = arith.addi %280, %c4_i32_84 : i32
    %329 = vector.broadcast %328 : i32 to vector<1x128xi32>
    %330 = arith.cmpi slt, %14, %329 : vector<1x128xi32>
    %331 = arith.andi %327, %330 : vector<1x128xi1>
    %cst_85 = arith.constant 0.000000e+00 : f32
    %332 = vector.broadcast %cst_85 : f32 to vector<1x128xf32>
    %333 = arith.select %331, %325, %332 : vector<1x128xi1>, vector<1x128xf32>
    %cst_86 = arith.constant dense<0.000000e+00> : vector<1xf32>
    %334 = vector.multi_reduction <add>, %333, %cst_86 [1] : vector<1x128xf32> to vector<1xf32>
    %335 = vector.shape_cast %334 : vector<1xf32> to vector<1x1xf32>
    %336 = arith.addf %256, %335 : vector<1x1xf32>
    %c4 = arith.constant 4 : index
    %337 = memref.load %arg0[%c4] : memref<64xi32, #tpu.memory_space<smem>>
    %c20 = arith.constant 20 : index
    %338 = memref.load %arg0[%c20] : memref<64xi32, #tpu.memory_space<smem>>
    %339 = arith.index_cast %337 : i32 to index
    %c0_87 = arith.constant 0 : index
    %340 = vector.load %arg6[%339, %c0_87] : memref<512x128xf32, #tpu.memory_space<vmem>>, vector<1x128xf32>
    %c48_i32_88 = arith.constant 48 : i32
    %341 = arith.addi %c48_i32_88, %338 : i32
    %342 = vector.broadcast %341 : i32 to vector<1x128xi32>
    %343 = arith.cmpi eq, %14, %342 : vector<1x128xi32>
    %cst_89 = arith.constant 0.000000e+00 : f32
    %344 = vector.broadcast %cst_89 : f32 to vector<1x128xf32>
    %345 = arith.select %343, %340, %344 : vector<1x128xi1>, vector<1x128xf32>
    %cst_90 = arith.constant dense<0.000000e+00> : vector<1xf32>
    %346 = vector.multi_reduction <add>, %345, %cst_90 [1] : vector<1x128xf32> to vector<1xf32>
    %347 = vector.shape_cast %346 : vector<1xf32> to vector<1x1xf32>
    %cst_91 = arith.constant 0.000000e+00 : f32
    %348 = vector.broadcast %cst_91 : f32 to vector<1x1xf32>
    %349 = arith.maximumf %347, %348 : vector<1x1xf32>
    %350 = arith.subf %349, %347 : vector<1x1xf32>
    %351 = math.absf %347 : vector<1x1xf32>
    %cst_92 = arith.constant 0.000000e+00 : f32
    %352 = vector.broadcast %cst_92 : f32 to vector<1x1xf32>
    %353 = arith.subf %352, %351 : vector<1x1xf32>
    %354 = math.exp %353 : vector<1x1xf32>
    %cst_93 = arith.constant 1.000000e+00 : f32
    %355 = vector.broadcast %cst_93 : f32 to vector<1x1xf32>
    %356 = arith.addf %355, %354 : vector<1x1xf32>
    %357 = math.log %356 : vector<1x1xf32>
    %358 = arith.addf %350, %357 : vector<1x1xf32>
    %359 = arith.addf %279, %358 : vector<1x1xf32>
    %c4_i32_94 = arith.constant 4 : i32
    %360 = arith.muli %338, %c4_i32_94 : i32
    %c4_95 = arith.constant 4 : index
    %c0_96 = arith.constant 0 : index
    %361 = vector.load %arg5[%c4_95, %c0_96] : memref<16x4xf32, #tpu.memory_space<vmem>>, vector<1x4xf32>
    %362 = vector.extract_strided_slice %361 {offsets = [0, 0], sizes = [1, 1], strides = [1, 1]} : vector<1x4xf32> to vector<1x1xf32>
    %363 = vector.broadcast %360 : i32 to vector<1x128xi32>
    %364 = arith.cmpi eq, %14, %363 : vector<1x128xi32>
    %365 = arith.extui %364 : vector<1x128xi1> to vector<1x128xi32>
    %366 = arith.sitofp %365 : vector<1x128xi32> to vector<1x128xf32>
    %367 = vector.broadcast %362 : vector<1x1xf32> to vector<1x128xf32>
    %368 = arith.mulf %367, %366 : vector<1x128xf32>
    %369 = vector.extract_strided_slice %361 {offsets = [0, 1], sizes = [1, 1], strides = [1, 1]} : vector<1x4xf32> to vector<1x1xf32>
    %c1_i32_97 = arith.constant 1 : i32
    %370 = arith.addi %360, %c1_i32_97 : i32
    %371 = vector.broadcast %370 : i32 to vector<1x128xi32>
    %372 = arith.cmpi eq, %14, %371 : vector<1x128xi32>
    %373 = arith.extui %372 : vector<1x128xi1> to vector<1x128xi32>
    %374 = arith.sitofp %373 : vector<1x128xi32> to vector<1x128xf32>
    %375 = vector.broadcast %369 : vector<1x1xf32> to vector<1x128xf32>
    %376 = arith.mulf %375, %374 : vector<1x128xf32>
    %377 = arith.addf %368, %376 : vector<1x128xf32>
    %378 = vector.extract_strided_slice %361 {offsets = [0, 2], sizes = [1, 1], strides = [1, 1]} : vector<1x4xf32> to vector<1x1xf32>
    %c2_i32_98 = arith.constant 2 : i32
    %379 = arith.addi %360, %c2_i32_98 : i32
    %380 = vector.broadcast %379 : i32 to vector<1x128xi32>
    %381 = arith.cmpi eq, %14, %380 : vector<1x128xi32>
    %382 = arith.extui %381 : vector<1x128xi1> to vector<1x128xi32>
    %383 = arith.sitofp %382 : vector<1x128xi32> to vector<1x128xf32>
    %384 = vector.broadcast %378 : vector<1x1xf32> to vector<1x128xf32>
    %385 = arith.mulf %384, %383 : vector<1x128xf32>
    %386 = arith.addf %377, %385 : vector<1x128xf32>
    %387 = vector.extract_strided_slice %361 {offsets = [0, 3], sizes = [1, 1], strides = [1, 1]} : vector<1x4xf32> to vector<1x1xf32>
    %c3_i32_99 = arith.constant 3 : i32
    %388 = arith.addi %360, %c3_i32_99 : i32
    %389 = vector.broadcast %388 : i32 to vector<1x128xi32>
    %390 = arith.cmpi eq, %14, %389 : vector<1x128xi32>
    %391 = arith.extui %390 : vector<1x128xi1> to vector<1x128xi32>
    %392 = arith.sitofp %391 : vector<1x128xi32> to vector<1x128xf32>
    %393 = vector.broadcast %387 : vector<1x1xf32> to vector<1x128xf32>
    %394 = arith.mulf %393, %392 : vector<1x128xf32>
    %395 = arith.addf %386, %394 : vector<1x128xf32>
    %396 = arith.subf %340, %395 : vector<1x128xf32>
    %397 = math.absf %396 : vector<1x128xf32>
    %cst_100 = arith.constant 1.000000e+00 : f32
    %398 = vector.broadcast %cst_100 : f32 to vector<1x128xf32>
    %399 = arith.cmpf olt, %397, %398 : vector<1x128xf32>
    %cst_101 = arith.constant 5.000000e-01 : f32
    %400 = vector.broadcast %cst_101 : f32 to vector<1x128xf32>
    %401 = arith.mulf %400, %396 : vector<1x128xf32>
    %402 = arith.mulf %401, %396 : vector<1x128xf32>
    %cst_102 = arith.constant 5.000000e-01 : f32
    %403 = vector.broadcast %cst_102 : f32 to vector<1x128xf32>
    %404 = arith.subf %397, %403 : vector<1x128xf32>
    %405 = arith.select %399, %402, %404 : vector<1x128xi1>, vector<1x128xf32>
    %406 = vector.broadcast %360 : i32 to vector<1x128xi32>
    %407 = arith.cmpi sge, %14, %406 : vector<1x128xi32>
    %c4_i32_103 = arith.constant 4 : i32
    %408 = arith.addi %360, %c4_i32_103 : i32
    %409 = vector.broadcast %408 : i32 to vector<1x128xi32>
    %410 = arith.cmpi slt, %14, %409 : vector<1x128xi32>
    %411 = arith.andi %407, %410 : vector<1x128xi1>
    %cst_104 = arith.constant 0.000000e+00 : f32
    %412 = vector.broadcast %cst_104 : f32 to vector<1x128xf32>
    %413 = arith.select %411, %405, %412 : vector<1x128xi1>, vector<1x128xf32>
    %cst_105 = arith.constant dense<0.000000e+00> : vector<1xf32>
    %414 = vector.multi_reduction <add>, %413, %cst_105 [1] : vector<1x128xf32> to vector<1xf32>
    %415 = vector.shape_cast %414 : vector<1xf32> to vector<1x1xf32>
    %416 = arith.addf %336, %415 : vector<1x1xf32>
    %c5 = arith.constant 5 : index
    %417 = memref.load %arg0[%c5] : memref<64xi32, #tpu.memory_space<smem>>
    %c21 = arith.constant 21 : index
    %418 = memref.load %arg0[%c21] : memref<64xi32, #tpu.memory_space<smem>>
    %419 = arith.index_cast %417 : i32 to index
    %c0_106 = arith.constant 0 : index
    %420 = vector.load %arg6[%419, %c0_106] : memref<512x128xf32, #tpu.memory_space<vmem>>, vector<1x128xf32>
    %c48_i32_107 = arith.constant 48 : i32
    %421 = arith.addi %c48_i32_107, %418 : i32
    %422 = vector.broadcast %421 : i32 to vector<1x128xi32>
    %423 = arith.cmpi eq, %14, %422 : vector<1x128xi32>
    %cst_108 = arith.constant 0.000000e+00 : f32
    %424 = vector.broadcast %cst_108 : f32 to vector<1x128xf32>
    %425 = arith.select %423, %420, %424 : vector<1x128xi1>, vector<1x128xf32>
    %cst_109 = arith.constant dense<0.000000e+00> : vector<1xf32>
    %426 = vector.multi_reduction <add>, %425, %cst_109 [1] : vector<1x128xf32> to vector<1xf32>
    %427 = vector.shape_cast %426 : vector<1xf32> to vector<1x1xf32>
    %cst_110 = arith.constant 0.000000e+00 : f32
    %428 = vector.broadcast %cst_110 : f32 to vector<1x1xf32>
    %429 = arith.maximumf %427, %428 : vector<1x1xf32>
    %430 = arith.subf %429, %427 : vector<1x1xf32>
    %431 = math.absf %427 : vector<1x1xf32>
    %cst_111 = arith.constant 0.000000e+00 : f32
    %432 = vector.broadcast %cst_111 : f32 to vector<1x1xf32>
    %433 = arith.subf %432, %431 : vector<1x1xf32>
    %434 = math.exp %433 : vector<1x1xf32>
    %cst_112 = arith.constant 1.000000e+00 : f32
    %435 = vector.broadcast %cst_112 : f32 to vector<1x1xf32>
    %436 = arith.addf %435, %434 : vector<1x1xf32>
    %437 = math.log %436 : vector<1x1xf32>
    %438 = arith.addf %430, %437 : vector<1x1xf32>
    %439 = arith.addf %359, %438 : vector<1x1xf32>
    %c4_i32_113 = arith.constant 4 : i32
    %440 = arith.muli %418, %c4_i32_113 : i32
    %c5_114 = arith.constant 5 : index
    %c0_115 = arith.constant 0 : index
    %441 = vector.load %arg5[%c5_114, %c0_115] : memref<16x4xf32, #tpu.memory_space<vmem>>, vector<1x4xf32>
    %442 = vector.extract_strided_slice %441 {offsets = [0, 0], sizes = [1, 1], strides = [1, 1]} : vector<1x4xf32> to vector<1x1xf32>
    %443 = vector.broadcast %440 : i32 to vector<1x128xi32>
    %444 = arith.cmpi eq, %14, %443 : vector<1x128xi32>
    %445 = arith.extui %444 : vector<1x128xi1> to vector<1x128xi32>
    %446 = arith.sitofp %445 : vector<1x128xi32> to vector<1x128xf32>
    %447 = vector.broadcast %442 : vector<1x1xf32> to vector<1x128xf32>
    %448 = arith.mulf %447, %446 : vector<1x128xf32>
    %449 = vector.extract_strided_slice %441 {offsets = [0, 1], sizes = [1, 1], strides = [1, 1]} : vector<1x4xf32> to vector<1x1xf32>
    %c1_i32_116 = arith.constant 1 : i32
    %450 = arith.addi %440, %c1_i32_116 : i32
    %451 = vector.broadcast %450 : i32 to vector<1x128xi32>
    %452 = arith.cmpi eq, %14, %451 : vector<1x128xi32>
    %453 = arith.extui %452 : vector<1x128xi1> to vector<1x128xi32>
    %454 = arith.sitofp %453 : vector<1x128xi32> to vector<1x128xf32>
    %455 = vector.broadcast %449 : vector<1x1xf32> to vector<1x128xf32>
    %456 = arith.mulf %455, %454 : vector<1x128xf32>
    %457 = arith.addf %448, %456 : vector<1x128xf32>
    %458 = vector.extract_strided_slice %441 {offsets = [0, 2], sizes = [1, 1], strides = [1, 1]} : vector<1x4xf32> to vector<1x1xf32>
    %c2_i32_117 = arith.constant 2 : i32
    %459 = arith.addi %440, %c2_i32_117 : i32
    %460 = vector.broadcast %459 : i32 to vector<1x128xi32>
    %461 = arith.cmpi eq, %14, %460 : vector<1x128xi32>
    %462 = arith.extui %461 : vector<1x128xi1> to vector<1x128xi32>
    %463 = arith.sitofp %462 : vector<1x128xi32> to vector<1x128xf32>
    %464 = vector.broadcast %458 : vector<1x1xf32> to vector<1x128xf32>
    %465 = arith.mulf %464, %463 : vector<1x128xf32>
    %466 = arith.addf %457, %465 : vector<1x128xf32>
    %467 = vector.extract_strided_slice %441 {offsets = [0, 3], sizes = [1, 1], strides = [1, 1]} : vector<1x4xf32> to vector<1x1xf32>
    %c3_i32_118 = arith.constant 3 : i32
    %468 = arith.addi %440, %c3_i32_118 : i32
    %469 = vector.broadcast %468 : i32 to vector<1x128xi32>
    %470 = arith.cmpi eq, %14, %469 : vector<1x128xi32>
    %471 = arith.extui %470 : vector<1x128xi1> to vector<1x128xi32>
    %472 = arith.sitofp %471 : vector<1x128xi32> to vector<1x128xf32>
    %473 = vector.broadcast %467 : vector<1x1xf32> to vector<1x128xf32>
    %474 = arith.mulf %473, %472 : vector<1x128xf32>
    %475 = arith.addf %466, %474 : vector<1x128xf32>
    %476 = arith.subf %420, %475 : vector<1x128xf32>
    %477 = math.absf %476 : vector<1x128xf32>
    %cst_119 = arith.constant 1.000000e+00 : f32
    %478 = vector.broadcast %cst_119 : f32 to vector<1x128xf32>
    %479 = arith.cmpf olt, %477, %478 : vector<1x128xf32>
    %cst_120 = arith.constant 5.000000e-01 : f32
    %480 = vector.broadcast %cst_120 : f32 to vector<1x128xf32>
    %481 = arith.mulf %480, %476 : vector<1x128xf32>
    %482 = arith.mulf %481, %476 : vector<1x128xf32>
    %cst_121 = arith.constant 5.000000e-01 : f32
    %483 = vector.broadcast %cst_121 : f32 to vector<1x128xf32>
    %484 = arith.subf %477, %483 : vector<1x128xf32>
    %485 = arith.select %479, %482, %484 : vector<1x128xi1>, vector<1x128xf32>
    %486 = vector.broadcast %440 : i32 to vector<1x128xi32>
    %487 = arith.cmpi sge, %14, %486 : vector<1x128xi32>
    %c4_i32_122 = arith.constant 4 : i32
    %488 = arith.addi %440, %c4_i32_122 : i32
    %489 = vector.broadcast %488 : i32 to vector<1x128xi32>
    %490 = arith.cmpi slt, %14, %489 : vector<1x128xi32>
    %491 = arith.andi %487, %490 : vector<1x128xi1>
    %cst_123 = arith.constant 0.000000e+00 : f32
    %492 = vector.broadcast %cst_123 : f32 to vector<1x128xf32>
    %493 = arith.select %491, %485, %492 : vector<1x128xi1>, vector<1x128xf32>
    %cst_124 = arith.constant dense<0.000000e+00> : vector<1xf32>
    %494 = vector.multi_reduction <add>, %493, %cst_124 [1] : vector<1x128xf32> to vector<1xf32>
    %495 = vector.shape_cast %494 : vector<1xf32> to vector<1x1xf32>
    %496 = arith.addf %416, %495 : vector<1x1xf32>
    %c6 = arith.constant 6 : index
    %497 = memref.load %arg0[%c6] : memref<64xi32, #tpu.memory_space<smem>>
    %c22 = arith.constant 22 : index
    %498 = memref.load %arg0[%c22] : memref<64xi32, #tpu.memory_space<smem>>
    %499 = arith.index_cast %497 : i32 to index
    %c0_125 = arith.constant 0 : index
    %500 = vector.load %arg6[%499, %c0_125] : memref<512x128xf32, #tpu.memory_space<vmem>>, vector<1x128xf32>
    %c48_i32_126 = arith.constant 48 : i32
    %501 = arith.addi %c48_i32_126, %498 : i32
    %502 = vector.broadcast %501 : i32 to vector<1x128xi32>
    %503 = arith.cmpi eq, %14, %502 : vector<1x128xi32>
    %cst_127 = arith.constant 0.000000e+00 : f32
    %504 = vector.broadcast %cst_127 : f32 to vector<1x128xf32>
    %505 = arith.select %503, %500, %504 : vector<1x128xi1>, vector<1x128xf32>
    %cst_128 = arith.constant dense<0.000000e+00> : vector<1xf32>
    %506 = vector.multi_reduction <add>, %505, %cst_128 [1] : vector<1x128xf32> to vector<1xf32>
    %507 = vector.shape_cast %506 : vector<1xf32> to vector<1x1xf32>
    %cst_129 = arith.constant 0.000000e+00 : f32
    %508 = vector.broadcast %cst_129 : f32 to vector<1x1xf32>
    %509 = arith.maximumf %507, %508 : vector<1x1xf32>
    %510 = arith.subf %509, %507 : vector<1x1xf32>
    %511 = math.absf %507 : vector<1x1xf32>
    %cst_130 = arith.constant 0.000000e+00 : f32
    %512 = vector.broadcast %cst_130 : f32 to vector<1x1xf32>
    %513 = arith.subf %512, %511 : vector<1x1xf32>
    %514 = math.exp %513 : vector<1x1xf32>
    %cst_131 = arith.constant 1.000000e+00 : f32
    %515 = vector.broadcast %cst_131 : f32 to vector<1x1xf32>
    %516 = arith.addf %515, %514 : vector<1x1xf32>
    %517 = math.log %516 : vector<1x1xf32>
    %518 = arith.addf %510, %517 : vector<1x1xf32>
    %519 = arith.addf %439, %518 : vector<1x1xf32>
    %c4_i32_132 = arith.constant 4 : i32
    %520 = arith.muli %498, %c4_i32_132 : i32
    %c6_133 = arith.constant 6 : index
    %c0_134 = arith.constant 0 : index
    %521 = vector.load %arg5[%c6_133, %c0_134] : memref<16x4xf32, #tpu.memory_space<vmem>>, vector<1x4xf32>
    %522 = vector.extract_strided_slice %521 {offsets = [0, 0], sizes = [1, 1], strides = [1, 1]} : vector<1x4xf32> to vector<1x1xf32>
    %523 = vector.broadcast %520 : i32 to vector<1x128xi32>
    %524 = arith.cmpi eq, %14, %523 : vector<1x128xi32>
    %525 = arith.extui %524 : vector<1x128xi1> to vector<1x128xi32>
    %526 = arith.sitofp %525 : vector<1x128xi32> to vector<1x128xf32>
    %527 = vector.broadcast %522 : vector<1x1xf32> to vector<1x128xf32>
    %528 = arith.mulf %527, %526 : vector<1x128xf32>
    %529 = vector.extract_strided_slice %521 {offsets = [0, 1], sizes = [1, 1], strides = [1, 1]} : vector<1x4xf32> to vector<1x1xf32>
    %c1_i32_135 = arith.constant 1 : i32
    %530 = arith.addi %520, %c1_i32_135 : i32
    %531 = vector.broadcast %530 : i32 to vector<1x128xi32>
    %532 = arith.cmpi eq, %14, %531 : vector<1x128xi32>
    %533 = arith.extui %532 : vector<1x128xi1> to vector<1x128xi32>
    %534 = arith.sitofp %533 : vector<1x128xi32> to vector<1x128xf32>
    %535 = vector.broadcast %529 : vector<1x1xf32> to vector<1x128xf32>
    %536 = arith.mulf %535, %534 : vector<1x128xf32>
    %537 = arith.addf %528, %536 : vector<1x128xf32>
    %538 = vector.extract_strided_slice %521 {offsets = [0, 2], sizes = [1, 1], strides = [1, 1]} : vector<1x4xf32> to vector<1x1xf32>
    %c2_i32_136 = arith.constant 2 : i32
    %539 = arith.addi %520, %c2_i32_136 : i32
    %540 = vector.broadcast %539 : i32 to vector<1x128xi32>
    %541 = arith.cmpi eq, %14, %540 : vector<1x128xi32>
    %542 = arith.extui %541 : vector<1x128xi1> to vector<1x128xi32>
    %543 = arith.sitofp %542 : vector<1x128xi32> to vector<1x128xf32>
    %544 = vector.broadcast %538 : vector<1x1xf32> to vector<1x128xf32>
    %545 = arith.mulf %544, %543 : vector<1x128xf32>
    %546 = arith.addf %537, %545 : vector<1x128xf32>
    %547 = vector.extract_strided_slice %521 {offsets = [0, 3], sizes = [1, 1], strides = [1, 1]} : vector<1x4xf32> to vector<1x1xf32>
    %c3_i32_137 = arith.constant 3 : i32
    %548 = arith.addi %520, %c3_i32_137 : i32
    %549 = vector.broadcast %548 : i32 to vector<1x128xi32>
    %550 = arith.cmpi eq, %14, %549 : vector<1x128xi32>
    %551 = arith.extui %550 : vector<1x128xi1> to vector<1x128xi32>
    %552 = arith.sitofp %551 : vector<1x128xi32> to vector<1x128xf32>
    %553 = vector.broadcast %547 : vector<1x1xf32> to vector<1x128xf32>
    %554 = arith.mulf %553, %552 : vector<1x128xf32>
    %555 = arith.addf %546, %554 : vector<1x128xf32>
    %556 = arith.subf %500, %555 : vector<1x128xf32>
    %557 = math.absf %556 : vector<1x128xf32>
    %cst_138 = arith.constant 1.000000e+00 : f32
    %558 = vector.broadcast %cst_138 : f32 to vector<1x128xf32>
    %559 = arith.cmpf olt, %557, %558 : vector<1x128xf32>
    %cst_139 = arith.constant 5.000000e-01 : f32
    %560 = vector.broadcast %cst_139 : f32 to vector<1x128xf32>
    %561 = arith.mulf %560, %556 : vector<1x128xf32>
    %562 = arith.mulf %561, %556 : vector<1x128xf32>
    %cst_140 = arith.constant 5.000000e-01 : f32
    %563 = vector.broadcast %cst_140 : f32 to vector<1x128xf32>
    %564 = arith.subf %557, %563 : vector<1x128xf32>
    %565 = arith.select %559, %562, %564 : vector<1x128xi1>, vector<1x128xf32>
    %566 = vector.broadcast %520 : i32 to vector<1x128xi32>
    %567 = arith.cmpi sge, %14, %566 : vector<1x128xi32>
    %c4_i32_141 = arith.constant 4 : i32
    %568 = arith.addi %520, %c4_i32_141 : i32
    %569 = vector.broadcast %568 : i32 to vector<1x128xi32>
    %570 = arith.cmpi slt, %14, %569 : vector<1x128xi32>
    %571 = arith.andi %567, %570 : vector<1x128xi1>
    %cst_142 = arith.constant 0.000000e+00 : f32
    %572 = vector.broadcast %cst_142 : f32 to vector<1x128xf32>
    %573 = arith.select %571, %565, %572 : vector<1x128xi1>, vector<1x128xf32>
    %cst_143 = arith.constant dense<0.000000e+00> : vector<1xf32>
    %574 = vector.multi_reduction <add>, %573, %cst_143 [1] : vector<1x128xf32> to vector<1xf32>
    %575 = vector.shape_cast %574 : vector<1xf32> to vector<1x1xf32>
    %576 = arith.addf %496, %575 : vector<1x1xf32>
    %c7 = arith.constant 7 : index
    %577 = memref.load %arg0[%c7] : memref<64xi32, #tpu.memory_space<smem>>
    %c23 = arith.constant 23 : index
    %578 = memref.load %arg0[%c23] : memref<64xi32, #tpu.memory_space<smem>>
    %579 = arith.index_cast %577 : i32 to index
    %c0_144 = arith.constant 0 : index
    %580 = vector.load %arg6[%579, %c0_144] : memref<512x128xf32, #tpu.memory_space<vmem>>, vector<1x128xf32>
    %c48_i32_145 = arith.constant 48 : i32
    %581 = arith.addi %c48_i32_145, %578 : i32
    %582 = vector.broadcast %581 : i32 to vector<1x128xi32>
    %583 = arith.cmpi eq, %14, %582 : vector<1x128xi32>
    %cst_146 = arith.constant 0.000000e+00 : f32
    %584 = vector.broadcast %cst_146 : f32 to vector<1x128xf32>
    %585 = arith.select %583, %580, %584 : vector<1x128xi1>, vector<1x128xf32>
    %cst_147 = arith.constant dense<0.000000e+00> : vector<1xf32>
    %586 = vector.multi_reduction <add>, %585, %cst_147 [1] : vector<1x128xf32> to vector<1xf32>
    %587 = vector.shape_cast %586 : vector<1xf32> to vector<1x1xf32>
    %cst_148 = arith.constant 0.000000e+00 : f32
    %588 = vector.broadcast %cst_148 : f32 to vector<1x1xf32>
    %589 = arith.maximumf %587, %588 : vector<1x1xf32>
    %590 = arith.subf %589, %587 : vector<1x1xf32>
    %591 = math.absf %587 : vector<1x1xf32>
    %cst_149 = arith.constant 0.000000e+00 : f32
    %592 = vector.broadcast %cst_149 : f32 to vector<1x1xf32>
    %593 = arith.subf %592, %591 : vector<1x1xf32>
    %594 = math.exp %593 : vector<1x1xf32>
    %cst_150 = arith.constant 1.000000e+00 : f32
    %595 = vector.broadcast %cst_150 : f32 to vector<1x1xf32>
    %596 = arith.addf %595, %594 : vector<1x1xf32>
    %597 = math.log %596 : vector<1x1xf32>
    %598 = arith.addf %590, %597 : vector<1x1xf32>
    %599 = arith.addf %519, %598 : vector<1x1xf32>
    %c4_i32_151 = arith.constant 4 : i32
    %600 = arith.muli %578, %c4_i32_151 : i32
    %c7_152 = arith.constant 7 : index
    %c0_153 = arith.constant 0 : index
    %601 = vector.load %arg5[%c7_152, %c0_153] : memref<16x4xf32, #tpu.memory_space<vmem>>, vector<1x4xf32>
    %602 = vector.extract_strided_slice %601 {offsets = [0, 0], sizes = [1, 1], strides = [1, 1]} : vector<1x4xf32> to vector<1x1xf32>
    %603 = vector.broadcast %600 : i32 to vector<1x128xi32>
    %604 = arith.cmpi eq, %14, %603 : vector<1x128xi32>
    %605 = arith.extui %604 : vector<1x128xi1> to vector<1x128xi32>
    %606 = arith.sitofp %605 : vector<1x128xi32> to vector<1x128xf32>
    %607 = vector.broadcast %602 : vector<1x1xf32> to vector<1x128xf32>
    %608 = arith.mulf %607, %606 : vector<1x128xf32>
    %609 = vector.extract_strided_slice %601 {offsets = [0, 1], sizes = [1, 1], strides = [1, 1]} : vector<1x4xf32> to vector<1x1xf32>
    %c1_i32_154 = arith.constant 1 : i32
    %610 = arith.addi %600, %c1_i32_154 : i32
    %611 = vector.broadcast %610 : i32 to vector<1x128xi32>
    %612 = arith.cmpi eq, %14, %611 : vector<1x128xi32>
    %613 = arith.extui %612 : vector<1x128xi1> to vector<1x128xi32>
    %614 = arith.sitofp %613 : vector<1x128xi32> to vector<1x128xf32>
    %615 = vector.broadcast %609 : vector<1x1xf32> to vector<1x128xf32>
    %616 = arith.mulf %615, %614 : vector<1x128xf32>
    %617 = arith.addf %608, %616 : vector<1x128xf32>
    %618 = vector.extract_strided_slice %601 {offsets = [0, 2], sizes = [1, 1], strides = [1, 1]} : vector<1x4xf32> to vector<1x1xf32>
    %c2_i32_155 = arith.constant 2 : i32
    %619 = arith.addi %600, %c2_i32_155 : i32
    %620 = vector.broadcast %619 : i32 to vector<1x128xi32>
    %621 = arith.cmpi eq, %14, %620 : vector<1x128xi32>
    %622 = arith.extui %621 : vector<1x128xi1> to vector<1x128xi32>
    %623 = arith.sitofp %622 : vector<1x128xi32> to vector<1x128xf32>
    %624 = vector.broadcast %618 : vector<1x1xf32> to vector<1x128xf32>
    %625 = arith.mulf %624, %623 : vector<1x128xf32>
    %626 = arith.addf %617, %625 : vector<1x128xf32>
    %627 = vector.extract_strided_slice %601 {offsets = [0, 3], sizes = [1, 1], strides = [1, 1]} : vector<1x4xf32> to vector<1x1xf32>
    %c3_i32_156 = arith.constant 3 : i32
    %628 = arith.addi %600, %c3_i32_156 : i32
    %629 = vector.broadcast %628 : i32 to vector<1x128xi32>
    %630 = arith.cmpi eq, %14, %629 : vector<1x128xi32>
    %631 = arith.extui %630 : vector<1x128xi1> to vector<1x128xi32>
    %632 = arith.sitofp %631 : vector<1x128xi32> to vector<1x128xf32>
    %633 = vector.broadcast %627 : vector<1x1xf32> to vector<1x128xf32>
    %634 = arith.mulf %633, %632 : vector<1x128xf32>
    %635 = arith.addf %626, %634 : vector<1x128xf32>
    %636 = arith.subf %580, %635 : vector<1x128xf32>
    %637 = math.absf %636 : vector<1x128xf32>
    %cst_157 = arith.constant 1.000000e+00 : f32
    %638 = vector.broadcast %cst_157 : f32 to vector<1x128xf32>
    %639 = arith.cmpf olt, %637, %638 : vector<1x128xf32>
    %cst_158 = arith.constant 5.000000e-01 : f32
    %640 = vector.broadcast %cst_158 : f32 to vector<1x128xf32>
    %641 = arith.mulf %640, %636 : vector<1x128xf32>
    %642 = arith.mulf %641, %636 : vector<1x128xf32>
    %cst_159 = arith.constant 5.000000e-01 : f32
    %643 = vector.broadcast %cst_159 : f32 to vector<1x128xf32>
    %644 = arith.subf %637, %643 : vector<1x128xf32>
    %645 = arith.select %639, %642, %644 : vector<1x128xi1>, vector<1x128xf32>
    %646 = vector.broadcast %600 : i32 to vector<1x128xi32>
    %647 = arith.cmpi sge, %14, %646 : vector<1x128xi32>
    %c4_i32_160 = arith.constant 4 : i32
    %648 = arith.addi %600, %c4_i32_160 : i32
    %649 = vector.broadcast %648 : i32 to vector<1x128xi32>
    %650 = arith.cmpi slt, %14, %649 : vector<1x128xi32>
    %651 = arith.andi %647, %650 : vector<1x128xi1>
    %cst_161 = arith.constant 0.000000e+00 : f32
    %652 = vector.broadcast %cst_161 : f32 to vector<1x128xf32>
    %653 = arith.select %651, %645, %652 : vector<1x128xi1>, vector<1x128xf32>
    %cst_162 = arith.constant dense<0.000000e+00> : vector<1xf32>
    %654 = vector.multi_reduction <add>, %653, %cst_162 [1] : vector<1x128xf32> to vector<1xf32>
    %655 = vector.shape_cast %654 : vector<1xf32> to vector<1x1xf32>
    %656 = arith.addf %576, %655 : vector<1x1xf32>
    %c8 = arith.constant 8 : index
    %657 = memref.load %arg0[%c8] : memref<64xi32, #tpu.memory_space<smem>>
    %c24 = arith.constant 24 : index
    %658 = memref.load %arg0[%c24] : memref<64xi32, #tpu.memory_space<smem>>
    %659 = arith.index_cast %657 : i32 to index
    %c0_163 = arith.constant 0 : index
    %660 = vector.load %arg6[%659, %c0_163] : memref<512x128xf32, #tpu.memory_space<vmem>>, vector<1x128xf32>
    %c48_i32_164 = arith.constant 48 : i32
    %661 = arith.addi %c48_i32_164, %658 : i32
    %662 = vector.broadcast %661 : i32 to vector<1x128xi32>
    %663 = arith.cmpi eq, %14, %662 : vector<1x128xi32>
    %cst_165 = arith.constant 0.000000e+00 : f32
    %664 = vector.broadcast %cst_165 : f32 to vector<1x128xf32>
    %665 = arith.select %663, %660, %664 : vector<1x128xi1>, vector<1x128xf32>
    %cst_166 = arith.constant dense<0.000000e+00> : vector<1xf32>
    %666 = vector.multi_reduction <add>, %665, %cst_166 [1] : vector<1x128xf32> to vector<1xf32>
    %667 = vector.shape_cast %666 : vector<1xf32> to vector<1x1xf32>
    %cst_167 = arith.constant 0.000000e+00 : f32
    %668 = vector.broadcast %cst_167 : f32 to vector<1x1xf32>
    %669 = arith.maximumf %667, %668 : vector<1x1xf32>
    %670 = arith.subf %669, %667 : vector<1x1xf32>
    %671 = math.absf %667 : vector<1x1xf32>
    %cst_168 = arith.constant 0.000000e+00 : f32
    %672 = vector.broadcast %cst_168 : f32 to vector<1x1xf32>
    %673 = arith.subf %672, %671 : vector<1x1xf32>
    %674 = math.exp %673 : vector<1x1xf32>
    %cst_169 = arith.constant 1.000000e+00 : f32
    %675 = vector.broadcast %cst_169 : f32 to vector<1x1xf32>
    %676 = arith.addf %675, %674 : vector<1x1xf32>
    %677 = math.log %676 : vector<1x1xf32>
    %678 = arith.addf %670, %677 : vector<1x1xf32>
    %679 = arith.addf %599, %678 : vector<1x1xf32>
    %c4_i32_170 = arith.constant 4 : i32
    %680 = arith.muli %658, %c4_i32_170 : i32
    %c8_171 = arith.constant 8 : index
    %c0_172 = arith.constant 0 : index
    %681 = vector.load %arg5[%c8_171, %c0_172] : memref<16x4xf32, #tpu.memory_space<vmem>>, vector<1x4xf32>
    %682 = vector.extract_strided_slice %681 {offsets = [0, 0], sizes = [1, 1], strides = [1, 1]} : vector<1x4xf32> to vector<1x1xf32>
    %683 = vector.broadcast %680 : i32 to vector<1x128xi32>
    %684 = arith.cmpi eq, %14, %683 : vector<1x128xi32>
    %685 = arith.extui %684 : vector<1x128xi1> to vector<1x128xi32>
    %686 = arith.sitofp %685 : vector<1x128xi32> to vector<1x128xf32>
    %687 = vector.broadcast %682 : vector<1x1xf32> to vector<1x128xf32>
    %688 = arith.mulf %687, %686 : vector<1x128xf32>
    %689 = vector.extract_strided_slice %681 {offsets = [0, 1], sizes = [1, 1], strides = [1, 1]} : vector<1x4xf32> to vector<1x1xf32>
    %c1_i32_173 = arith.constant 1 : i32
    %690 = arith.addi %680, %c1_i32_173 : i32
    %691 = vector.broadcast %690 : i32 to vector<1x128xi32>
    %692 = arith.cmpi eq, %14, %691 : vector<1x128xi32>
    %693 = arith.extui %692 : vector<1x128xi1> to vector<1x128xi32>
    %694 = arith.sitofp %693 : vector<1x128xi32> to vector<1x128xf32>
    %695 = vector.broadcast %689 : vector<1x1xf32> to vector<1x128xf32>
    %696 = arith.mulf %695, %694 : vector<1x128xf32>
    %697 = arith.addf %688, %696 : vector<1x128xf32>
    %698 = vector.extract_strided_slice %681 {offsets = [0, 2], sizes = [1, 1], strides = [1, 1]} : vector<1x4xf32> to vector<1x1xf32>
    %c2_i32_174 = arith.constant 2 : i32
    %699 = arith.addi %680, %c2_i32_174 : i32
    %700 = vector.broadcast %699 : i32 to vector<1x128xi32>
    %701 = arith.cmpi eq, %14, %700 : vector<1x128xi32>
    %702 = arith.extui %701 : vector<1x128xi1> to vector<1x128xi32>
    %703 = arith.sitofp %702 : vector<1x128xi32> to vector<1x128xf32>
    %704 = vector.broadcast %698 : vector<1x1xf32> to vector<1x128xf32>
    %705 = arith.mulf %704, %703 : vector<1x128xf32>
    %706 = arith.addf %697, %705 : vector<1x128xf32>
    %707 = vector.extract_strided_slice %681 {offsets = [0, 3], sizes = [1, 1], strides = [1, 1]} : vector<1x4xf32> to vector<1x1xf32>
    %c3_i32_175 = arith.constant 3 : i32
    %708 = arith.addi %680, %c3_i32_175 : i32
    %709 = vector.broadcast %708 : i32 to vector<1x128xi32>
    %710 = arith.cmpi eq, %14, %709 : vector<1x128xi32>
    %711 = arith.extui %710 : vector<1x128xi1> to vector<1x128xi32>
    %712 = arith.sitofp %711 : vector<1x128xi32> to vector<1x128xf32>
    %713 = vector.broadcast %707 : vector<1x1xf32> to vector<1x128xf32>
    %714 = arith.mulf %713, %712 : vector<1x128xf32>
    %715 = arith.addf %706, %714 : vector<1x128xf32>
    %716 = arith.subf %660, %715 : vector<1x128xf32>
    %717 = math.absf %716 : vector<1x128xf32>
    %cst_176 = arith.constant 1.000000e+00 : f32
    %718 = vector.broadcast %cst_176 : f32 to vector<1x128xf32>
    %719 = arith.cmpf olt, %717, %718 : vector<1x128xf32>
    %cst_177 = arith.constant 5.000000e-01 : f32
    %720 = vector.broadcast %cst_177 : f32 to vector<1x128xf32>
    %721 = arith.mulf %720, %716 : vector<1x128xf32>
    %722 = arith.mulf %721, %716 : vector<1x128xf32>
    %cst_178 = arith.constant 5.000000e-01 : f32
    %723 = vector.broadcast %cst_178 : f32 to vector<1x128xf32>
    %724 = arith.subf %717, %723 : vector<1x128xf32>
    %725 = arith.select %719, %722, %724 : vector<1x128xi1>, vector<1x128xf32>
    %726 = vector.broadcast %680 : i32 to vector<1x128xi32>
    %727 = arith.cmpi sge, %14, %726 : vector<1x128xi32>
    %c4_i32_179 = arith.constant 4 : i32
    %728 = arith.addi %680, %c4_i32_179 : i32
    %729 = vector.broadcast %728 : i32 to vector<1x128xi32>
    %730 = arith.cmpi slt, %14, %729 : vector<1x128xi32>
    %731 = arith.andi %727, %730 : vector<1x128xi1>
    %cst_180 = arith.constant 0.000000e+00 : f32
    %732 = vector.broadcast %cst_180 : f32 to vector<1x128xf32>
    %733 = arith.select %731, %725, %732 : vector<1x128xi1>, vector<1x128xf32>
    %cst_181 = arith.constant dense<0.000000e+00> : vector<1xf32>
    %734 = vector.multi_reduction <add>, %733, %cst_181 [1] : vector<1x128xf32> to vector<1xf32>
    %735 = vector.shape_cast %734 : vector<1xf32> to vector<1x1xf32>
    %736 = arith.addf %656, %735 : vector<1x1xf32>
    %c9 = arith.constant 9 : index
    %737 = memref.load %arg0[%c9] : memref<64xi32, #tpu.memory_space<smem>>
    %c25 = arith.constant 25 : index
    %738 = memref.load %arg0[%c25] : memref<64xi32, #tpu.memory_space<smem>>
    %739 = arith.index_cast %737 : i32 to index
    %c0_182 = arith.constant 0 : index
    %740 = vector.load %arg6[%739, %c0_182] : memref<512x128xf32, #tpu.memory_space<vmem>>, vector<1x128xf32>
    %c48_i32_183 = arith.constant 48 : i32
    %741 = arith.addi %c48_i32_183, %738 : i32
    %742 = vector.broadcast %741 : i32 to vector<1x128xi32>
    %743 = arith.cmpi eq, %14, %742 : vector<1x128xi32>
    %cst_184 = arith.constant 0.000000e+00 : f32
    %744 = vector.broadcast %cst_184 : f32 to vector<1x128xf32>
    %745 = arith.select %743, %740, %744 : vector<1x128xi1>, vector<1x128xf32>
    %cst_185 = arith.constant dense<0.000000e+00> : vector<1xf32>
    %746 = vector.multi_reduction <add>, %745, %cst_185 [1] : vector<1x128xf32> to vector<1xf32>
    %747 = vector.shape_cast %746 : vector<1xf32> to vector<1x1xf32>
    %cst_186 = arith.constant 0.000000e+00 : f32
    %748 = vector.broadcast %cst_186 : f32 to vector<1x1xf32>
    %749 = arith.maximumf %747, %748 : vector<1x1xf32>
    %750 = arith.subf %749, %747 : vector<1x1xf32>
    %751 = math.absf %747 : vector<1x1xf32>
    %cst_187 = arith.constant 0.000000e+00 : f32
    %752 = vector.broadcast %cst_187 : f32 to vector<1x1xf32>
    %753 = arith.subf %752, %751 : vector<1x1xf32>
    %754 = math.exp %753 : vector<1x1xf32>
    %cst_188 = arith.constant 1.000000e+00 : f32
    %755 = vector.broadcast %cst_188 : f32 to vector<1x1xf32>
    %756 = arith.addf %755, %754 : vector<1x1xf32>
    %757 = math.log %756 : vector<1x1xf32>
    %758 = arith.addf %750, %757 : vector<1x1xf32>
    %759 = arith.addf %679, %758 : vector<1x1xf32>
    %c4_i32_189 = arith.constant 4 : i32
    %760 = arith.muli %738, %c4_i32_189 : i32
    %c9_190 = arith.constant 9 : index
    %c0_191 = arith.constant 0 : index
    %761 = vector.load %arg5[%c9_190, %c0_191] : memref<16x4xf32, #tpu.memory_space<vmem>>, vector<1x4xf32>
    %762 = vector.extract_strided_slice %761 {offsets = [0, 0], sizes = [1, 1], strides = [1, 1]} : vector<1x4xf32> to vector<1x1xf32>
    %763 = vector.broadcast %760 : i32 to vector<1x128xi32>
    %764 = arith.cmpi eq, %14, %763 : vector<1x128xi32>
    %765 = arith.extui %764 : vector<1x128xi1> to vector<1x128xi32>
    %766 = arith.sitofp %765 : vector<1x128xi32> to vector<1x128xf32>
    %767 = vector.broadcast %762 : vector<1x1xf32> to vector<1x128xf32>
    %768 = arith.mulf %767, %766 : vector<1x128xf32>
    %769 = vector.extract_strided_slice %761 {offsets = [0, 1], sizes = [1, 1], strides = [1, 1]} : vector<1x4xf32> to vector<1x1xf32>
    %c1_i32_192 = arith.constant 1 : i32
    %770 = arith.addi %760, %c1_i32_192 : i32
    %771 = vector.broadcast %770 : i32 to vector<1x128xi32>
    %772 = arith.cmpi eq, %14, %771 : vector<1x128xi32>
    %773 = arith.extui %772 : vector<1x128xi1> to vector<1x128xi32>
    %774 = arith.sitofp %773 : vector<1x128xi32> to vector<1x128xf32>
    %775 = vector.broadcast %769 : vector<1x1xf32> to vector<1x128xf32>
    %776 = arith.mulf %775, %774 : vector<1x128xf32>
    %777 = arith.addf %768, %776 : vector<1x128xf32>
    %778 = vector.extract_strided_slice %761 {offsets = [0, 2], sizes = [1, 1], strides = [1, 1]} : vector<1x4xf32> to vector<1x1xf32>
    %c2_i32_193 = arith.constant 2 : i32
    %779 = arith.addi %760, %c2_i32_193 : i32
    %780 = vector.broadcast %779 : i32 to vector<1x128xi32>
    %781 = arith.cmpi eq, %14, %780 : vector<1x128xi32>
    %782 = arith.extui %781 : vector<1x128xi1> to vector<1x128xi32>
    %783 = arith.sitofp %782 : vector<1x128xi32> to vector<1x128xf32>
    %784 = vector.broadcast %778 : vector<1x1xf32> to vector<1x128xf32>
    %785 = arith.mulf %784, %783 : vector<1x128xf32>
    %786 = arith.addf %777, %785 : vector<1x128xf32>
    %787 = vector.extract_strided_slice %761 {offsets = [0, 3], sizes = [1, 1], strides = [1, 1]} : vector<1x4xf32> to vector<1x1xf32>
    %c3_i32_194 = arith.constant 3 : i32
    %788 = arith.addi %760, %c3_i32_194 : i32
    %789 = vector.broadcast %788 : i32 to vector<1x128xi32>
    %790 = arith.cmpi eq, %14, %789 : vector<1x128xi32>
    %791 = arith.extui %790 : vector<1x128xi1> to vector<1x128xi32>
    %792 = arith.sitofp %791 : vector<1x128xi32> to vector<1x128xf32>
    %793 = vector.broadcast %787 : vector<1x1xf32> to vector<1x128xf32>
    %794 = arith.mulf %793, %792 : vector<1x128xf32>
    %795 = arith.addf %786, %794 : vector<1x128xf32>
    %796 = arith.subf %740, %795 : vector<1x128xf32>
    %797 = math.absf %796 : vector<1x128xf32>
    %cst_195 = arith.constant 1.000000e+00 : f32
    %798 = vector.broadcast %cst_195 : f32 to vector<1x128xf32>
    %799 = arith.cmpf olt, %797, %798 : vector<1x128xf32>
    %cst_196 = arith.constant 5.000000e-01 : f32
    %800 = vector.broadcast %cst_196 : f32 to vector<1x128xf32>
    %801 = arith.mulf %800, %796 : vector<1x128xf32>
    %802 = arith.mulf %801, %796 : vector<1x128xf32>
    %cst_197 = arith.constant 5.000000e-01 : f32
    %803 = vector.broadcast %cst_197 : f32 to vector<1x128xf32>
    %804 = arith.subf %797, %803 : vector<1x128xf32>
    %805 = arith.select %799, %802, %804 : vector<1x128xi1>, vector<1x128xf32>
    %806 = vector.broadcast %760 : i32 to vector<1x128xi32>
    %807 = arith.cmpi sge, %14, %806 : vector<1x128xi32>
    %c4_i32_198 = arith.constant 4 : i32
    %808 = arith.addi %760, %c4_i32_198 : i32
    %809 = vector.broadcast %808 : i32 to vector<1x128xi32>
    %810 = arith.cmpi slt, %14, %809 : vector<1x128xi32>
    %811 = arith.andi %807, %810 : vector<1x128xi1>
    %cst_199 = arith.constant 0.000000e+00 : f32
    %812 = vector.broadcast %cst_199 : f32 to vector<1x128xf32>
    %813 = arith.select %811, %805, %812 : vector<1x128xi1>, vector<1x128xf32>
    %cst_200 = arith.constant dense<0.000000e+00> : vector<1xf32>
    %814 = vector.multi_reduction <add>, %813, %cst_200 [1] : vector<1x128xf32> to vector<1xf32>
    %815 = vector.shape_cast %814 : vector<1xf32> to vector<1x1xf32>
    %816 = arith.addf %736, %815 : vector<1x1xf32>
    %c10 = arith.constant 10 : index
    %817 = memref.load %arg0[%c10] : memref<64xi32, #tpu.memory_space<smem>>
    %c26 = arith.constant 26 : index
    %818 = memref.load %arg0[%c26] : memref<64xi32, #tpu.memory_space<smem>>
    %819 = arith.index_cast %817 : i32 to index
    %c0_201 = arith.constant 0 : index
    %820 = vector.load %arg6[%819, %c0_201] : memref<512x128xf32, #tpu.memory_space<vmem>>, vector<1x128xf32>
    %c48_i32_202 = arith.constant 48 : i32
    %821 = arith.addi %c48_i32_202, %818 : i32
    %822 = vector.broadcast %821 : i32 to vector<1x128xi32>
    %823 = arith.cmpi eq, %14, %822 : vector<1x128xi32>
    %cst_203 = arith.constant 0.000000e+00 : f32
    %824 = vector.broadcast %cst_203 : f32 to vector<1x128xf32>
    %825 = arith.select %823, %820, %824 : vector<1x128xi1>, vector<1x128xf32>
    %cst_204 = arith.constant dense<0.000000e+00> : vector<1xf32>
    %826 = vector.multi_reduction <add>, %825, %cst_204 [1] : vector<1x128xf32> to vector<1xf32>
    %827 = vector.shape_cast %826 : vector<1xf32> to vector<1x1xf32>
    %cst_205 = arith.constant 0.000000e+00 : f32
    %828 = vector.broadcast %cst_205 : f32 to vector<1x1xf32>
    %829 = arith.maximumf %827, %828 : vector<1x1xf32>
    %830 = arith.subf %829, %827 : vector<1x1xf32>
    %831 = math.absf %827 : vector<1x1xf32>
    %cst_206 = arith.constant 0.000000e+00 : f32
    %832 = vector.broadcast %cst_206 : f32 to vector<1x1xf32>
    %833 = arith.subf %832, %831 : vector<1x1xf32>
    %834 = math.exp %833 : vector<1x1xf32>
    %cst_207 = arith.constant 1.000000e+00 : f32
    %835 = vector.broadcast %cst_207 : f32 to vector<1x1xf32>
    %836 = arith.addf %835, %834 : vector<1x1xf32>
    %837 = math.log %836 : vector<1x1xf32>
    %838 = arith.addf %830, %837 : vector<1x1xf32>
    %839 = arith.addf %759, %838 : vector<1x1xf32>
    %c4_i32_208 = arith.constant 4 : i32
    %840 = arith.muli %818, %c4_i32_208 : i32
    %c10_209 = arith.constant 10 : index
    %c0_210 = arith.constant 0 : index
    %841 = vector.load %arg5[%c10_209, %c0_210] : memref<16x4xf32, #tpu.memory_space<vmem>>, vector<1x4xf32>
    %842 = vector.extract_strided_slice %841 {offsets = [0, 0], sizes = [1, 1], strides = [1, 1]} : vector<1x4xf32> to vector<1x1xf32>
    %843 = vector.broadcast %840 : i32 to vector<1x128xi32>
    %844 = arith.cmpi eq, %14, %843 : vector<1x128xi32>
    %845 = arith.extui %844 : vector<1x128xi1> to vector<1x128xi32>
    %846 = arith.sitofp %845 : vector<1x128xi32> to vector<1x128xf32>
    %847 = vector.broadcast %842 : vector<1x1xf32> to vector<1x128xf32>
    %848 = arith.mulf %847, %846 : vector<1x128xf32>
    %849 = vector.extract_strided_slice %841 {offsets = [0, 1], sizes = [1, 1], strides = [1, 1]} : vector<1x4xf32> to vector<1x1xf32>
    %c1_i32_211 = arith.constant 1 : i32
    %850 = arith.addi %840, %c1_i32_211 : i32
    %851 = vector.broadcast %850 : i32 to vector<1x128xi32>
    %852 = arith.cmpi eq, %14, %851 : vector<1x128xi32>
    %853 = arith.extui %852 : vector<1x128xi1> to vector<1x128xi32>
    %854 = arith.sitofp %853 : vector<1x128xi32> to vector<1x128xf32>
    %855 = vector.broadcast %849 : vector<1x1xf32> to vector<1x128xf32>
    %856 = arith.mulf %855, %854 : vector<1x128xf32>
    %857 = arith.addf %848, %856 : vector<1x128xf32>
    %858 = vector.extract_strided_slice %841 {offsets = [0, 2], sizes = [1, 1], strides = [1, 1]} : vector<1x4xf32> to vector<1x1xf32>
    %c2_i32_212 = arith.constant 2 : i32
    %859 = arith.addi %840, %c2_i32_212 : i32
    %860 = vector.broadcast %859 : i32 to vector<1x128xi32>
    %861 = arith.cmpi eq, %14, %860 : vector<1x128xi32>
    %862 = arith.extui %861 : vector<1x128xi1> to vector<1x128xi32>
    %863 = arith.sitofp %862 : vector<1x128xi32> to vector<1x128xf32>
    %864 = vector.broadcast %858 : vector<1x1xf32> to vector<1x128xf32>
    %865 = arith.mulf %864, %863 : vector<1x128xf32>
    %866 = arith.addf %857, %865 : vector<1x128xf32>
    %867 = vector.extract_strided_slice %841 {offsets = [0, 3], sizes = [1, 1], strides = [1, 1]} : vector<1x4xf32> to vector<1x1xf32>
    %c3_i32_213 = arith.constant 3 : i32
    %868 = arith.addi %840, %c3_i32_213 : i32
    %869 = vector.broadcast %868 : i32 to vector<1x128xi32>
    %870 = arith.cmpi eq, %14, %869 : vector<1x128xi32>
    %871 = arith.extui %870 : vector<1x128xi1> to vector<1x128xi32>
    %872 = arith.sitofp %871 : vector<1x128xi32> to vector<1x128xf32>
    %873 = vector.broadcast %867 : vector<1x1xf32> to vector<1x128xf32>
    %874 = arith.mulf %873, %872 : vector<1x128xf32>
    %875 = arith.addf %866, %874 : vector<1x128xf32>
    %876 = arith.subf %820, %875 : vector<1x128xf32>
    %877 = math.absf %876 : vector<1x128xf32>
    %cst_214 = arith.constant 1.000000e+00 : f32
    %878 = vector.broadcast %cst_214 : f32 to vector<1x128xf32>
    %879 = arith.cmpf olt, %877, %878 : vector<1x128xf32>
    %cst_215 = arith.constant 5.000000e-01 : f32
    %880 = vector.broadcast %cst_215 : f32 to vector<1x128xf32>
    %881 = arith.mulf %880, %876 : vector<1x128xf32>
    %882 = arith.mulf %881, %876 : vector<1x128xf32>
    %cst_216 = arith.constant 5.000000e-01 : f32
    %883 = vector.broadcast %cst_216 : f32 to vector<1x128xf32>
    %884 = arith.subf %877, %883 : vector<1x128xf32>
    %885 = arith.select %879, %882, %884 : vector<1x128xi1>, vector<1x128xf32>
    %886 = vector.broadcast %840 : i32 to vector<1x128xi32>
    %887 = arith.cmpi sge, %14, %886 : vector<1x128xi32>
    %c4_i32_217 = arith.constant 4 : i32
    %888 = arith.addi %840, %c4_i32_217 : i32
    %889 = vector.broadcast %888 : i32 to vector<1x128xi32>
    %890 = arith.cmpi slt, %14, %889 : vector<1x128xi32>
    %891 = arith.andi %887, %890 : vector<1x128xi1>
    %cst_218 = arith.constant 0.000000e+00 : f32
    %892 = vector.broadcast %cst_218 : f32 to vector<1x128xf32>
    %893 = arith.select %891, %885, %892 : vector<1x128xi1>, vector<1x128xf32>
    %cst_219 = arith.constant dense<0.000000e+00> : vector<1xf32>
    %894 = vector.multi_reduction <add>, %893, %cst_219 [1] : vector<1x128xf32> to vector<1xf32>
    %895 = vector.shape_cast %894 : vector<1xf32> to vector<1x1xf32>
    %896 = arith.addf %816, %895 : vector<1x1xf32>
    %c11 = arith.constant 11 : index
    %897 = memref.load %arg0[%c11] : memref<64xi32, #tpu.memory_space<smem>>
    %c27 = arith.constant 27 : index
    %898 = memref.load %arg0[%c27] : memref<64xi32, #tpu.memory_space<smem>>
    %899 = arith.index_cast %897 : i32 to index
    %c0_220 = arith.constant 0 : index
    %900 = vector.load %arg6[%899, %c0_220] : memref<512x128xf32, #tpu.memory_space<vmem>>, vector<1x128xf32>
    %c48_i32_221 = arith.constant 48 : i32
    %901 = arith.addi %c48_i32_221, %898 : i32
    %902 = vector.broadcast %901 : i32 to vector<1x128xi32>
    %903 = arith.cmpi eq, %14, %902 : vector<1x128xi32>
    %cst_222 = arith.constant 0.000000e+00 : f32
    %904 = vector.broadcast %cst_222 : f32 to vector<1x128xf32>
    %905 = arith.select %903, %900, %904 : vector<1x128xi1>, vector<1x128xf32>
    %cst_223 = arith.constant dense<0.000000e+00> : vector<1xf32>
    %906 = vector.multi_reduction <add>, %905, %cst_223 [1] : vector<1x128xf32> to vector<1xf32>
    %907 = vector.shape_cast %906 : vector<1xf32> to vector<1x1xf32>
    %cst_224 = arith.constant 0.000000e+00 : f32
    %908 = vector.broadcast %cst_224 : f32 to vector<1x1xf32>
    %909 = arith.maximumf %907, %908 : vector<1x1xf32>
    %910 = arith.subf %909, %907 : vector<1x1xf32>
    %911 = math.absf %907 : vector<1x1xf32>
    %cst_225 = arith.constant 0.000000e+00 : f32
    %912 = vector.broadcast %cst_225 : f32 to vector<1x1xf32>
    %913 = arith.subf %912, %911 : vector<1x1xf32>
    %914 = math.exp %913 : vector<1x1xf32>
    %cst_226 = arith.constant 1.000000e+00 : f32
    %915 = vector.broadcast %cst_226 : f32 to vector<1x1xf32>
    %916 = arith.addf %915, %914 : vector<1x1xf32>
    %917 = math.log %916 : vector<1x1xf32>
    %918 = arith.addf %910, %917 : vector<1x1xf32>
    %919 = arith.addf %839, %918 : vector<1x1xf32>
    %c4_i32_227 = arith.constant 4 : i32
    %920 = arith.muli %898, %c4_i32_227 : i32
    %c11_228 = arith.constant 11 : index
    %c0_229 = arith.constant 0 : index
    %921 = vector.load %arg5[%c11_228, %c0_229] : memref<16x4xf32, #tpu.memory_space<vmem>>, vector<1x4xf32>
    %922 = vector.extract_strided_slice %921 {offsets = [0, 0], sizes = [1, 1], strides = [1, 1]} : vector<1x4xf32> to vector<1x1xf32>
    %923 = vector.broadcast %920 : i32 to vector<1x128xi32>
    %924 = arith.cmpi eq, %14, %923 : vector<1x128xi32>
    %925 = arith.extui %924 : vector<1x128xi1> to vector<1x128xi32>
    %926 = arith.sitofp %925 : vector<1x128xi32> to vector<1x128xf32>
    %927 = vector.broadcast %922 : vector<1x1xf32> to vector<1x128xf32>
    %928 = arith.mulf %927, %926 : vector<1x128xf32>
    %929 = vector.extract_strided_slice %921 {offsets = [0, 1], sizes = [1, 1], strides = [1, 1]} : vector<1x4xf32> to vector<1x1xf32>
    %c1_i32_230 = arith.constant 1 : i32
    %930 = arith.addi %920, %c1_i32_230 : i32
    %931 = vector.broadcast %930 : i32 to vector<1x128xi32>
    %932 = arith.cmpi eq, %14, %931 : vector<1x128xi32>
    %933 = arith.extui %932 : vector<1x128xi1> to vector<1x128xi32>
    %934 = arith.sitofp %933 : vector<1x128xi32> to vector<1x128xf32>
    %935 = vector.broadcast %929 : vector<1x1xf32> to vector<1x128xf32>
    %936 = arith.mulf %935, %934 : vector<1x128xf32>
    %937 = arith.addf %928, %936 : vector<1x128xf32>
    %938 = vector.extract_strided_slice %921 {offsets = [0, 2], sizes = [1, 1], strides = [1, 1]} : vector<1x4xf32> to vector<1x1xf32>
    %c2_i32_231 = arith.constant 2 : i32
    %939 = arith.addi %920, %c2_i32_231 : i32
    %940 = vector.broadcast %939 : i32 to vector<1x128xi32>
    %941 = arith.cmpi eq, %14, %940 : vector<1x128xi32>
    %942 = arith.extui %941 : vector<1x128xi1> to vector<1x128xi32>
    %943 = arith.sitofp %942 : vector<1x128xi32> to vector<1x128xf32>
    %944 = vector.broadcast %938 : vector<1x1xf32> to vector<1x128xf32>
    %945 = arith.mulf %944, %943 : vector<1x128xf32>
    %946 = arith.addf %937, %945 : vector<1x128xf32>
    %947 = vector.extract_strided_slice %921 {offsets = [0, 3], sizes = [1, 1], strides = [1, 1]} : vector<1x4xf32> to vector<1x1xf32>
    %c3_i32_232 = arith.constant 3 : i32
    %948 = arith.addi %920, %c3_i32_232 : i32
    %949 = vector.broadcast %948 : i32 to vector<1x128xi32>
    %950 = arith.cmpi eq, %14, %949 : vector<1x128xi32>
    %951 = arith.extui %950 : vector<1x128xi1> to vector<1x128xi32>
    %952 = arith.sitofp %951 : vector<1x128xi32> to vector<1x128xf32>
    %953 = vector.broadcast %947 : vector<1x1xf32> to vector<1x128xf32>
    %954 = arith.mulf %953, %952 : vector<1x128xf32>
    %955 = arith.addf %946, %954 : vector<1x128xf32>
    %956 = arith.subf %900, %955 : vector<1x128xf32>
    %957 = math.absf %956 : vector<1x128xf32>
    %cst_233 = arith.constant 1.000000e+00 : f32
    %958 = vector.broadcast %cst_233 : f32 to vector<1x128xf32>
    %959 = arith.cmpf olt, %957, %958 : vector<1x128xf32>
    %cst_234 = arith.constant 5.000000e-01 : f32
    %960 = vector.broadcast %cst_234 : f32 to vector<1x128xf32>
    %961 = arith.mulf %960, %956 : vector<1x128xf32>
    %962 = arith.mulf %961, %956 : vector<1x128xf32>
    %cst_235 = arith.constant 5.000000e-01 : f32
    %963 = vector.broadcast %cst_235 : f32 to vector<1x128xf32>
    %964 = arith.subf %957, %963 : vector<1x128xf32>
    %965 = arith.select %959, %962, %964 : vector<1x128xi1>, vector<1x128xf32>
    %966 = vector.broadcast %920 : i32 to vector<1x128xi32>
    %967 = arith.cmpi sge, %14, %966 : vector<1x128xi32>
    %c4_i32_236 = arith.constant 4 : i32
    %968 = arith.addi %920, %c4_i32_236 : i32
    %969 = vector.broadcast %968 : i32 to vector<1x128xi32>
    %970 = arith.cmpi slt, %14, %969 : vector<1x128xi32>
    %971 = arith.andi %967, %970 : vector<1x128xi1>
    %cst_237 = arith.constant 0.000000e+00 : f32
    %972 = vector.broadcast %cst_237 : f32 to vector<1x128xf32>
    %973 = arith.select %971, %965, %972 : vector<1x128xi1>, vector<1x128xf32>
    %cst_238 = arith.constant dense<0.000000e+00> : vector<1xf32>
    %974 = vector.multi_reduction <add>, %973, %cst_238 [1] : vector<1x128xf32> to vector<1xf32>
    %975 = vector.shape_cast %974 : vector<1xf32> to vector<1x1xf32>
    %976 = arith.addf %896, %975 : vector<1x1xf32>
    %c12 = arith.constant 12 : index
    %977 = memref.load %arg0[%c12] : memref<64xi32, #tpu.memory_space<smem>>
    %c28 = arith.constant 28 : index
    %978 = memref.load %arg0[%c28] : memref<64xi32, #tpu.memory_space<smem>>
    %979 = arith.index_cast %977 : i32 to index
    %c0_239 = arith.constant 0 : index
    %980 = vector.load %arg6[%979, %c0_239] : memref<512x128xf32, #tpu.memory_space<vmem>>, vector<1x128xf32>
    %c48_i32_240 = arith.constant 48 : i32
    %981 = arith.addi %c48_i32_240, %978 : i32
    %982 = vector.broadcast %981 : i32 to vector<1x128xi32>
    %983 = arith.cmpi eq, %14, %982 : vector<1x128xi32>
    %cst_241 = arith.constant 0.000000e+00 : f32
    %984 = vector.broadcast %cst_241 : f32 to vector<1x128xf32>
    %985 = arith.select %983, %980, %984 : vector<1x128xi1>, vector<1x128xf32>
    %cst_242 = arith.constant dense<0.000000e+00> : vector<1xf32>
    %986 = vector.multi_reduction <add>, %985, %cst_242 [1] : vector<1x128xf32> to vector<1xf32>
    %987 = vector.shape_cast %986 : vector<1xf32> to vector<1x1xf32>
    %cst_243 = arith.constant 0.000000e+00 : f32
    %988 = vector.broadcast %cst_243 : f32 to vector<1x1xf32>
    %989 = arith.maximumf %987, %988 : vector<1x1xf32>
    %990 = arith.subf %989, %987 : vector<1x1xf32>
    %991 = math.absf %987 : vector<1x1xf32>
    %cst_244 = arith.constant 0.000000e+00 : f32
    %992 = vector.broadcast %cst_244 : f32 to vector<1x1xf32>
    %993 = arith.subf %992, %991 : vector<1x1xf32>
    %994 = math.exp %993 : vector<1x1xf32>
    %cst_245 = arith.constant 1.000000e+00 : f32
    %995 = vector.broadcast %cst_245 : f32 to vector<1x1xf32>
    %996 = arith.addf %995, %994 : vector<1x1xf32>
    %997 = math.log %996 : vector<1x1xf32>
    %998 = arith.addf %990, %997 : vector<1x1xf32>
    %999 = arith.addf %919, %998 : vector<1x1xf32>
    %c4_i32_246 = arith.constant 4 : i32
    %1000 = arith.muli %978, %c4_i32_246 : i32
    %c12_247 = arith.constant 12 : index
    %c0_248 = arith.constant 0 : index
    %1001 = vector.load %arg5[%c12_247, %c0_248] : memref<16x4xf32, #tpu.memory_space<vmem>>, vector<1x4xf32>
    %1002 = vector.extract_strided_slice %1001 {offsets = [0, 0], sizes = [1, 1], strides = [1, 1]} : vector<1x4xf32> to vector<1x1xf32>
    %1003 = vector.broadcast %1000 : i32 to vector<1x128xi32>
    %1004 = arith.cmpi eq, %14, %1003 : vector<1x128xi32>
    %1005 = arith.extui %1004 : vector<1x128xi1> to vector<1x128xi32>
    %1006 = arith.sitofp %1005 : vector<1x128xi32> to vector<1x128xf32>
    %1007 = vector.broadcast %1002 : vector<1x1xf32> to vector<1x128xf32>
    %1008 = arith.mulf %1007, %1006 : vector<1x128xf32>
    %1009 = vector.extract_strided_slice %1001 {offsets = [0, 1], sizes = [1, 1], strides = [1, 1]} : vector<1x4xf32> to vector<1x1xf32>
    %c1_i32_249 = arith.constant 1 : i32
    %1010 = arith.addi %1000, %c1_i32_249 : i32
    %1011 = vector.broadcast %1010 : i32 to vector<1x128xi32>
    %1012 = arith.cmpi eq, %14, %1011 : vector<1x128xi32>
    %1013 = arith.extui %1012 : vector<1x128xi1> to vector<1x128xi32>
    %1014 = arith.sitofp %1013 : vector<1x128xi32> to vector<1x128xf32>
    %1015 = vector.broadcast %1009 : vector<1x1xf32> to vector<1x128xf32>
    %1016 = arith.mulf %1015, %1014 : vector<1x128xf32>
    %1017 = arith.addf %1008, %1016 : vector<1x128xf32>
    %1018 = vector.extract_strided_slice %1001 {offsets = [0, 2], sizes = [1, 1], strides = [1, 1]} : vector<1x4xf32> to vector<1x1xf32>
    %c2_i32_250 = arith.constant 2 : i32
    %1019 = arith.addi %1000, %c2_i32_250 : i32
    %1020 = vector.broadcast %1019 : i32 to vector<1x128xi32>
    %1021 = arith.cmpi eq, %14, %1020 : vector<1x128xi32>
    %1022 = arith.extui %1021 : vector<1x128xi1> to vector<1x128xi32>
    %1023 = arith.sitofp %1022 : vector<1x128xi32> to vector<1x128xf32>
    %1024 = vector.broadcast %1018 : vector<1x1xf32> to vector<1x128xf32>
    %1025 = arith.mulf %1024, %1023 : vector<1x128xf32>
    %1026 = arith.addf %1017, %1025 : vector<1x128xf32>
    %1027 = vector.extract_strided_slice %1001 {offsets = [0, 3], sizes = [1, 1], strides = [1, 1]} : vector<1x4xf32> to vector<1x1xf32>
    %c3_i32_251 = arith.constant 3 : i32
    %1028 = arith.addi %1000, %c3_i32_251 : i32
    %1029 = vector.broadcast %1028 : i32 to vector<1x128xi32>
    %1030 = arith.cmpi eq, %14, %1029 : vector<1x128xi32>
    %1031 = arith.extui %1030 : vector<1x128xi1> to vector<1x128xi32>
    %1032 = arith.sitofp %1031 : vector<1x128xi32> to vector<1x128xf32>
    %1033 = vector.broadcast %1027 : vector<1x1xf32> to vector<1x128xf32>
    %1034 = arith.mulf %1033, %1032 : vector<1x128xf32>
    %1035 = arith.addf %1026, %1034 : vector<1x128xf32>
    %1036 = arith.subf %980, %1035 : vector<1x128xf32>
    %1037 = math.absf %1036 : vector<1x128xf32>
    %cst_252 = arith.constant 1.000000e+00 : f32
    %1038 = vector.broadcast %cst_252 : f32 to vector<1x128xf32>
    %1039 = arith.cmpf olt, %1037, %1038 : vector<1x128xf32>
    %cst_253 = arith.constant 5.000000e-01 : f32
    %1040 = vector.broadcast %cst_253 : f32 to vector<1x128xf32>
    %1041 = arith.mulf %1040, %1036 : vector<1x128xf32>
    %1042 = arith.mulf %1041, %1036 : vector<1x128xf32>
    %cst_254 = arith.constant 5.000000e-01 : f32
    %1043 = vector.broadcast %cst_254 : f32 to vector<1x128xf32>
    %1044 = arith.subf %1037, %1043 : vector<1x128xf32>
    %1045 = arith.select %1039, %1042, %1044 : vector<1x128xi1>, vector<1x128xf32>
    %1046 = vector.broadcast %1000 : i32 to vector<1x128xi32>
    %1047 = arith.cmpi sge, %14, %1046 : vector<1x128xi32>
    %c4_i32_255 = arith.constant 4 : i32
    %1048 = arith.addi %1000, %c4_i32_255 : i32
    %1049 = vector.broadcast %1048 : i32 to vector<1x128xi32>
    %1050 = arith.cmpi slt, %14, %1049 : vector<1x128xi32>
    %1051 = arith.andi %1047, %1050 : vector<1x128xi1>
    %cst_256 = arith.constant 0.000000e+00 : f32
    %1052 = vector.broadcast %cst_256 : f32 to vector<1x128xf32>
    %1053 = arith.select %1051, %1045, %1052 : vector<1x128xi1>, vector<1x128xf32>
    %cst_257 = arith.constant dense<0.000000e+00> : vector<1xf32>
    %1054 = vector.multi_reduction <add>, %1053, %cst_257 [1] : vector<1x128xf32> to vector<1xf32>
    %1055 = vector.shape_cast %1054 : vector<1xf32> to vector<1x1xf32>
    %1056 = arith.addf %976, %1055 : vector<1x1xf32>
    %c13 = arith.constant 13 : index
    %1057 = memref.load %arg0[%c13] : memref<64xi32, #tpu.memory_space<smem>>
    %c29 = arith.constant 29 : index
    %1058 = memref.load %arg0[%c29] : memref<64xi32, #tpu.memory_space<smem>>
    %1059 = arith.index_cast %1057 : i32 to index
    %c0_258 = arith.constant 0 : index
    %1060 = vector.load %arg6[%1059, %c0_258] : memref<512x128xf32, #tpu.memory_space<vmem>>, vector<1x128xf32>
    %c48_i32_259 = arith.constant 48 : i32
    %1061 = arith.addi %c48_i32_259, %1058 : i32
    %1062 = vector.broadcast %1061 : i32 to vector<1x128xi32>
    %1063 = arith.cmpi eq, %14, %1062 : vector<1x128xi32>
    %cst_260 = arith.constant 0.000000e+00 : f32
    %1064 = vector.broadcast %cst_260 : f32 to vector<1x128xf32>
    %1065 = arith.select %1063, %1060, %1064 : vector<1x128xi1>, vector<1x128xf32>
    %cst_261 = arith.constant dense<0.000000e+00> : vector<1xf32>
    %1066 = vector.multi_reduction <add>, %1065, %cst_261 [1] : vector<1x128xf32> to vector<1xf32>
    %1067 = vector.shape_cast %1066 : vector<1xf32> to vector<1x1xf32>
    %cst_262 = arith.constant 0.000000e+00 : f32
    %1068 = vector.broadcast %cst_262 : f32 to vector<1x1xf32>
    %1069 = arith.maximumf %1067, %1068 : vector<1x1xf32>
    %1070 = arith.subf %1069, %1067 : vector<1x1xf32>
    %1071 = math.absf %1067 : vector<1x1xf32>
    %cst_263 = arith.constant 0.000000e+00 : f32
    %1072 = vector.broadcast %cst_263 : f32 to vector<1x1xf32>
    %1073 = arith.subf %1072, %1071 : vector<1x1xf32>
    %1074 = math.exp %1073 : vector<1x1xf32>
    %cst_264 = arith.constant 1.000000e+00 : f32
    %1075 = vector.broadcast %cst_264 : f32 to vector<1x1xf32>
    %1076 = arith.addf %1075, %1074 : vector<1x1xf32>
    %1077 = math.log %1076 : vector<1x1xf32>
    %1078 = arith.addf %1070, %1077 : vector<1x1xf32>
    %1079 = arith.addf %999, %1078 : vector<1x1xf32>
    %c4_i32_265 = arith.constant 4 : i32
    %1080 = arith.muli %1058, %c4_i32_265 : i32
    %c13_266 = arith.constant 13 : index
    %c0_267 = arith.constant 0 : index
    %1081 = vector.load %arg5[%c13_266, %c0_267] : memref<16x4xf32, #tpu.memory_space<vmem>>, vector<1x4xf32>
    %1082 = vector.extract_strided_slice %1081 {offsets = [0, 0], sizes = [1, 1], strides = [1, 1]} : vector<1x4xf32> to vector<1x1xf32>
    %1083 = vector.broadcast %1080 : i32 to vector<1x128xi32>
    %1084 = arith.cmpi eq, %14, %1083 : vector<1x128xi32>
    %1085 = arith.extui %1084 : vector<1x128xi1> to vector<1x128xi32>
    %1086 = arith.sitofp %1085 : vector<1x128xi32> to vector<1x128xf32>
    %1087 = vector.broadcast %1082 : vector<1x1xf32> to vector<1x128xf32>
    %1088 = arith.mulf %1087, %1086 : vector<1x128xf32>
    %1089 = vector.extract_strided_slice %1081 {offsets = [0, 1], sizes = [1, 1], strides = [1, 1]} : vector<1x4xf32> to vector<1x1xf32>
    %c1_i32_268 = arith.constant 1 : i32
    %1090 = arith.addi %1080, %c1_i32_268 : i32
    %1091 = vector.broadcast %1090 : i32 to vector<1x128xi32>
    %1092 = arith.cmpi eq, %14, %1091 : vector<1x128xi32>
    %1093 = arith.extui %1092 : vector<1x128xi1> to vector<1x128xi32>
    %1094 = arith.sitofp %1093 : vector<1x128xi32> to vector<1x128xf32>
    %1095 = vector.broadcast %1089 : vector<1x1xf32> to vector<1x128xf32>
    %1096 = arith.mulf %1095, %1094 : vector<1x128xf32>
    %1097 = arith.addf %1088, %1096 : vector<1x128xf32>
    %1098 = vector.extract_strided_slice %1081 {offsets = [0, 2], sizes = [1, 1], strides = [1, 1]} : vector<1x4xf32> to vector<1x1xf32>
    %c2_i32_269 = arith.constant 2 : i32
    %1099 = arith.addi %1080, %c2_i32_269 : i32
    %1100 = vector.broadcast %1099 : i32 to vector<1x128xi32>
    %1101 = arith.cmpi eq, %14, %1100 : vector<1x128xi32>
    %1102 = arith.extui %1101 : vector<1x128xi1> to vector<1x128xi32>
    %1103 = arith.sitofp %1102 : vector<1x128xi32> to vector<1x128xf32>
    %1104 = vector.broadcast %1098 : vector<1x1xf32> to vector<1x128xf32>
    %1105 = arith.mulf %1104, %1103 : vector<1x128xf32>
    %1106 = arith.addf %1097, %1105 : vector<1x128xf32>
    %1107 = vector.extract_strided_slice %1081 {offsets = [0, 3], sizes = [1, 1], strides = [1, 1]} : vector<1x4xf32> to vector<1x1xf32>
    %c3_i32_270 = arith.constant 3 : i32
    %1108 = arith.addi %1080, %c3_i32_270 : i32
    %1109 = vector.broadcast %1108 : i32 to vector<1x128xi32>
    %1110 = arith.cmpi eq, %14, %1109 : vector<1x128xi32>
    %1111 = arith.extui %1110 : vector<1x128xi1> to vector<1x128xi32>
    %1112 = arith.sitofp %1111 : vector<1x128xi32> to vector<1x128xf32>
    %1113 = vector.broadcast %1107 : vector<1x1xf32> to vector<1x128xf32>
    %1114 = arith.mulf %1113, %1112 : vector<1x128xf32>
    %1115 = arith.addf %1106, %1114 : vector<1x128xf32>
    %1116 = arith.subf %1060, %1115 : vector<1x128xf32>
    %1117 = math.absf %1116 : vector<1x128xf32>
    %cst_271 = arith.constant 1.000000e+00 : f32
    %1118 = vector.broadcast %cst_271 : f32 to vector<1x128xf32>
    %1119 = arith.cmpf olt, %1117, %1118 : vector<1x128xf32>
    %cst_272 = arith.constant 5.000000e-01 : f32
    %1120 = vector.broadcast %cst_272 : f32 to vector<1x128xf32>
    %1121 = arith.mulf %1120, %1116 : vector<1x128xf32>
    %1122 = arith.mulf %1121, %1116 : vector<1x128xf32>
    %cst_273 = arith.constant 5.000000e-01 : f32
    %1123 = vector.broadcast %cst_273 : f32 to vector<1x128xf32>
    %1124 = arith.subf %1117, %1123 : vector<1x128xf32>
    %1125 = arith.select %1119, %1122, %1124 : vector<1x128xi1>, vector<1x128xf32>
    %1126 = vector.broadcast %1080 : i32 to vector<1x128xi32>
    %1127 = arith.cmpi sge, %14, %1126 : vector<1x128xi32>
    %c4_i32_274 = arith.constant 4 : i32
    %1128 = arith.addi %1080, %c4_i32_274 : i32
    %1129 = vector.broadcast %1128 : i32 to vector<1x128xi32>
    %1130 = arith.cmpi slt, %14, %1129 : vector<1x128xi32>
    %1131 = arith.andi %1127, %1130 : vector<1x128xi1>
    %cst_275 = arith.constant 0.000000e+00 : f32
    %1132 = vector.broadcast %cst_275 : f32 to vector<1x128xf32>
    %1133 = arith.select %1131, %1125, %1132 : vector<1x128xi1>, vector<1x128xf32>
    %cst_276 = arith.constant dense<0.000000e+00> : vector<1xf32>
    %1134 = vector.multi_reduction <add>, %1133, %cst_276 [1] : vector<1x128xf32> to vector<1xf32>
    %1135 = vector.shape_cast %1134 : vector<1xf32> to vector<1x1xf32>
    %1136 = arith.addf %1056, %1135 : vector<1x1xf32>
    %c14 = arith.constant 14 : index
    %1137 = memref.load %arg0[%c14] : memref<64xi32, #tpu.memory_space<smem>>
    %c30 = arith.constant 30 : index
    %1138 = memref.load %arg0[%c30] : memref<64xi32, #tpu.memory_space<smem>>
    %1139 = arith.index_cast %1137 : i32 to index
    %c0_277 = arith.constant 0 : index
    %1140 = vector.load %arg6[%1139, %c0_277] : memref<512x128xf32, #tpu.memory_space<vmem>>, vector<1x128xf32>
    %c48_i32_278 = arith.constant 48 : i32
    %1141 = arith.addi %c48_i32_278, %1138 : i32
    %1142 = vector.broadcast %1141 : i32 to vector<1x128xi32>
    %1143 = arith.cmpi eq, %14, %1142 : vector<1x128xi32>
    %cst_279 = arith.constant 0.000000e+00 : f32
    %1144 = vector.broadcast %cst_279 : f32 to vector<1x128xf32>
    %1145 = arith.select %1143, %1140, %1144 : vector<1x128xi1>, vector<1x128xf32>
    %cst_280 = arith.constant dense<0.000000e+00> : vector<1xf32>
    %1146 = vector.multi_reduction <add>, %1145, %cst_280 [1] : vector<1x128xf32> to vector<1xf32>
    %1147 = vector.shape_cast %1146 : vector<1xf32> to vector<1x1xf32>
    %cst_281 = arith.constant 0.000000e+00 : f32
    %1148 = vector.broadcast %cst_281 : f32 to vector<1x1xf32>
    %1149 = arith.maximumf %1147, %1148 : vector<1x1xf32>
    %1150 = arith.subf %1149, %1147 : vector<1x1xf32>
    %1151 = math.absf %1147 : vector<1x1xf32>
    %cst_282 = arith.constant 0.000000e+00 : f32
    %1152 = vector.broadcast %cst_282 : f32 to vector<1x1xf32>
    %1153 = arith.subf %1152, %1151 : vector<1x1xf32>
    %1154 = math.exp %1153 : vector<1x1xf32>
    %cst_283 = arith.constant 1.000000e+00 : f32
    %1155 = vector.broadcast %cst_283 : f32 to vector<1x1xf32>
    %1156 = arith.addf %1155, %1154 : vector<1x1xf32>
    %1157 = math.log %1156 : vector<1x1xf32>
    %1158 = arith.addf %1150, %1157 : vector<1x1xf32>
    %1159 = arith.addf %1079, %1158 : vector<1x1xf32>
    %c4_i32_284 = arith.constant 4 : i32
    %1160 = arith.muli %1138, %c4_i32_284 : i32
    %c14_285 = arith.constant 14 : index
    %c0_286 = arith.constant 0 : index
    %1161 = vector.load %arg5[%c14_285, %c0_286] : memref<16x4xf32, #tpu.memory_space<vmem>>, vector<1x4xf32>
    %1162 = vector.extract_strided_slice %1161 {offsets = [0, 0], sizes = [1, 1], strides = [1, 1]} : vector<1x4xf32> to vector<1x1xf32>
    %1163 = vector.broadcast %1160 : i32 to vector<1x128xi32>
    %1164 = arith.cmpi eq, %14, %1163 : vector<1x128xi32>
    %1165 = arith.extui %1164 : vector<1x128xi1> to vector<1x128xi32>
    %1166 = arith.sitofp %1165 : vector<1x128xi32> to vector<1x128xf32>
    %1167 = vector.broadcast %1162 : vector<1x1xf32> to vector<1x128xf32>
    %1168 = arith.mulf %1167, %1166 : vector<1x128xf32>
    %1169 = vector.extract_strided_slice %1161 {offsets = [0, 1], sizes = [1, 1], strides = [1, 1]} : vector<1x4xf32> to vector<1x1xf32>
    %c1_i32_287 = arith.constant 1 : i32
    %1170 = arith.addi %1160, %c1_i32_287 : i32
    %1171 = vector.broadcast %1170 : i32 to vector<1x128xi32>
    %1172 = arith.cmpi eq, %14, %1171 : vector<1x128xi32>
    %1173 = arith.extui %1172 : vector<1x128xi1> to vector<1x128xi32>
    %1174 = arith.sitofp %1173 : vector<1x128xi32> to vector<1x128xf32>
    %1175 = vector.broadcast %1169 : vector<1x1xf32> to vector<1x128xf32>
    %1176 = arith.mulf %1175, %1174 : vector<1x128xf32>
    %1177 = arith.addf %1168, %1176 : vector<1x128xf32>
    %1178 = vector.extract_strided_slice %1161 {offsets = [0, 2], sizes = [1, 1], strides = [1, 1]} : vector<1x4xf32> to vector<1x1xf32>
    %c2_i32_288 = arith.constant 2 : i32
    %1179 = arith.addi %1160, %c2_i32_288 : i32
    %1180 = vector.broadcast %1179 : i32 to vector<1x128xi32>
    %1181 = arith.cmpi eq, %14, %1180 : vector<1x128xi32>
    %1182 = arith.extui %1181 : vector<1x128xi1> to vector<1x128xi32>
    %1183 = arith.sitofp %1182 : vector<1x128xi32> to vector<1x128xf32>
    %1184 = vector.broadcast %1178 : vector<1x1xf32> to vector<1x128xf32>
    %1185 = arith.mulf %1184, %1183 : vector<1x128xf32>
    %1186 = arith.addf %1177, %1185 : vector<1x128xf32>
    %1187 = vector.extract_strided_slice %1161 {offsets = [0, 3], sizes = [1, 1], strides = [1, 1]} : vector<1x4xf32> to vector<1x1xf32>
    %c3_i32_289 = arith.constant 3 : i32
    %1188 = arith.addi %1160, %c3_i32_289 : i32
    %1189 = vector.broadcast %1188 : i32 to vector<1x128xi32>
    %1190 = arith.cmpi eq, %14, %1189 : vector<1x128xi32>
    %1191 = arith.extui %1190 : vector<1x128xi1> to vector<1x128xi32>
    %1192 = arith.sitofp %1191 : vector<1x128xi32> to vector<1x128xf32>
    %1193 = vector.broadcast %1187 : vector<1x1xf32> to vector<1x128xf32>
    %1194 = arith.mulf %1193, %1192 : vector<1x128xf32>
    %1195 = arith.addf %1186, %1194 : vector<1x128xf32>
    %1196 = arith.subf %1140, %1195 : vector<1x128xf32>
    %1197 = math.absf %1196 : vector<1x128xf32>
    %cst_290 = arith.constant 1.000000e+00 : f32
    %1198 = vector.broadcast %cst_290 : f32 to vector<1x128xf32>
    %1199 = arith.cmpf olt, %1197, %1198 : vector<1x128xf32>
    %cst_291 = arith.constant 5.000000e-01 : f32
    %1200 = vector.broadcast %cst_291 : f32 to vector<1x128xf32>
    %1201 = arith.mulf %1200, %1196 : vector<1x128xf32>
    %1202 = arith.mulf %1201, %1196 : vector<1x128xf32>
    %cst_292 = arith.constant 5.000000e-01 : f32
    %1203 = vector.broadcast %cst_292 : f32 to vector<1x128xf32>
    %1204 = arith.subf %1197, %1203 : vector<1x128xf32>
    %1205 = arith.select %1199, %1202, %1204 : vector<1x128xi1>, vector<1x128xf32>
    %1206 = vector.broadcast %1160 : i32 to vector<1x128xi32>
    %1207 = arith.cmpi sge, %14, %1206 : vector<1x128xi32>
    %c4_i32_293 = arith.constant 4 : i32
    %1208 = arith.addi %1160, %c4_i32_293 : i32
    %1209 = vector.broadcast %1208 : i32 to vector<1x128xi32>
    %1210 = arith.cmpi slt, %14, %1209 : vector<1x128xi32>
    %1211 = arith.andi %1207, %1210 : vector<1x128xi1>
    %cst_294 = arith.constant 0.000000e+00 : f32
    %1212 = vector.broadcast %cst_294 : f32 to vector<1x128xf32>
    %1213 = arith.select %1211, %1205, %1212 : vector<1x128xi1>, vector<1x128xf32>
    %cst_295 = arith.constant dense<0.000000e+00> : vector<1xf32>
    %1214 = vector.multi_reduction <add>, %1213, %cst_295 [1] : vector<1x128xf32> to vector<1xf32>
    %1215 = vector.shape_cast %1214 : vector<1xf32> to vector<1x1xf32>
    %1216 = arith.addf %1136, %1215 : vector<1x1xf32>
    %c15 = arith.constant 15 : index
    %1217 = memref.load %arg0[%c15] : memref<64xi32, #tpu.memory_space<smem>>
    %c31 = arith.constant 31 : index
    %1218 = memref.load %arg0[%c31] : memref<64xi32, #tpu.memory_space<smem>>
    %1219 = arith.index_cast %1217 : i32 to index
    %c0_296 = arith.constant 0 : index
    %1220 = vector.load %arg6[%1219, %c0_296] : memref<512x128xf32, #tpu.memory_space<vmem>>, vector<1x128xf32>
    %c48_i32_297 = arith.constant 48 : i32
    %1221 = arith.addi %c48_i32_297, %1218 : i32
    %1222 = vector.broadcast %1221 : i32 to vector<1x128xi32>
    %1223 = arith.cmpi eq, %14, %1222 : vector<1x128xi32>
    %cst_298 = arith.constant 0.000000e+00 : f32
    %1224 = vector.broadcast %cst_298 : f32 to vector<1x128xf32>
    %1225 = arith.select %1223, %1220, %1224 : vector<1x128xi1>, vector<1x128xf32>
    %cst_299 = arith.constant dense<0.000000e+00> : vector<1xf32>
    %1226 = vector.multi_reduction <add>, %1225, %cst_299 [1] : vector<1x128xf32> to vector<1xf32>
    %1227 = vector.shape_cast %1226 : vector<1xf32> to vector<1x1xf32>
    %cst_300 = arith.constant 0.000000e+00 : f32
    %1228 = vector.broadcast %cst_300 : f32 to vector<1x1xf32>
    %1229 = arith.maximumf %1227, %1228 : vector<1x1xf32>
    %1230 = arith.subf %1229, %1227 : vector<1x1xf32>
    %1231 = math.absf %1227 : vector<1x1xf32>
    %cst_301 = arith.constant 0.000000e+00 : f32
    %1232 = vector.broadcast %cst_301 : f32 to vector<1x1xf32>
    %1233 = arith.subf %1232, %1231 : vector<1x1xf32>
    %1234 = math.exp %1233 : vector<1x1xf32>
    %cst_302 = arith.constant 1.000000e+00 : f32
    %1235 = vector.broadcast %cst_302 : f32 to vector<1x1xf32>
    %1236 = arith.addf %1235, %1234 : vector<1x1xf32>
    %1237 = math.log %1236 : vector<1x1xf32>
    %1238 = arith.addf %1230, %1237 : vector<1x1xf32>
    %1239 = arith.addf %1159, %1238 : vector<1x1xf32>
    %c4_i32_303 = arith.constant 4 : i32
    %1240 = arith.muli %1218, %c4_i32_303 : i32
    %c15_304 = arith.constant 15 : index
    %c0_305 = arith.constant 0 : index
    %1241 = vector.load %arg5[%c15_304, %c0_305] : memref<16x4xf32, #tpu.memory_space<vmem>>, vector<1x4xf32>
    %1242 = vector.extract_strided_slice %1241 {offsets = [0, 0], sizes = [1, 1], strides = [1, 1]} : vector<1x4xf32> to vector<1x1xf32>
    %1243 = vector.broadcast %1240 : i32 to vector<1x128xi32>
    %1244 = arith.cmpi eq, %14, %1243 : vector<1x128xi32>
    %1245 = arith.extui %1244 : vector<1x128xi1> to vector<1x128xi32>
    %1246 = arith.sitofp %1245 : vector<1x128xi32> to vector<1x128xf32>
    %1247 = vector.broadcast %1242 : vector<1x1xf32> to vector<1x128xf32>
    %1248 = arith.mulf %1247, %1246 : vector<1x128xf32>
    %1249 = vector.extract_strided_slice %1241 {offsets = [0, 1], sizes = [1, 1], strides = [1, 1]} : vector<1x4xf32> to vector<1x1xf32>
    %c1_i32_306 = arith.constant 1 : i32
    %1250 = arith.addi %1240, %c1_i32_306 : i32
    %1251 = vector.broadcast %1250 : i32 to vector<1x128xi32>
    %1252 = arith.cmpi eq, %14, %1251 : vector<1x128xi32>
    %1253 = arith.extui %1252 : vector<1x128xi1> to vector<1x128xi32>
    %1254 = arith.sitofp %1253 : vector<1x128xi32> to vector<1x128xf32>
    %1255 = vector.broadcast %1249 : vector<1x1xf32> to vector<1x128xf32>
    %1256 = arith.mulf %1255, %1254 : vector<1x128xf32>
    %1257 = arith.addf %1248, %1256 : vector<1x128xf32>
    %1258 = vector.extract_strided_slice %1241 {offsets = [0, 2], sizes = [1, 1], strides = [1, 1]} : vector<1x4xf32> to vector<1x1xf32>
    %c2_i32_307 = arith.constant 2 : i32
    %1259 = arith.addi %1240, %c2_i32_307 : i32
    %1260 = vector.broadcast %1259 : i32 to vector<1x128xi32>
    %1261 = arith.cmpi eq, %14, %1260 : vector<1x128xi32>
    %1262 = arith.extui %1261 : vector<1x128xi1> to vector<1x128xi32>
    %1263 = arith.sitofp %1262 : vector<1x128xi32> to vector<1x128xf32>
    %1264 = vector.broadcast %1258 : vector<1x1xf32> to vector<1x128xf32>
    %1265 = arith.mulf %1264, %1263 : vector<1x128xf32>
    %1266 = arith.addf %1257, %1265 : vector<1x128xf32>
    %1267 = vector.extract_strided_slice %1241 {offsets = [0, 3], sizes = [1, 1], strides = [1, 1]} : vector<1x4xf32> to vector<1x1xf32>
    %c3_i32_308 = arith.constant 3 : i32
    %1268 = arith.addi %1240, %c3_i32_308 : i32
    %1269 = vector.broadcast %1268 : i32 to vector<1x128xi32>
    %1270 = arith.cmpi eq, %14, %1269 : vector<1x128xi32>
    %1271 = arith.extui %1270 : vector<1x128xi1> to vector<1x128xi32>
    %1272 = arith.sitofp %1271 : vector<1x128xi32> to vector<1x128xf32>
    %1273 = vector.broadcast %1267 : vector<1x1xf32> to vector<1x128xf32>
    %1274 = arith.mulf %1273, %1272 : vector<1x128xf32>
    %1275 = arith.addf %1266, %1274 : vector<1x128xf32>
    %1276 = arith.subf %1220, %1275 : vector<1x128xf32>
    %1277 = math.absf %1276 : vector<1x128xf32>
    %cst_309 = arith.constant 1.000000e+00 : f32
    %1278 = vector.broadcast %cst_309 : f32 to vector<1x128xf32>
    %1279 = arith.cmpf olt, %1277, %1278 : vector<1x128xf32>
    %cst_310 = arith.constant 5.000000e-01 : f32
    %1280 = vector.broadcast %cst_310 : f32 to vector<1x128xf32>
    %1281 = arith.mulf %1280, %1276 : vector<1x128xf32>
    %1282 = arith.mulf %1281, %1276 : vector<1x128xf32>
    %cst_311 = arith.constant 5.000000e-01 : f32
    %1283 = vector.broadcast %cst_311 : f32 to vector<1x128xf32>
    %1284 = arith.subf %1277, %1283 : vector<1x128xf32>
    %1285 = arith.select %1279, %1282, %1284 : vector<1x128xi1>, vector<1x128xf32>
    %1286 = vector.broadcast %1240 : i32 to vector<1x128xi32>
    %1287 = arith.cmpi sge, %14, %1286 : vector<1x128xi32>
    %c4_i32_312 = arith.constant 4 : i32
    %1288 = arith.addi %1240, %c4_i32_312 : i32
    %1289 = vector.broadcast %1288 : i32 to vector<1x128xi32>
    %1290 = arith.cmpi slt, %14, %1289 : vector<1x128xi32>
    %1291 = arith.andi %1287, %1290 : vector<1x128xi1>
    %cst_313 = arith.constant 0.000000e+00 : f32
    %1292 = vector.broadcast %cst_313 : f32 to vector<1x128xf32>
    %1293 = arith.select %1291, %1285, %1292 : vector<1x128xi1>, vector<1x128xf32>
    %cst_314 = arith.constant dense<0.000000e+00> : vector<1xf32>
    %1294 = vector.multi_reduction <add>, %1293, %cst_314 [1] : vector<1x128xf32> to vector<1xf32>
    %1295 = vector.shape_cast %1294 : vector<1xf32> to vector<1x1xf32>
    %1296 = arith.addf %1216, %1295 : vector<1x1xf32>
    %c32 = arith.constant 32 : index
    %1297 = memref.load %arg0[%c32] : memref<64xi32, #tpu.memory_space<smem>>
    %c48 = arith.constant 48 : index
    %1298 = memref.load %arg0[%c48] : memref<64xi32, #tpu.memory_space<smem>>
    %1299 = arith.index_cast %1297 : i32 to index
    %c0_315 = arith.constant 0 : index
    %1300 = vector.load %arg6[%1299, %c0_315] : memref<512x128xf32, #tpu.memory_space<vmem>>, vector<1x128xf32>
    %c48_i32_316 = arith.constant 48 : i32
    %1301 = arith.addi %c48_i32_316, %1298 : i32
    %1302 = vector.broadcast %1301 : i32 to vector<1x128xi32>
    %1303 = arith.cmpi eq, %14, %1302 : vector<1x128xi32>
    %cst_317 = arith.constant 0.000000e+00 : f32
    %1304 = vector.broadcast %cst_317 : f32 to vector<1x128xf32>
    %1305 = arith.select %1303, %1300, %1304 : vector<1x128xi1>, vector<1x128xf32>
    %cst_318 = arith.constant dense<0.000000e+00> : vector<1xf32>
    %1306 = vector.multi_reduction <add>, %1305, %cst_318 [1] : vector<1x128xf32> to vector<1xf32>
    %1307 = vector.shape_cast %1306 : vector<1xf32> to vector<1x1xf32>
    %cst_319 = arith.constant 0.000000e+00 : f32
    %1308 = vector.broadcast %cst_319 : f32 to vector<1x1xf32>
    %1309 = arith.maximumf %1307, %1308 : vector<1x1xf32>
    %1310 = math.absf %1307 : vector<1x1xf32>
    %cst_320 = arith.constant 0.000000e+00 : f32
    %1311 = vector.broadcast %cst_320 : f32 to vector<1x1xf32>
    %1312 = arith.subf %1311, %1310 : vector<1x1xf32>
    %1313 = math.exp %1312 : vector<1x1xf32>
    %cst_321 = arith.constant 1.000000e+00 : f32
    %1314 = vector.broadcast %cst_321 : f32 to vector<1x1xf32>
    %1315 = arith.addf %1314, %1313 : vector<1x1xf32>
    %1316 = math.log %1315 : vector<1x1xf32>
    %1317 = arith.addf %1309, %1316 : vector<1x1xf32>
    %1318 = arith.addf %1239, %1317 : vector<1x1xf32>
    %c33 = arith.constant 33 : index
    %1319 = memref.load %arg0[%c33] : memref<64xi32, #tpu.memory_space<smem>>
    %c49 = arith.constant 49 : index
    %1320 = memref.load %arg0[%c49] : memref<64xi32, #tpu.memory_space<smem>>
    %1321 = arith.index_cast %1319 : i32 to index
    %c0_322 = arith.constant 0 : index
    %1322 = vector.load %arg6[%1321, %c0_322] : memref<512x128xf32, #tpu.memory_space<vmem>>, vector<1x128xf32>
    %c48_i32_323 = arith.constant 48 : i32
    %1323 = arith.addi %c48_i32_323, %1320 : i32
    %1324 = vector.broadcast %1323 : i32 to vector<1x128xi32>
    %1325 = arith.cmpi eq, %14, %1324 : vector<1x128xi32>
    %cst_324 = arith.constant 0.000000e+00 : f32
    %1326 = vector.broadcast %cst_324 : f32 to vector<1x128xf32>
    %1327 = arith.select %1325, %1322, %1326 : vector<1x128xi1>, vector<1x128xf32>
    %cst_325 = arith.constant dense<0.000000e+00> : vector<1xf32>
    %1328 = vector.multi_reduction <add>, %1327, %cst_325 [1] : vector<1x128xf32> to vector<1xf32>
    %1329 = vector.shape_cast %1328 : vector<1xf32> to vector<1x1xf32>
    %cst_326 = arith.constant 0.000000e+00 : f32
    %1330 = vector.broadcast %cst_326 : f32 to vector<1x1xf32>
    %1331 = arith.maximumf %1329, %1330 : vector<1x1xf32>
    %1332 = math.absf %1329 : vector<1x1xf32>
    %cst_327 = arith.constant 0.000000e+00 : f32
    %1333 = vector.broadcast %cst_327 : f32 to vector<1x1xf32>
    %1334 = arith.subf %1333, %1332 : vector<1x1xf32>
    %1335 = math.exp %1334 : vector<1x1xf32>
    %cst_328 = arith.constant 1.000000e+00 : f32
    %1336 = vector.broadcast %cst_328 : f32 to vector<1x1xf32>
    %1337 = arith.addf %1336, %1335 : vector<1x1xf32>
    %1338 = math.log %1337 : vector<1x1xf32>
    %1339 = arith.addf %1331, %1338 : vector<1x1xf32>
    %1340 = arith.addf %1318, %1339 : vector<1x1xf32>
    %c34 = arith.constant 34 : index
    %1341 = memref.load %arg0[%c34] : memref<64xi32, #tpu.memory_space<smem>>
    %c50 = arith.constant 50 : index
    %1342 = memref.load %arg0[%c50] : memref<64xi32, #tpu.memory_space<smem>>
    %1343 = arith.index_cast %1341 : i32 to index
    %c0_329 = arith.constant 0 : index
    %1344 = vector.load %arg6[%1343, %c0_329] : memref<512x128xf32, #tpu.memory_space<vmem>>, vector<1x128xf32>
    %c48_i32_330 = arith.constant 48 : i32
    %1345 = arith.addi %c48_i32_330, %1342 : i32
    %1346 = vector.broadcast %1345 : i32 to vector<1x128xi32>
    %1347 = arith.cmpi eq, %14, %1346 : vector<1x128xi32>
    %cst_331 = arith.constant 0.000000e+00 : f32
    %1348 = vector.broadcast %cst_331 : f32 to vector<1x128xf32>
    %1349 = arith.select %1347, %1344, %1348 : vector<1x128xi1>, vector<1x128xf32>
    %cst_332 = arith.constant dense<0.000000e+00> : vector<1xf32>
    %1350 = vector.multi_reduction <add>, %1349, %cst_332 [1] : vector<1x128xf32> to vector<1xf32>
    %1351 = vector.shape_cast %1350 : vector<1xf32> to vector<1x1xf32>
    %cst_333 = arith.constant 0.000000e+00 : f32
    %1352 = vector.broadcast %cst_333 : f32 to vector<1x1xf32>
    %1353 = arith.maximumf %1351, %1352 : vector<1x1xf32>
    %1354 = math.absf %1351 : vector<1x1xf32>
    %cst_334 = arith.constant 0.000000e+00 : f32
    %1355 = vector.broadcast %cst_334 : f32 to vector<1x1xf32>
    %1356 = arith.subf %1355, %1354 : vector<1x1xf32>
    %1357 = math.exp %1356 : vector<1x1xf32>
    %cst_335 = arith.constant 1.000000e+00 : f32
    %1358 = vector.broadcast %cst_335 : f32 to vector<1x1xf32>
    %1359 = arith.addf %1358, %1357 : vector<1x1xf32>
    %1360 = math.log %1359 : vector<1x1xf32>
    %1361 = arith.addf %1353, %1360 : vector<1x1xf32>
    %1362 = arith.addf %1340, %1361 : vector<1x1xf32>
    %c35 = arith.constant 35 : index
    %1363 = memref.load %arg0[%c35] : memref<64xi32, #tpu.memory_space<smem>>
    %c51 = arith.constant 51 : index
    %1364 = memref.load %arg0[%c51] : memref<64xi32, #tpu.memory_space<smem>>
    %1365 = arith.index_cast %1363 : i32 to index
    %c0_336 = arith.constant 0 : index
    %1366 = vector.load %arg6[%1365, %c0_336] : memref<512x128xf32, #tpu.memory_space<vmem>>, vector<1x128xf32>
    %c48_i32_337 = arith.constant 48 : i32
    %1367 = arith.addi %c48_i32_337, %1364 : i32
    %1368 = vector.broadcast %1367 : i32 to vector<1x128xi32>
    %1369 = arith.cmpi eq, %14, %1368 : vector<1x128xi32>
    %cst_338 = arith.constant 0.000000e+00 : f32
    %1370 = vector.broadcast %cst_338 : f32 to vector<1x128xf32>
    %1371 = arith.select %1369, %1366, %1370 : vector<1x128xi1>, vector<1x128xf32>
    %cst_339 = arith.constant dense<0.000000e+00> : vector<1xf32>
    %1372 = vector.multi_reduction <add>, %1371, %cst_339 [1] : vector<1x128xf32> to vector<1xf32>
    %1373 = vector.shape_cast %1372 : vector<1xf32> to vector<1x1xf32>
    %cst_340 = arith.constant 0.000000e+00 : f32
    %1374 = vector.broadcast %cst_340 : f32 to vector<1x1xf32>
    %1375 = arith.maximumf %1373, %1374 : vector<1x1xf32>
    %1376 = math.absf %1373 : vector<1x1xf32>
    %cst_341 = arith.constant 0.000000e+00 : f32
    %1377 = vector.broadcast %cst_341 : f32 to vector<1x1xf32>
    %1378 = arith.subf %1377, %1376 : vector<1x1xf32>
    %1379 = math.exp %1378 : vector<1x1xf32>
    %cst_342 = arith.constant 1.000000e+00 : f32
    %1380 = vector.broadcast %cst_342 : f32 to vector<1x1xf32>
    %1381 = arith.addf %1380, %1379 : vector<1x1xf32>
    %1382 = math.log %1381 : vector<1x1xf32>
    %1383 = arith.addf %1375, %1382 : vector<1x1xf32>
    %1384 = arith.addf %1362, %1383 : vector<1x1xf32>
    %c36 = arith.constant 36 : index
    %1385 = memref.load %arg0[%c36] : memref<64xi32, #tpu.memory_space<smem>>
    %c52 = arith.constant 52 : index
    %1386 = memref.load %arg0[%c52] : memref<64xi32, #tpu.memory_space<smem>>
    %1387 = arith.index_cast %1385 : i32 to index
    %c0_343 = arith.constant 0 : index
    %1388 = vector.load %arg6[%1387, %c0_343] : memref<512x128xf32, #tpu.memory_space<vmem>>, vector<1x128xf32>
    %c48_i32_344 = arith.constant 48 : i32
    %1389 = arith.addi %c48_i32_344, %1386 : i32
    %1390 = vector.broadcast %1389 : i32 to vector<1x128xi32>
    %1391 = arith.cmpi eq, %14, %1390 : vector<1x128xi32>
    %cst_345 = arith.constant 0.000000e+00 : f32
    %1392 = vector.broadcast %cst_345 : f32 to vector<1x128xf32>
    %1393 = arith.select %1391, %1388, %1392 : vector<1x128xi1>, vector<1x128xf32>
    %cst_346 = arith.constant dense<0.000000e+00> : vector<1xf32>
    %1394 = vector.multi_reduction <add>, %1393, %cst_346 [1] : vector<1x128xf32> to vector<1xf32>
    %1395 = vector.shape_cast %1394 : vector<1xf32> to vector<1x1xf32>
    %cst_347 = arith.constant 0.000000e+00 : f32
    %1396 = vector.broadcast %cst_347 : f32 to vector<1x1xf32>
    %1397 = arith.maximumf %1395, %1396 : vector<1x1xf32>
    %1398 = math.absf %1395 : vector<1x1xf32>
    %cst_348 = arith.constant 0.000000e+00 : f32
    %1399 = vector.broadcast %cst_348 : f32 to vector<1x1xf32>
    %1400 = arith.subf %1399, %1398 : vector<1x1xf32>
    %1401 = math.exp %1400 : vector<1x1xf32>
    %cst_349 = arith.constant 1.000000e+00 : f32
    %1402 = vector.broadcast %cst_349 : f32 to vector<1x1xf32>
    %1403 = arith.addf %1402, %1401 : vector<1x1xf32>
    %1404 = math.log %1403 : vector<1x1xf32>
    %1405 = arith.addf %1397, %1404 : vector<1x1xf32>
    %1406 = arith.addf %1384, %1405 : vector<1x1xf32>
    %c37 = arith.constant 37 : index
    %1407 = memref.load %arg0[%c37] : memref<64xi32, #tpu.memory_space<smem>>
    %c53 = arith.constant 53 : index
    %1408 = memref.load %arg0[%c53] : memref<64xi32, #tpu.memory_space<smem>>
    %1409 = arith.index_cast %1407 : i32 to index
    %c0_350 = arith.constant 0 : index
    %1410 = vector.load %arg6[%1409, %c0_350] : memref<512x128xf32, #tpu.memory_space<vmem>>, vector<1x128xf32>
    %c48_i32_351 = arith.constant 48 : i32
    %1411 = arith.addi %c48_i32_351, %1408 : i32
    %1412 = vector.broadcast %1411 : i32 to vector<1x128xi32>
    %1413 = arith.cmpi eq, %14, %1412 : vector<1x128xi32>
    %cst_352 = arith.constant 0.000000e+00 : f32
    %1414 = vector.broadcast %cst_352 : f32 to vector<1x128xf32>
    %1415 = arith.select %1413, %1410, %1414 : vector<1x128xi1>, vector<1x128xf32>
    %cst_353 = arith.constant dense<0.000000e+00> : vector<1xf32>
    %1416 = vector.multi_reduction <add>, %1415, %cst_353 [1] : vector<1x128xf32> to vector<1xf32>
    %1417 = vector.shape_cast %1416 : vector<1xf32> to vector<1x1xf32>
    %cst_354 = arith.constant 0.000000e+00 : f32
    %1418 = vector.broadcast %cst_354 : f32 to vector<1x1xf32>
    %1419 = arith.maximumf %1417, %1418 : vector<1x1xf32>
    %1420 = math.absf %1417 : vector<1x1xf32>
    %cst_355 = arith.constant 0.000000e+00 : f32
    %1421 = vector.broadcast %cst_355 : f32 to vector<1x1xf32>
    %1422 = arith.subf %1421, %1420 : vector<1x1xf32>
    %1423 = math.exp %1422 : vector<1x1xf32>
    %cst_356 = arith.constant 1.000000e+00 : f32
    %1424 = vector.broadcast %cst_356 : f32 to vector<1x1xf32>
    %1425 = arith.addf %1424, %1423 : vector<1x1xf32>
    %1426 = math.log %1425 : vector<1x1xf32>
    %1427 = arith.addf %1419, %1426 : vector<1x1xf32>
    %1428 = arith.addf %1406, %1427 : vector<1x1xf32>
    %c38 = arith.constant 38 : index
    %1429 = memref.load %arg0[%c38] : memref<64xi32, #tpu.memory_space<smem>>
    %c54 = arith.constant 54 : index
    %1430 = memref.load %arg0[%c54] : memref<64xi32, #tpu.memory_space<smem>>
    %1431 = arith.index_cast %1429 : i32 to index
    %c0_357 = arith.constant 0 : index
    %1432 = vector.load %arg6[%1431, %c0_357] : memref<512x128xf32, #tpu.memory_space<vmem>>, vector<1x128xf32>
    %c48_i32_358 = arith.constant 48 : i32
    %1433 = arith.addi %c48_i32_358, %1430 : i32
    %1434 = vector.broadcast %1433 : i32 to vector<1x128xi32>
    %1435 = arith.cmpi eq, %14, %1434 : vector<1x128xi32>
    %cst_359 = arith.constant 0.000000e+00 : f32
    %1436 = vector.broadcast %cst_359 : f32 to vector<1x128xf32>
    %1437 = arith.select %1435, %1432, %1436 : vector<1x128xi1>, vector<1x128xf32>
    %cst_360 = arith.constant dense<0.000000e+00> : vector<1xf32>
    %1438 = vector.multi_reduction <add>, %1437, %cst_360 [1] : vector<1x128xf32> to vector<1xf32>
    %1439 = vector.shape_cast %1438 : vector<1xf32> to vector<1x1xf32>
    %cst_361 = arith.constant 0.000000e+00 : f32
    %1440 = vector.broadcast %cst_361 : f32 to vector<1x1xf32>
    %1441 = arith.maximumf %1439, %1440 : vector<1x1xf32>
    %1442 = math.absf %1439 : vector<1x1xf32>
    %cst_362 = arith.constant 0.000000e+00 : f32
    %1443 = vector.broadcast %cst_362 : f32 to vector<1x1xf32>
    %1444 = arith.subf %1443, %1442 : vector<1x1xf32>
    %1445 = math.exp %1444 : vector<1x1xf32>
    %cst_363 = arith.constant 1.000000e+00 : f32
    %1446 = vector.broadcast %cst_363 : f32 to vector<1x1xf32>
    %1447 = arith.addf %1446, %1445 : vector<1x1xf32>
    %1448 = math.log %1447 : vector<1x1xf32>
    %1449 = arith.addf %1441, %1448 : vector<1x1xf32>
    %1450 = arith.addf %1428, %1449 : vector<1x1xf32>
    %c39 = arith.constant 39 : index
    %1451 = memref.load %arg0[%c39] : memref<64xi32, #tpu.memory_space<smem>>
    %c55 = arith.constant 55 : index
    %1452 = memref.load %arg0[%c55] : memref<64xi32, #tpu.memory_space<smem>>
    %1453 = arith.index_cast %1451 : i32 to index
    %c0_364 = arith.constant 0 : index
    %1454 = vector.load %arg6[%1453, %c0_364] : memref<512x128xf32, #tpu.memory_space<vmem>>, vector<1x128xf32>
    %c48_i32_365 = arith.constant 48 : i32
    %1455 = arith.addi %c48_i32_365, %1452 : i32
    %1456 = vector.broadcast %1455 : i32 to vector<1x128xi32>
    %1457 = arith.cmpi eq, %14, %1456 : vector<1x128xi32>
    %cst_366 = arith.constant 0.000000e+00 : f32
    %1458 = vector.broadcast %cst_366 : f32 to vector<1x128xf32>
    %1459 = arith.select %1457, %1454, %1458 : vector<1x128xi1>, vector<1x128xf32>
    %cst_367 = arith.constant dense<0.000000e+00> : vector<1xf32>
    %1460 = vector.multi_reduction <add>, %1459, %cst_367 [1] : vector<1x128xf32> to vector<1xf32>
    %1461 = vector.shape_cast %1460 : vector<1xf32> to vector<1x1xf32>
    %cst_368 = arith.constant 0.000000e+00 : f32
    %1462 = vector.broadcast %cst_368 : f32 to vector<1x1xf32>
    %1463 = arith.maximumf %1461, %1462 : vector<1x1xf32>
    %1464 = math.absf %1461 : vector<1x1xf32>
    %cst_369 = arith.constant 0.000000e+00 : f32
    %1465 = vector.broadcast %cst_369 : f32 to vector<1x1xf32>
    %1466 = arith.subf %1465, %1464 : vector<1x1xf32>
    %1467 = math.exp %1466 : vector<1x1xf32>
    %cst_370 = arith.constant 1.000000e+00 : f32
    %1468 = vector.broadcast %cst_370 : f32 to vector<1x1xf32>
    %1469 = arith.addf %1468, %1467 : vector<1x1xf32>
    %1470 = math.log %1469 : vector<1x1xf32>
    %1471 = arith.addf %1463, %1470 : vector<1x1xf32>
    %1472 = arith.addf %1450, %1471 : vector<1x1xf32>
    %c40 = arith.constant 40 : index
    %1473 = memref.load %arg0[%c40] : memref<64xi32, #tpu.memory_space<smem>>
    %c56 = arith.constant 56 : index
    %1474 = memref.load %arg0[%c56] : memref<64xi32, #tpu.memory_space<smem>>
    %1475 = arith.index_cast %1473 : i32 to index
    %c0_371 = arith.constant 0 : index
    %1476 = vector.load %arg6[%1475, %c0_371] : memref<512x128xf32, #tpu.memory_space<vmem>>, vector<1x128xf32>
    %c48_i32_372 = arith.constant 48 : i32
    %1477 = arith.addi %c48_i32_372, %1474 : i32
    %1478 = vector.broadcast %1477 : i32 to vector<1x128xi32>
    %1479 = arith.cmpi eq, %14, %1478 : vector<1x128xi32>
    %cst_373 = arith.constant 0.000000e+00 : f32
    %1480 = vector.broadcast %cst_373 : f32 to vector<1x128xf32>
    %1481 = arith.select %1479, %1476, %1480 : vector<1x128xi1>, vector<1x128xf32>
    %cst_374 = arith.constant dense<0.000000e+00> : vector<1xf32>
    %1482 = vector.multi_reduction <add>, %1481, %cst_374 [1] : vector<1x128xf32> to vector<1xf32>
    %1483 = vector.shape_cast %1482 : vector<1xf32> to vector<1x1xf32>
    %cst_375 = arith.constant 0.000000e+00 : f32
    %1484 = vector.broadcast %cst_375 : f32 to vector<1x1xf32>
    %1485 = arith.maximumf %1483, %1484 : vector<1x1xf32>
    %1486 = math.absf %1483 : vector<1x1xf32>
    %cst_376 = arith.constant 0.000000e+00 : f32
    %1487 = vector.broadcast %cst_376 : f32 to vector<1x1xf32>
    %1488 = arith.subf %1487, %1486 : vector<1x1xf32>
    %1489 = math.exp %1488 : vector<1x1xf32>
    %cst_377 = arith.constant 1.000000e+00 : f32
    %1490 = vector.broadcast %cst_377 : f32 to vector<1x1xf32>
    %1491 = arith.addf %1490, %1489 : vector<1x1xf32>
    %1492 = math.log %1491 : vector<1x1xf32>
    %1493 = arith.addf %1485, %1492 : vector<1x1xf32>
    %1494 = arith.addf %1472, %1493 : vector<1x1xf32>
    %c41 = arith.constant 41 : index
    %1495 = memref.load %arg0[%c41] : memref<64xi32, #tpu.memory_space<smem>>
    %c57 = arith.constant 57 : index
    %1496 = memref.load %arg0[%c57] : memref<64xi32, #tpu.memory_space<smem>>
    %1497 = arith.index_cast %1495 : i32 to index
    %c0_378 = arith.constant 0 : index
    %1498 = vector.load %arg6[%1497, %c0_378] : memref<512x128xf32, #tpu.memory_space<vmem>>, vector<1x128xf32>
    %c48_i32_379 = arith.constant 48 : i32
    %1499 = arith.addi %c48_i32_379, %1496 : i32
    %1500 = vector.broadcast %1499 : i32 to vector<1x128xi32>
    %1501 = arith.cmpi eq, %14, %1500 : vector<1x128xi32>
    %cst_380 = arith.constant 0.000000e+00 : f32
    %1502 = vector.broadcast %cst_380 : f32 to vector<1x128xf32>
    %1503 = arith.select %1501, %1498, %1502 : vector<1x128xi1>, vector<1x128xf32>
    %cst_381 = arith.constant dense<0.000000e+00> : vector<1xf32>
    %1504 = vector.multi_reduction <add>, %1503, %cst_381 [1] : vector<1x128xf32> to vector<1xf32>
    %1505 = vector.shape_cast %1504 : vector<1xf32> to vector<1x1xf32>
    %cst_382 = arith.constant 0.000000e+00 : f32
    %1506 = vector.broadcast %cst_382 : f32 to vector<1x1xf32>
    %1507 = arith.maximumf %1505, %1506 : vector<1x1xf32>
    %1508 = math.absf %1505 : vector<1x1xf32>
    %cst_383 = arith.constant 0.000000e+00 : f32
    %1509 = vector.broadcast %cst_383 : f32 to vector<1x1xf32>
    %1510 = arith.subf %1509, %1508 : vector<1x1xf32>
    %1511 = math.exp %1510 : vector<1x1xf32>
    %cst_384 = arith.constant 1.000000e+00 : f32
    %1512 = vector.broadcast %cst_384 : f32 to vector<1x1xf32>
    %1513 = arith.addf %1512, %1511 : vector<1x1xf32>
    %1514 = math.log %1513 : vector<1x1xf32>
    %1515 = arith.addf %1507, %1514 : vector<1x1xf32>
    %1516 = arith.addf %1494, %1515 : vector<1x1xf32>
    %c42 = arith.constant 42 : index
    %1517 = memref.load %arg0[%c42] : memref<64xi32, #tpu.memory_space<smem>>
    %c58 = arith.constant 58 : index
    %1518 = memref.load %arg0[%c58] : memref<64xi32, #tpu.memory_space<smem>>
    %1519 = arith.index_cast %1517 : i32 to index
    %c0_385 = arith.constant 0 : index
    %1520 = vector.load %arg6[%1519, %c0_385] : memref<512x128xf32, #tpu.memory_space<vmem>>, vector<1x128xf32>
    %c48_i32_386 = arith.constant 48 : i32
    %1521 = arith.addi %c48_i32_386, %1518 : i32
    %1522 = vector.broadcast %1521 : i32 to vector<1x128xi32>
    %1523 = arith.cmpi eq, %14, %1522 : vector<1x128xi32>
    %cst_387 = arith.constant 0.000000e+00 : f32
    %1524 = vector.broadcast %cst_387 : f32 to vector<1x128xf32>
    %1525 = arith.select %1523, %1520, %1524 : vector<1x128xi1>, vector<1x128xf32>
    %cst_388 = arith.constant dense<0.000000e+00> : vector<1xf32>
    %1526 = vector.multi_reduction <add>, %1525, %cst_388 [1] : vector<1x128xf32> to vector<1xf32>
    %1527 = vector.shape_cast %1526 : vector<1xf32> to vector<1x1xf32>
    %cst_389 = arith.constant 0.000000e+00 : f32
    %1528 = vector.broadcast %cst_389 : f32 to vector<1x1xf32>
    %1529 = arith.maximumf %1527, %1528 : vector<1x1xf32>
    %1530 = math.absf %1527 : vector<1x1xf32>
    %cst_390 = arith.constant 0.000000e+00 : f32
    %1531 = vector.broadcast %cst_390 : f32 to vector<1x1xf32>
    %1532 = arith.subf %1531, %1530 : vector<1x1xf32>
    %1533 = math.exp %1532 : vector<1x1xf32>
    %cst_391 = arith.constant 1.000000e+00 : f32
    %1534 = vector.broadcast %cst_391 : f32 to vector<1x1xf32>
    %1535 = arith.addf %1534, %1533 : vector<1x1xf32>
    %1536 = math.log %1535 : vector<1x1xf32>
    %1537 = arith.addf %1529, %1536 : vector<1x1xf32>
    %1538 = arith.addf %1516, %1537 : vector<1x1xf32>
    %c43 = arith.constant 43 : index
    %1539 = memref.load %arg0[%c43] : memref<64xi32, #tpu.memory_space<smem>>
    %c59 = arith.constant 59 : index
    %1540 = memref.load %arg0[%c59] : memref<64xi32, #tpu.memory_space<smem>>
    %1541 = arith.index_cast %1539 : i32 to index
    %c0_392 = arith.constant 0 : index
    %1542 = vector.load %arg6[%1541, %c0_392] : memref<512x128xf32, #tpu.memory_space<vmem>>, vector<1x128xf32>
    %c48_i32_393 = arith.constant 48 : i32
    %1543 = arith.addi %c48_i32_393, %1540 : i32
    %1544 = vector.broadcast %1543 : i32 to vector<1x128xi32>
    %1545 = arith.cmpi eq, %14, %1544 : vector<1x128xi32>
    %cst_394 = arith.constant 0.000000e+00 : f32
    %1546 = vector.broadcast %cst_394 : f32 to vector<1x128xf32>
    %1547 = arith.select %1545, %1542, %1546 : vector<1x128xi1>, vector<1x128xf32>
    %cst_395 = arith.constant dense<0.000000e+00> : vector<1xf32>
    %1548 = vector.multi_reduction <add>, %1547, %cst_395 [1] : vector<1x128xf32> to vector<1xf32>
    %1549 = vector.shape_cast %1548 : vector<1xf32> to vector<1x1xf32>
    %cst_396 = arith.constant 0.000000e+00 : f32
    %1550 = vector.broadcast %cst_396 : f32 to vector<1x1xf32>
    %1551 = arith.maximumf %1549, %1550 : vector<1x1xf32>
    %1552 = math.absf %1549 : vector<1x1xf32>
    %cst_397 = arith.constant 0.000000e+00 : f32
    %1553 = vector.broadcast %cst_397 : f32 to vector<1x1xf32>
    %1554 = arith.subf %1553, %1552 : vector<1x1xf32>
    %1555 = math.exp %1554 : vector<1x1xf32>
    %cst_398 = arith.constant 1.000000e+00 : f32
    %1556 = vector.broadcast %cst_398 : f32 to vector<1x1xf32>
    %1557 = arith.addf %1556, %1555 : vector<1x1xf32>
    %1558 = math.log %1557 : vector<1x1xf32>
    %1559 = arith.addf %1551, %1558 : vector<1x1xf32>
    %1560 = arith.addf %1538, %1559 : vector<1x1xf32>
    %c44 = arith.constant 44 : index
    %1561 = memref.load %arg0[%c44] : memref<64xi32, #tpu.memory_space<smem>>
    %c60 = arith.constant 60 : index
    %1562 = memref.load %arg0[%c60] : memref<64xi32, #tpu.memory_space<smem>>
    %1563 = arith.index_cast %1561 : i32 to index
    %c0_399 = arith.constant 0 : index
    %1564 = vector.load %arg6[%1563, %c0_399] : memref<512x128xf32, #tpu.memory_space<vmem>>, vector<1x128xf32>
    %c48_i32_400 = arith.constant 48 : i32
    %1565 = arith.addi %c48_i32_400, %1562 : i32
    %1566 = vector.broadcast %1565 : i32 to vector<1x128xi32>
    %1567 = arith.cmpi eq, %14, %1566 : vector<1x128xi32>
    %cst_401 = arith.constant 0.000000e+00 : f32
    %1568 = vector.broadcast %cst_401 : f32 to vector<1x128xf32>
    %1569 = arith.select %1567, %1564, %1568 : vector<1x128xi1>, vector<1x128xf32>
    %cst_402 = arith.constant dense<0.000000e+00> : vector<1xf32>
    %1570 = vector.multi_reduction <add>, %1569, %cst_402 [1] : vector<1x128xf32> to vector<1xf32>
    %1571 = vector.shape_cast %1570 : vector<1xf32> to vector<1x1xf32>
    %cst_403 = arith.constant 0.000000e+00 : f32
    %1572 = vector.broadcast %cst_403 : f32 to vector<1x1xf32>
    %1573 = arith.maximumf %1571, %1572 : vector<1x1xf32>
    %1574 = math.absf %1571 : vector<1x1xf32>
    %cst_404 = arith.constant 0.000000e+00 : f32
    %1575 = vector.broadcast %cst_404 : f32 to vector<1x1xf32>
    %1576 = arith.subf %1575, %1574 : vector<1x1xf32>
    %1577 = math.exp %1576 : vector<1x1xf32>
    %cst_405 = arith.constant 1.000000e+00 : f32
    %1578 = vector.broadcast %cst_405 : f32 to vector<1x1xf32>
    %1579 = arith.addf %1578, %1577 : vector<1x1xf32>
    %1580 = math.log %1579 : vector<1x1xf32>
    %1581 = arith.addf %1573, %1580 : vector<1x1xf32>
    %1582 = arith.addf %1560, %1581 : vector<1x1xf32>
    %c45 = arith.constant 45 : index
    %1583 = memref.load %arg0[%c45] : memref<64xi32, #tpu.memory_space<smem>>
    %c61 = arith.constant 61 : index
    %1584 = memref.load %arg0[%c61] : memref<64xi32, #tpu.memory_space<smem>>
    %1585 = arith.index_cast %1583 : i32 to index
    %c0_406 = arith.constant 0 : index
    %1586 = vector.load %arg6[%1585, %c0_406] : memref<512x128xf32, #tpu.memory_space<vmem>>, vector<1x128xf32>
    %c48_i32_407 = arith.constant 48 : i32
    %1587 = arith.addi %c48_i32_407, %1584 : i32
    %1588 = vector.broadcast %1587 : i32 to vector<1x128xi32>
    %1589 = arith.cmpi eq, %14, %1588 : vector<1x128xi32>
    %cst_408 = arith.constant 0.000000e+00 : f32
    %1590 = vector.broadcast %cst_408 : f32 to vector<1x128xf32>
    %1591 = arith.select %1589, %1586, %1590 : vector<1x128xi1>, vector<1x128xf32>
    %cst_409 = arith.constant dense<0.000000e+00> : vector<1xf32>
    %1592 = vector.multi_reduction <add>, %1591, %cst_409 [1] : vector<1x128xf32> to vector<1xf32>
    %1593 = vector.shape_cast %1592 : vector<1xf32> to vector<1x1xf32>
    %cst_410 = arith.constant 0.000000e+00 : f32
    %1594 = vector.broadcast %cst_410 : f32 to vector<1x1xf32>
    %1595 = arith.maximumf %1593, %1594 : vector<1x1xf32>
    %1596 = math.absf %1593 : vector<1x1xf32>
    %cst_411 = arith.constant 0.000000e+00 : f32
    %1597 = vector.broadcast %cst_411 : f32 to vector<1x1xf32>
    %1598 = arith.subf %1597, %1596 : vector<1x1xf32>
    %1599 = math.exp %1598 : vector<1x1xf32>
    %cst_412 = arith.constant 1.000000e+00 : f32
    %1600 = vector.broadcast %cst_412 : f32 to vector<1x1xf32>
    %1601 = arith.addf %1600, %1599 : vector<1x1xf32>
    %1602 = math.log %1601 : vector<1x1xf32>
    %1603 = arith.addf %1595, %1602 : vector<1x1xf32>
    %1604 = arith.addf %1582, %1603 : vector<1x1xf32>
    %c46 = arith.constant 46 : index
    %1605 = memref.load %arg0[%c46] : memref<64xi32, #tpu.memory_space<smem>>
    %c62 = arith.constant 62 : index
    %1606 = memref.load %arg0[%c62] : memref<64xi32, #tpu.memory_space<smem>>
    %1607 = arith.index_cast %1605 : i32 to index
    %c0_413 = arith.constant 0 : index
    %1608 = vector.load %arg6[%1607, %c0_413] : memref<512x128xf32, #tpu.memory_space<vmem>>, vector<1x128xf32>
    %c48_i32_414 = arith.constant 48 : i32
    %1609 = arith.addi %c48_i32_414, %1606 : i32
    %1610 = vector.broadcast %1609 : i32 to vector<1x128xi32>
    %1611 = arith.cmpi eq, %14, %1610 : vector<1x128xi32>
    %cst_415 = arith.constant 0.000000e+00 : f32
    %1612 = vector.broadcast %cst_415 : f32 to vector<1x128xf32>
    %1613 = arith.select %1611, %1608, %1612 : vector<1x128xi1>, vector<1x128xf32>
    %cst_416 = arith.constant dense<0.000000e+00> : vector<1xf32>
    %1614 = vector.multi_reduction <add>, %1613, %cst_416 [1] : vector<1x128xf32> to vector<1xf32>
    %1615 = vector.shape_cast %1614 : vector<1xf32> to vector<1x1xf32>
    %cst_417 = arith.constant 0.000000e+00 : f32
    %1616 = vector.broadcast %cst_417 : f32 to vector<1x1xf32>
    %1617 = arith.maximumf %1615, %1616 : vector<1x1xf32>
    %1618 = math.absf %1615 : vector<1x1xf32>
    %cst_418 = arith.constant 0.000000e+00 : f32
    %1619 = vector.broadcast %cst_418 : f32 to vector<1x1xf32>
    %1620 = arith.subf %1619, %1618 : vector<1x1xf32>
    %1621 = math.exp %1620 : vector<1x1xf32>
    %cst_419 = arith.constant 1.000000e+00 : f32
    %1622 = vector.broadcast %cst_419 : f32 to vector<1x1xf32>
    %1623 = arith.addf %1622, %1621 : vector<1x1xf32>
    %1624 = math.log %1623 : vector<1x1xf32>
    %1625 = arith.addf %1617, %1624 : vector<1x1xf32>
    %1626 = arith.addf %1604, %1625 : vector<1x1xf32>
    %c47 = arith.constant 47 : index
    %1627 = memref.load %arg0[%c47] : memref<64xi32, #tpu.memory_space<smem>>
    %c63 = arith.constant 63 : index
    %1628 = memref.load %arg0[%c63] : memref<64xi32, #tpu.memory_space<smem>>
    %1629 = arith.index_cast %1627 : i32 to index
    %c0_420 = arith.constant 0 : index
    %1630 = vector.load %arg6[%1629, %c0_420] : memref<512x128xf32, #tpu.memory_space<vmem>>, vector<1x128xf32>
    %c48_i32_421 = arith.constant 48 : i32
    %1631 = arith.addi %c48_i32_421, %1628 : i32
    %1632 = vector.broadcast %1631 : i32 to vector<1x128xi32>
    %1633 = arith.cmpi eq, %14, %1632 : vector<1x128xi32>
    %cst_422 = arith.constant 0.000000e+00 : f32
    %1634 = vector.broadcast %cst_422 : f32 to vector<1x128xf32>
    %1635 = arith.select %1633, %1630, %1634 : vector<1x128xi1>, vector<1x128xf32>
    %cst_423 = arith.constant dense<0.000000e+00> : vector<1xf32>
    %1636 = vector.multi_reduction <add>, %1635, %cst_423 [1] : vector<1x128xf32> to vector<1xf32>
    %1637 = vector.shape_cast %1636 : vector<1xf32> to vector<1x1xf32>
    %cst_424 = arith.constant 0.000000e+00 : f32
    %1638 = vector.broadcast %cst_424 : f32 to vector<1x1xf32>
    %1639 = arith.maximumf %1637, %1638 : vector<1x1xf32>
    %1640 = math.absf %1637 : vector<1x1xf32>
    %cst_425 = arith.constant 0.000000e+00 : f32
    %1641 = vector.broadcast %cst_425 : f32 to vector<1x1xf32>
    %1642 = arith.subf %1641, %1640 : vector<1x1xf32>
    %1643 = math.exp %1642 : vector<1x1xf32>
    %cst_426 = arith.constant 1.000000e+00 : f32
    %1644 = vector.broadcast %cst_426 : f32 to vector<1x1xf32>
    %1645 = arith.addf %1644, %1643 : vector<1x1xf32>
    %1646 = math.log %1645 : vector<1x1xf32>
    %1647 = arith.addf %1639, %1646 : vector<1x1xf32>
    %1648 = arith.addf %1626, %1647 : vector<1x1xf32>
    %cst_427 = arith.constant 6.250000e-02 : f32
    %1649 = vector.broadcast %cst_427 : f32 to vector<1x1xf32>
    %1650 = arith.mulf %1648, %1649 : vector<1x1xf32>
    %cst_428 = arith.constant 1.250000e-01 : f32
    %1651 = vector.broadcast %cst_428 : f32 to vector<1x1xf32>
    %1652 = arith.mulf %1296, %1651 : vector<1x1xf32>
    %1653 = arith.addf %1650, %1652 : vector<1x1xf32>
    %c0_429 = arith.constant 0 : index
    %c0_430 = arith.constant 0 : index
    %1654 = vector.load %arg7[%c0_429, %c0_430] : memref<1x1xf32, #tpu.memory_space<vmem>>, vector<1x1xf32>
    tpu.vector_store %arg7[%c0_429, %c0_430], %1653 {strides = array<i32>} : memref<1x1xf32, #tpu.memory_space<vmem>>, vector<1x1xf32>,
    return
  }
}

</mosaic_0001>

<bundles_post_ra>
// kernel: frcrpn_forward.1
= control target key start
LH: loop header
LB: loop body
LE: loop exit
PB: predicated region body
PF: predicated region fallthrough
CT: control target
= control target key end

     0   :  { %s6309_s0 = inlined_call_operand.vmem [shape: s32[64], index: 0, kind: input, shape index: {}]   ;;  %s6310_s1 = inlined_call_operand.vmem [shape: f32[512,36], index: 1, kind: input, shape index: {}]   ;;  %s6311_s2 = inlined_call_operand.vmem [shape: f32[36,32], index: 2, kind: input, shape index: {}]   ;;  %s6312_s3 = inlined_call_operand.vmem [shape: f32[32,128], index: 3, kind: input, shape index: {}]   ;;  %s6313_s4 = inlined_call_operand.vmem [shape: f32[2,128], index: 4, kind: input, shape index: {}]   ;;  %s6314_s5 = inlined_call_operand.vmem [shape: f32[16,4], index: 5, kind: input, shape index: {}]   ;;  %s6315_s6 = inlined_call_operand.vmem [shape: f32[512,128], index: 6, kind: output, shape index: {0}]   ;;  %s6316_s7 = inlined_call_operand.hbm [shape: f32[1,1], index: 7, kind: output, shape index: {1}]  }
   0x1   :  { %6350 = sst [smem:[#allocation16_spill]] %s6314_s5 }
   0x2   :  { %6351 = sst [smem:[#allocation17_spill]] %s6316_s7 }
   0x3   :  { %13 = vsyncpa [#allocation4], 0 }
   0x4   :  { %14 = vsyncpa [#allocation3], 0  ;;  %s21_s26 = sshll.u32 %s6309_s0, 4  ;;  %s22_s26 = int_to_ptr.vmem [resolvable:$true] %s21_s26 }
   0x5   :  { %s3987_s27 = scalar_lea.vmem %s22_s26, 16  ;;  %p3992_p1 = scmp.lt.s32.totalorder %s22_s26, %s22_s26 }
   0x6   :  { %p3988_p0 = scmp.ne.s32.totalorder %s22_s26, %s3987_s27  ;;  %p3993_p2 = scmp.lt.s32.totalorder %s3987_s27, %s3987_s27 }
   0x8   :  { %p3994_p3 = por %p3993_p2, %p3992_p1 }
   0xa   :  { %p3995_p4 = pnand %p3994_p3, %p3988_p0 }
   0xc   :  { %3998 = shalt.err (!%p3995_p4)
}
   0xd   :  { %s4025_s28 = smov [#allocation2]  }
   0xe   :  { %24 = dma.vmem_to_smem %s22_s26, 16, %s4025_s28, [#allocation4]  }
   0xf   :  { %4021 = dma.done.wait [#allocation4], 16  }
  0x10   :  { %4022 = vsyncadd [#allocation4], 4294967280 }
  0x11   :  { %38 = sfence }
  0x12   :  { %v105_v0 = vld [vmem:[%s6311_s2] sm:$0xff]  ;;  %v106_v1 = vld [vmem:[%s6311_s2 + $0x8] sm:$0xff]  ;;  %v107_v2 = vld [vmem:[%s6311_s2 + $0x10] sm:$0xff]  ;;  %vm114_vm0 = vcmask 293888   ;;  %vm307_vm1 = vcmask 1043456   ;;  %vm768_vm2 = vcmask 261120  }
  0x13   :  { %v3786_v3 = vpack.c.bf16 %v106_v1, %v105_v0  ;;  %v108_v4 = vld [vmem:[%s6311_s2 + $0x18] sm:$0xff]  ;;  %v41_v5 = vld [vmem:[%s6310_s1] sm:$0xff]  ;;  %v42_v8 = vld [vmem:[%s6310_s1 + $0x8] sm:$0xff]  ;;  %s4733_s24 = sld [smem:[#allocation2 + $0x11]]  ;;  %s4749_s28 = sld [smem:[#allocation2 + $0x18]] }
  0x14   :  { %v3790_v6 = vpack.c.bf16 %v108_v4, %v107_v2  ;;  %3586 = vmatprep.mubr.msk.f32.mxu0 %vm114_vm0, %v41_v5  ;;  %v109_v7 = vld [vmem:[%s6311_s2 + $0x20] sm:$0xf]  ;;  %v43_v9 = vld [vmem:[%s6310_s1 + $0x10] sm:$0xff]  ;;  %v44_v10 = vld [vmem:[%s6310_s1 + $0x18] sm:$0xff]  ;;  %s4728_s2 = sld [smem:[#allocation2 + $0x10]]  ;;  %s4751_s29 = sld [smem:[#allocation2 + $0x12]] }
  0x15   :  { %3787 = vmatprep.subr.bf16.mxu0 %v3786_v3  ;;  %v45_v11 = vld [vmem:[%s6310_s1 + $0x20] sm:$0xff]  ;;  %v46_v12 = vld [vmem:[%s6310_s1 + $0x28] sm:$0xff]  ;;  %v47_v13 = vld [vmem:[%s6310_s1 + $0x30] sm:$0xff]  ;;  %s4759_s0 = sld [smem:[#allocation2 + $0x17]]  ;;  %s4772_s14 = sld [smem:[#allocation2 + $0x19]] }
  0x16   :  { %3789 = vmatpush3.bf16.msra.mxu0 %v3786_v3  ;;  %v48_v14 = vld [vmem:[%s6310_s1 + $0x38] sm:$0xff]  ;;  %v49_v15 = vld [vmem:[%s6310_s1 + $0x40] sm:$0xff]  ;;  %v761_v17 = vld [vmem:[%s6312_s3 + $0x8] sm:$0xff]  ;;  %s4822_s10 = sld [smem:[#allocation2 + $0x15]]  ;;  %s4861_s23 = sld [smem:[#allocation2 + $0x14]] }
  0x17   :  { %3791 = vmatprep.subr.bf16.mxu0 %v3790_v6  ;;  %v760_v16 = vld [vmem:[%s6312_s3] sm:$0xff]  ;;  %v50_v19 = vld [vmem:[%s6310_s1 + $0x48] sm:$0xff]  ;;  %v51_v20 = vld [vmem:[%s6310_s1 + $0x50] sm:$0xff] }
  0x18   :  { %v3794_v18 = vpack.c.bf16 %v761_v17, %v760_v16  ;;  %v52_v21 = vld [vmem:[%s6310_s1 + $0x58] sm:$0xff]  ;;  %v53_v22 = vld [vmem:[%s6310_s1 + $0x60] sm:$0xff]  ;;  %v54_v23 = vld [vmem:[%s6310_s1 + $0x68] sm:$0xff]  ;;  %v6319_v16 = vmov 3   ;;  %v6317_v17 = vmov 0  }
  0x19   :  { %v55_v24 = vld [vmem:[%s6310_s1 + $0x70] sm:$0xff]  ;;  %v56_v25 = vld [vmem:[%s6310_s1 + $0x78] sm:$0xff]  ;;  %v57_v26 = vld [vmem:[%s6310_s1 + $0x80] sm:$0xff]  ;;  %3833 = vset.pattern.permute.xlu0 %v6319_v16  ;;  %s4767_s12 = sshll.u32 %s4733_s24, 2  ;;  %s4791_s20 = sshll.u32 %s4749_s28, 2 }
  0x1a   :  { %3793 = vmatpush3.bf16.msra.mxu0 %v3790_v6  ;;  %3795 = vmatprep.subr.bf16.mxu1 %v3794_v18  ;;  %v58_v27 = vld [vmem:[%s6310_s1 + $0x88] sm:$0xff]  ;;  %v59_v28 = vld [vmem:[%s6310_s1 + $0x90] sm:$0xff]  ;;  %v60_v29 = vld [vmem:[%s6310_s1 + $0x98] sm:$0xff]  ;;  %s4757_s9 = sshll.u32 %s4728_s2, 2  ;;  %6352 = sst [smem:[#allocation8_spill]] %s4791_s20 }
  0x1b   :  { %3584 = vmatprep.subr.msk.mxu0 %vm307_vm1, %v109_v7  ;;  %3797 = vmatpush3.bf16.msra.mxu1 %v3794_v18  ;;  %v61_v30 = vld [vmem:[%s6310_s1 + $0xa0] sm:$0xff]  ;;  %v62_v31 = vld [vmem:[%s6310_s1 + $0xa8] sm:$0xff]  ;;  %v63_v32 = vld [vmem:[%s6310_s1 + $0xb0] sm:$0xff]  ;;  %s1447_s13 = sadd.s32 1, %s4757_s9  ;;  %s1458_s19 = sadd.s32 2, %s4757_s9 }
  0x1c   :  { %v64_v33 = vld [vmem:[%s6310_s1 + $0xb8] sm:$0xff]  ;;  %v65_v34 = vld [vmem:[%s6310_s1 + $0xc0] sm:$0xff]  ;;  %v66_v35 = vld [vmem:[%s6310_s1 + $0xc8] sm:$0xff]  ;;  %s4794_s21 = sshll.u32 %s4751_s29, 2  ;;  %s2141_s27 = sadd.s32 3, %s4791_s20 }
  0x1d   :  { %v67_v36 = vld [vmem:[%s6310_s1 + $0xd0] sm:$0xff]  ;;  %v68_v37 = vld [vmem:[%s6310_s1 + $0xd8] sm:$0xff]  ;;  %v69_v38 = vld [vmem:[%s6310_s1 + $0xe0] sm:$0xff]  ;;  %6353 = sst [smem:[#allocation9_spill]] %s4794_s21  ;;  %s1469_s30 = sadd.s32 3, %s4757_s9 }
  0x1e   :  { %3585 = vmatpush3.msk.msra.mxu0 %vm307_vm1, %v109_v7  ;;  %v70_v39 = vld [vmem:[%s6310_s1 + $0xe8] sm:$0xff]  ;;  %v71_v40 = vld [vmem:[%s6310_s1 + $0xf0] sm:$0xff]  ;;  %v72_v41 = vld [vmem:[%s6310_s1 + $0xf8] sm:$0xff]  ;;  %s1615_s8 = sadd.s32 1, %s4794_s21  ;;  %s1626_s22 = sadd.s32 2, %s4794_s21 }
  0x1f   :  { %3587 = vmatmul.mubr.msk.f32.vlgmr.msra.gmra.mrb[0].mxu0 %vm114_vm0, %v42_v8  ;;  %v73_v42 = vld [vmem:[%s6310_s1 + $0x100] sm:$0xff]  ;;  %v74_v43 = vld [vmem:[%s6310_s1 + $0x108] sm:$0xff]  ;;  %v75_v44 = vld [vmem:[%s6310_s1 + $0x110] sm:$0xff]  ;;  %s1553_s26 = sadd.s32 3, %s4767_s12 }
  0x20   :  { %3589 = vmatprep.mubr.msk.f32.mxu0 %vm114_vm0, %v43_v9  ;;  %v76_v45 = vld [vmem:[%s6310_s1 + $0x118] sm:$0xff]  ;;  %v77_v46 = vld [vmem:[%s6310_s1 + $0x120] sm:$0xff]  ;;  %v78_v47 = vld [vmem:[%s6310_s1 + $0x128] sm:$0xff] }
  0x21   :  { %v79_v48 = vld [vmem:[%s6310_s1 + $0x130] sm:$0xff]  ;;  %v80_v49 = vld [vmem:[%s6310_s1 + $0x138] sm:$0xff]  ;;  %v81_v50 = vld [vmem:[%s6310_s1 + $0x140] sm:$0xff] }
  0x22   :  { %v82_v51 = vld [vmem:[%s6310_s1 + $0x148] sm:$0xff]  ;;  %v83_v52 = vld [vmem:[%s6310_s1 + $0x150] sm:$0xff]  ;;  %v84_v53 = vld [vmem:[%s6310_s1 + $0x158] sm:$0xff] }
  0x23   :  { %3590 = vmatmul.mubr.msk.f32.gmra.mrb[2].mxu0 %vm114_vm0, %v44_v10  ;;  %v85_v54 = vld [vmem:[%s6310_s1 + $0x160] sm:$0xff]  ;;  %v762_v55 = vld [vmem:[%s6312_s3 + $0x10] sm:$0xff]  ;;  %v763_v56 = vld [vmem:[%s6312_s3 + $0x18] sm:$0xff]  ;;  %s1531_s3 = sadd.s32 1, %s4767_s12 }
  0x24   :  { %3592 = vmatprep.mubr.msk.f32.mxu0 %vm114_vm0, %v45_v11  ;;  %v3798_v57 = vpack.c.bf16 %v763_v56, %v762_v55  ;;  %v86_v58 = vld [vmem:[%s6310_s1 + $0x168] sm:$0xff]  ;;  %v87_v59 = vld [vmem:[%s6310_s1 + $0x170] sm:$0xff]  ;;  %v88_v60 = vld [vmem:[%s6310_s1 + $0x178] sm:$0xff] }
  0x25   :  { %v89_v61 = vld [vmem:[%s6310_s1 + $0x180] sm:$0xff]  ;;  %v90_v62 = vld [vmem:[%s6310_s1 + $0x188] sm:$0xff]  ;;  %v91_v63 = vld [vmem:[%s6310_s1 + $0x190] sm:$0xff] }
  0x26   :  { %3799 = vmatprep.subr.bf16.mxu1 %v3798_v57  ;;  %v92_v0 = vld [vmem:[%s6310_s1 + $0x198] sm:$0xff]  ;;  %v93_v1 = vld [vmem:[%s6310_s1 + $0x1a0] sm:$0xff]  ;;  %v94_v2 = vld [vmem:[%s6310_s1 + $0x1a8] sm:$0xff] }
  0x27   :  { %3593 = vmatmul.mubr.msk.f32.gmra.mrb[4].mxu0 %vm114_vm0, %v46_v12  ;;  %3801 = vmatpush3.bf16.msra.mxu1 %v3798_v57  ;;  %v95_v3 = vld [vmem:[%s6310_s1 + $0x1b0] sm:$0xff]  ;;  %v96_v4 = vld [vmem:[%s6310_s1 + $0x1b8] sm:$0xff]  ;;  %v97_v5 = vld [vmem:[%s6310_s1 + $0x1c0] sm:$0xff] }
  0x28   :  { %3595 = vmatprep.mubr.msk.f32.mxu0 %vm114_vm0, %v47_v13  ;;  %v98_v6 = vld [vmem:[%s6310_s1 + $0x1c8] sm:$0xff]  ;;  %v99_v7 = vld [vmem:[%s6310_s1 + $0x1d0] sm:$0xff]  ;;  %v100_v8 = vld [vmem:[%s6310_s1 + $0x1d8] sm:$0xff]  ;;  %v6321_v13 = vmov 1  }
  0x29   :  { %v101_v9 = vld [vmem:[%s6310_s1 + $0x1e0] sm:$0xff]  ;;  %v102_v10 = vld [vmem:[%s6310_s1 + $0x1e8] sm:$0xff]  ;;  %v103_v11 = vld [vmem:[%s6310_s1 + $0x1f0] sm:$0xff]  ;;  %3809 = vset.pattern.permute.xlu1 %v6321_v13 }
  0x2a   :  { %v104_v12 = vld [vmem:[%s6310_s1 + $0x1f8] sm:$0xff]  ;;  %v1520_v18 = vld [vmem:[%s6314_s5 + $0x1] sm:$0x1]  ;;  %v1940_v55 = vld [vmem:[%s6314_s5 + $0x6] sm:$0x1]  ;;  %s1542_s1 = sadd.s32 2, %s4767_s12 }
  0x2b   :  { %3596 = vmatmul.mubr.msk.f32.gmra.mrb[6].mxu0 %vm114_vm0, %v48_v14  ;;  %v1436_v14 = vld [vmem:[%s6314_s5] sm:$0x1] }
  0x2c   :  { %3598 = vmatprep.mubr.msk.f32.mxu0 %vm114_vm0, %v49_v15  ;;  %1453 = vperm.xlu1 %3809, %v1436_v14   ;;  %v6323_v15 = vmov 2  }
  0x2f   :  { %3599 = vmatmul.mubr.msk.f32.gmra.mrb[8].mxu0 %vm114_vm0, %v50_v19  ;;  %v4374_v19 = vld [vmem:[%s6314_s5 + $0x8] sm:$0x1] }
  0x30   :  { %3601 = vmatprep.mubr.msk.f32.mxu0 %vm114_vm0, %v51_v20  ;;  %3810 = vset.pattern.permute.xlu1 %v6323_v15  ;;  %v1604_v20 = vld [vmem:[%s6314_s5 + $0x2] sm:$0x1] }
  0x31   :  { %1464 = vperm.xlu1 %3810, %v1436_v14   ;;  %2147 = vperm.xlu0 %3833, %v4374_v19  }
  0x33   :  { %3602 = vmatmul.mubr.msk.f32.gmra.mrb[10].mxu0 %vm114_vm0, %v52_v21  ;;  %v4385_v21 = vld [vmem:[%s6314_s5 + $0x7] sm:$0x1] }
  0x34   :  { %3604 = vmatprep.mubr.msk.f32.mxu0 %vm114_vm0, %v53_v22  ;;  %v4391_v22 = vld [vmem:[%s6314_s5 + $0x9] sm:$0x1] }
  0x35   :  { %3811 = vset.pattern.permute.xlu1 %v6319_v16  ;;  %3834 = vset.pattern.permute.xlu0 %v6321_v13 }
  0x36   :  { %1475 = vperm.xlu1 %3811, %v1436_v14   ;;  %1621 = vperm.xlu0 %3834, %v1604_v20  }
  0x37   :  { %3605 = vmatmul.mubr.msk.f32.gmra.mrb[12].mxu0 %vm114_vm0, %v54_v23  ;;  %v1688_v23 = vld [vmem:[%s6314_s5 + $0x3] sm:$0x1] }
  0x38   :  { %3607 = vmatprep.mubr.msk.f32.mxu0 %vm114_vm0, %v55_v24  ;;  %v1856_v24 = vld [vmem:[%s6314_s5 + $0x5] sm:$0x1] }
  0x3a   :  { %3812 = vset.pattern.permute.xlu1 %v6317_v17  ;;  %2041 = vperm.xlu0 %3834, %v4385_v21  }
  0x3b   :  { %3608 = vmatmul.mubr.msk.f32.gmra.mrb[14].mxu0 %vm114_vm0, %v56_v25  ;;  %1527 = vperm.xlu1 %3812, %v1520_v18   ;;  %v1772_v25 = vld [vmem:[%s6314_s5 + $0x4] sm:$0x1]  ;;  %s1416_s5 = sadd.s32 48, %s4728_s2 }
  0x3c   :  { %3610 = vmatprep.mubr.msk.f32.mxu0 %vm114_vm0, %v57_v26  ;;  %v4412_v26 = vld [vmem:[%s6313_s4] ss:$0 sm:$0xff] }
  0x3e   :  { %2209 = vperm.xlu0 %3834, %v4391_v22  }
  0x3f   :  { %3611 = vmatmul.mubr.msk.f32.gmra.mrb[16].mxu0 %vm114_vm0, %v58_v27  ;;  %3813 = vset.pattern.permute.xlu1 %v6321_v13 }
  0x40   :  { %3613 = vmatprep.mubr.msk.f32.mxu0 %vm114_vm0, %v59_v28  ;;  %1537 = vperm.xlu1 %3813, %v1520_v18  }
  0x42   :  { %3836 = vset.pattern.permute.xlu0 %v6323_v15 }
  0x43   :  { %3614 = vmatmul.mubr.msk.f32.gmra.mrb[18].mxu0 %vm114_vm0, %v60_v29  ;;  %1632 = vperm.xlu0 %3836, %v1604_v20  }
  0x44   :  { %3616 = vmatprep.mubr.msk.f32.mxu0 %vm114_vm0, %v61_v30  ;;  %3814 = vset.pattern.permute.xlu1 %v6323_v15 }
  0x45   :  { %1548 = vperm.xlu1 %3814, %v1520_v18  }
  0x47   :  { %3617 = vmatmul.mubr.msk.f32.gmra.mrb[20].mxu0 %vm114_vm0, %v62_v31  ;;  %1884 = vperm.xlu0 %3836, %v1856_v24  }
  0x48   :  { %3619 = vmatprep.mubr.msk.f32.mxu0 %vm114_vm0, %v63_v32 }
  0x49   :  { %3815 = vset.pattern.permute.xlu1 %v6319_v16 }
  0x4a   :  { %1559 = vperm.xlu1 %3815, %v1520_v18  }
  0x4b   :  { %3620 = vmatmul.mubr.msk.f32.gmra.mrb[22].mxu0 %vm114_vm0, %v64_v33  ;;  %2220 = vperm.xlu0 %3836, %v4391_v22  }
  0x4c   :  { %3622 = vmatprep.mubr.msk.f32.mxu0 %vm114_vm0, %v65_v34 }
  0x4e   :  { %1643 = vperm.xlu1 %3815, %v1604_v20  }
  0x4f   :  { %3623 = vmatmul.mubr.msk.f32.gmra.mrb[24].mxu0 %vm114_vm0, %v66_v35  ;;  %3837 = vset.pattern.permute.xlu0 %v6317_v17 }
  0x50   :  { %3625 = vmatprep.mubr.msk.f32.mxu0 %vm114_vm0, %v67_v36  ;;  %1443 = vperm.xlu0 %3837, %v1436_v14  }
  0x52   :  { %3816 = vset.pattern.permute.xlu1 %v6321_v13 }
  0x53   :  { %3626 = vmatmul.mubr.msk.f32.gmra.mrb[26].mxu0 %vm114_vm0, %v68_v37  ;;  %1705 = vperm.xlu1 %3816, %v1688_v23  }
  0x54   :  { %3628 = vmatprep.mubr.msk.f32.mxu0 %vm114_vm0, %v69_v38  ;;  %1611 = vperm.xlu0 %3837, %v1604_v20  }
  0x57   :  { %3629 = vmatmul.mubr.msk.f32.gmra.mrb[28].mxu0 %vm114_vm0, %v70_v39  ;;  %3817 = vset.pattern.permute.xlu1 %v6323_v15 }
  0x58   :  { %3631 = vmatprep.mubr.msk.f32.mxu0 %vm114_vm0, %v71_v40  ;;  %1716 = vperm.xlu1 %3817, %v1688_v23  }
  0x59   :  { %1695 = vperm.xlu0 %3837, %v1688_v23  }
  0x5b   :  { %3632 = vmatmul.mubr.msk.f32.gmra.mrb[30].mxu0 %vm114_vm0, %v72_v41 }
  0x5c   :  { %3634 = vmatprep.mubr.msk.f32.mxu0 %vm114_vm0, %v73_v42  ;;  %3818 = vset.pattern.permute.xlu1 %v6319_v16 }
  0x5d   :  { %1727 = vperm.xlu1 %3818, %v1688_v23   ;;  %1779 = vperm.xlu0 %3837, %v1772_v25  }
  0x5f   :  { %3635 = vmatmul.mubr.msk.f32.gmra.mrb[32].mxu0 %vm114_vm0, %v74_v43 }
  0x60   :  { %3637 = vmatprep.mubr.msk.f32.mxu0 %vm114_vm0, %v75_v44 }
  0x61   :  { %3819 = vset.pattern.permute.xlu1 %v6321_v13  ;;  %1863 = vperm.xlu0 %3837, %v1856_v24  }
  0x62   :  { %1789 = vperm.xlu1 %3819, %v1772_v25  }
  0x63   :  { %3638 = vmatmul.mubr.msk.f32.gmra.mrb[34].mxu0 %vm114_vm0, %v76_v45 }
  0x64   :  { %3640 = vmatprep.mubr.msk.f32.mxu0 %vm114_vm0, %v77_v46 }
  0x65   :  { %1947 = vperm.xlu0 %3837, %v1940_v55  }
  0x66   :  { %3820 = vset.pattern.permute.xlu1 %v6323_v15 }
  0x67   :  { %3641 = vmatmul.mubr.msk.f32.gmra.mrb[36].mxu0 %vm114_vm0, %v78_v47  ;;  %1800 = vperm.xlu1 %3820, %v1772_v25  }
  0x68   :  { %3643 = vmatprep.mubr.msk.f32.mxu0 %vm114_vm0, %v79_v48 }
  0x6b   :  { %3644 = vmatmul.mubr.msk.f32.gmra.mrb[38].mxu0 %vm114_vm0, %v80_v49  ;;  %3821 = vset.pattern.permute.xlu1 %v6319_v16 }
  0x6c   :  { %3646 = vmatprep.mubr.msk.f32.mxu0 %vm114_vm0, %v81_v50  ;;  %1811 = vperm.xlu1 %3821, %v1772_v25  }
  0x6f   :  { %3647 = vmatmul.mubr.msk.f32.gmra.mrb[40].mxu0 %vm114_vm0, %v82_v51 }
  0x70   :  { %3649 = vmatprep.mubr.msk.f32.mxu0 %vm114_vm0, %v83_v52  ;;  %3822 = vset.pattern.permute.xlu1 %v6321_v13 }
  0x71   :  { %1873 = vperm.xlu1 %3822, %v1856_v24  }
  0x73   :  { %3650 = vmatmul.mubr.msk.f32.gmra.mrb[42].mxu0 %vm114_vm0, %v84_v53 }
  0x74   :  { %3652 = vmatprep.mubr.msk.f32.mxu0 %vm114_vm0, %v85_v54 }
  0x75   :  { %3823 = vset.pattern.permute.xlu1 %v6319_v16 }
  0x76   :  { %1895 = vperm.xlu1 %3823, %v1856_v24  }
  0x77   :  { %3653 = vmatmul.mubr.msk.f32.gmra.mrb[44].mxu0 %vm114_vm0, %v86_v58 }
  0x78   :  { %3655 = vmatprep.mubr.msk.f32.mxu0 %vm114_vm0, %v87_v59 }
  0x7a   :  { %3824 = vset.pattern.permute.xlu1 %v6321_v13 }
  0x7b   :  { %3656 = vmatmul.mubr.msk.f32.gmra.mrb[46].mxu0 %vm114_vm0, %v88_v60  ;;  %1957 = vperm.xlu1 %3824, %v1940_v55  }
  0x7c   :  { %3658 = vmatprep.mubr.msk.f32.mxu0 %vm114_vm0, %v89_v61 }
  0x7f   :  { %3659 = vmatmul.mubr.msk.f32.gmra.mrb[48].mxu0 %vm114_vm0, %v90_v62  ;;  %3825 = vset.pattern.permute.xlu1 %v6323_v15 }
  0x80   :  { %3661 = vmatprep.mubr.msk.f32.mxu0 %vm114_vm0, %v91_v63  ;;  %1968 = vperm.xlu1 %3825, %v1940_v55  }
  0x83   :  { %3662 = vmatmul.mubr.msk.f32.gmra.mrb[50].mxu0 %vm114_vm0, %v92_v0 }
  0x84   :  { %3664 = vmatprep.mubr.msk.f32.mxu0 %vm114_vm0, %v93_v1  ;;  %3826 = vset.pattern.permute.xlu1 %v6319_v16 }
  0x85   :  { %1979 = vperm.xlu1 %3826, %v1940_v55  }
  0x87   :  { %3665 = vmatmul.mubr.msk.f32.gmra.mrb[52].mxu0 %vm114_vm0, %v94_v2 }
  0x88   :  { %3667 = vmatprep.mubr.msk.f32.mxu0 %vm114_vm0, %v95_v3 }
  0x89   :  { %3827 = vset.pattern.permute.xlu1 %v6317_v17 }
  0x8a   :  { %2031 = vperm.xlu1 %3827, %v4385_v21  }
  0x8b   :  { %3668 = vmatmul.mubr.msk.f32.gmra.mrb[54].mxu0 %vm114_vm0, %v96_v4 }
  0x8c   :  { %3670 = vmatprep.mubr.msk.f32.mxu0 %vm114_vm0, %v97_v5 }
  0x8e   :  { %3828 = vset.pattern.permute.xlu1 %v6323_v15 }
  0x8f   :  { %3671 = vmatmul.mubr.msk.f32.gmra.mrb[56].mxu0 %vm114_vm0, %v98_v6  ;;  %2052 = vperm.xlu1 %3828, %v4385_v21  }
  0x90   :  { %3673 = vmatprep.mubr.msk.f32.mxu0 %vm114_vm0, %v99_v7 }
  0x93   :  { %3674 = vmatmul.mubr.msk.f32.gmra.mrb[58].mxu0 %vm114_vm0, %v100_v8  ;;  %3829 = vset.pattern.permute.xlu1 %v6319_v16 }
  0x94   :  { %3676 = vmatprep.mubr.msk.f32.mxu0 %vm114_vm0, %v101_v9  ;;  %2063 = vperm.xlu1 %3829, %v4385_v21  }
  0x97   :  { %3677 = vmatmul.mubr.msk.f32.gmra.mrb[60].mxu0 %vm114_vm0, %v102_v10 }
  0x98   :  { %3679 = vmatprep.mubr.msk.f32.mxu0 %vm114_vm0, %v103_v11  ;;  %3830 = vset.pattern.permute.xlu1 %v6317_v17 }
  0x99   :  { %2115 = vperm.xlu1 %3830, %v4374_v19  }
  0x9b   :  { %3680 = vmatmul.mubr.msk.f32.gmra.mrb[62].mxu0 %vm114_vm0, %v104_v12 }
  0x9d   :  { %3831 = vset.pattern.permute.xlu1 %v6321_v13 }
  0x9e   :  { %2125 = vperm.xlu1 %3831, %v4374_v19  }
  0xa2   :  { %3832 = vset.pattern.permute.xlu1 %v6323_v15 }
  0xa3   :  { %2136 = vperm.xlu1 %3832, %v4374_v19  }
  0xa7   :  { %3835 = vset.pattern.permute.xlu1 %v6317_v17 }
  0xa8   :  { %2199 = vperm.xlu1 %3835, %v4391_v22  }
  0xac   :  { %3838 = vset.pattern.permute.xlu1 %v6319_v16 }
  0xad   :  { %2231 = vperm.xlu1 %3838, %v4391_v22  }
  0xb1   :  { %3839 = vset.pattern.permute.xlu1 %v6321_v13 }
  0xf2   :  { %v3588_v27 = vpop.f32.mrb[0].mxu0 }
  0xf3   :  { %v383_v28 = vadd.f32 %v3588_v27, %v4412_v26  ;;  %v377_v29 = vpop.f32.mrb[1].mxu0 }
  0xf4   :  { %v378_v30 = vadd.f32 %v4412_v26, %v377_v29 }
  0xf5   :  { %v697_v33 = vmax.f32 %v383_v28, 0.0 }
  0xf6   :  { %v696_v31 = vmax.f32 %v378_v30, 0.0  ;;  %v3591_v32 = vpop.f32.mrb[2].mxu0 }
  0xf7   :  { %v393_v34 = vadd.f32 %v3591_v32, %v4412_v26  ;;  %v387_v35 = vpop.f32.mrb[3].mxu0 }
  0xf8   :  { %v388_v36 = vadd.f32 %v4412_v26, %v387_v35  ;;  %3690 = vmatprep.mubr.msk.f32.mxu1 %vm768_vm2, %v696_v31 }
  0xf9   :  { %3691 = vmatmul.mubr.msk.f32.vlgmr.msra.gmra.mrb[0].mxu1 %vm768_vm2, %v697_v33  ;;  %v699_v39 = vmax.f32 %v393_v34, 0.0 }
  0xfa   :  { %v698_v37 = vmax.f32 %v388_v36, 0.0  ;;  %v3594_v38 = vpop.f32.mrb[4].mxu0 }
  0xfb   :  { %v403_v40 = vadd.f32 %v3594_v38, %v4412_v26  ;;  %v397_v41 = vpop.f32.mrb[5].mxu0 }
  0xfc   :  { %v398_v42 = vadd.f32 %v4412_v26, %v397_v41  ;;  %3693 = vmatprep.mubr.msk.f32.mxu1 %vm768_vm2, %v698_v37 }
  0xfd   :  { %3694 = vmatmul.mubr.msk.f32.gmra.mrb[2].mxu1 %vm768_vm2, %v699_v39  ;;  %v701_v45 = vmax.f32 %v403_v40, 0.0 }
  0xfe   :  { %v700_v43 = vmax.f32 %v398_v42, 0.0  ;;  %v3597_v44 = vpop.f32.mrb[6].mxu0 }
  0xff   :  { %v413_v46 = vadd.f32 %v3597_v44, %v4412_v26  ;;  %v407_v47 = vpop.f32.mrb[7].mxu0 }
 0x100   :  { %v408_v48 = vadd.f32 %v4412_v26, %v407_v47  ;;  %3696 = vmatprep.mubr.msk.f32.mxu1 %vm768_vm2, %v700_v43 }
 0x101   :  { %3697 = vmatmul.mubr.msk.f32.gmra.mrb[4].mxu1 %vm768_vm2, %v701_v45  ;;  %v703_v51 = vmax.f32 %v413_v46, 0.0 }
 0x102   :  { %v702_v49 = vmax.f32 %v408_v48, 0.0  ;;  %v3600_v50 = vpop.f32.mrb[8].mxu0 }
 0x103   :  { %v423_v52 = vadd.f32 %v3600_v50, %v4412_v26  ;;  %v417_v53 = vpop.f32.mrb[9].mxu0 }
 0x104   :  { %v418_v54 = vadd.f32 %v4412_v26, %v417_v53  ;;  %3699 = vmatprep.mubr.msk.f32.mxu1 %vm768_vm2, %v702_v49 }
 0x105   :  { %3700 = vmatmul.mubr.msk.f32.gmra.mrb[6].mxu1 %vm768_vm2, %v703_v51  ;;  %v705_v58 = vmax.f32 %v423_v52, 0.0 }
 0x106   :  { %v704_v56 = vmax.f32 %v418_v54, 0.0  ;;  %v3603_v57 = vpop.f32.mrb[10].mxu0 }
 0x107   :  { %v433_v59 = vadd.f32 %v3603_v57, %v4412_v26  ;;  %v427_v60 = vpop.f32.mrb[11].mxu0 }
 0x108   :  { %v428_v61 = vadd.f32 %v4412_v26, %v427_v60  ;;  %3702 = vmatprep.mubr.msk.f32.mxu1 %vm768_vm2, %v704_v56 }
 0x109   :  { %3703 = vmatmul.mubr.msk.f32.gmra.mrb[8].mxu1 %vm768_vm2, %v705_v58  ;;  %v707_v0 = vmax.f32 %v433_v59, 0.0 }
 0x10a   :  { %v706_v62 = vmax.f32 %v428_v61, 0.0  ;;  %v3606_v63 = vpop.f32.mrb[12].mxu0 }
 0x10b   :  { %v443_v1 = vadd.f32 %v3606_v63, %v4412_v26  ;;  %v437_v2 = vpop.f32.mrb[13].mxu0 }
 0x10c   :  { %v438_v3 = vadd.f32 %v4412_v26, %v437_v2  ;;  %3705 = vmatprep.mubr.msk.f32.mxu1 %vm768_vm2, %v706_v62 }
 0x10d   :  { %3706 = vmatmul.mubr.msk.f32.gmra.mrb[10].mxu1 %vm768_vm2, %v707_v0  ;;  %v709_v6 = vmax.f32 %v443_v1, 0.0 }
 0x10e   :  { %v708_v4 = vmax.f32 %v438_v3, 0.0  ;;  %v3609_v5 = vpop.f32.mrb[14].mxu0 }
 0x10f   :  { %v453_v7 = vadd.f32 %v3609_v5, %v4412_v26  ;;  %v447_v8 = vpop.f32.mrb[15].mxu0 }
 0x110   :  { %v448_v9 = vadd.f32 %v4412_v26, %v447_v8  ;;  %3708 = vmatprep.mubr.msk.f32.mxu1 %vm768_vm2, %v708_v4 }
 0x111   :  { %3709 = vmatmul.mubr.msk.f32.gmra.mrb[12].mxu1 %vm768_vm2, %v709_v6  ;;  %v711_v12 = vmax.f32 %v453_v7, 0.0 }
 0x112   :  { %v710_v10 = vmax.f32 %v448_v9, 0.0  ;;  %v3612_v11 = vpop.f32.mrb[16].mxu0 }
 0x113   :  { %v463_v14 = vadd.f32 %v3612_v11, %v4412_v26  ;;  %v457_v18 = vpop.f32.mrb[17].mxu0 }
 0x114   :  { %v458_v20 = vadd.f32 %v4412_v26, %v457_v18  ;;  %3711 = vmatprep.mubr.msk.f32.mxu1 %vm768_vm2, %v710_v10 }
 0x115   :  { %3712 = vmatmul.mubr.msk.f32.gmra.mrb[14].mxu1 %vm768_vm2, %v711_v12  ;;  %v713_v25 = vmax.f32 %v463_v14, 0.0 }
 0x116   :  { %v712_v23 = vmax.f32 %v458_v20, 0.0  ;;  %v3615_v24 = vpop.f32.mrb[18].mxu0 }
 0x117   :  { %v473_v27 = vadd.f32 %v3615_v24, %v4412_v26  ;;  %v467_v28 = vpop.f32.mrb[19].mxu0 }
 0x118   :  { %v468_v29 = vadd.f32 %v4412_v26, %v467_v28  ;;  %3714 = vmatprep.mubr.msk.f32.mxu1 %vm768_vm2, %v712_v23 }
 0x119   :  { %3715 = vmatmul.mubr.msk.f32.gmra.mrb[16].mxu1 %vm768_vm2, %v713_v25  ;;  %v715_v32 = vmax.f32 %v473_v27, 0.0 }
 0x11a   :  { %v714_v30 = vmax.f32 %v468_v29, 0.0  ;;  %v3618_v31 = vpop.f32.mrb[20].mxu0 }
 0x11b   :  { %v483_v33 = vadd.f32 %v3618_v31, %v4412_v26  ;;  %v477_v34 = vpop.f32.mrb[21].mxu0 }
 0x11c   :  { %v478_v35 = vadd.f32 %v4412_v26, %v477_v34  ;;  %3717 = vmatprep.mubr.msk.f32.mxu1 %vm768_vm2, %v714_v30 }
 0x11d   :  { %3718 = vmatmul.mubr.msk.f32.gmra.mrb[18].mxu1 %vm768_vm2, %v715_v32  ;;  %v717_v38 = vmax.f32 %v483_v33, 0.0 }
 0x11e   :  { %v716_v36 = vmax.f32 %v478_v35, 0.0  ;;  %v3621_v37 = vpop.f32.mrb[22].mxu0 }
 0x11f   :  { %v493_v39 = vadd.f32 %v3621_v37, %v4412_v26  ;;  %v487_v40 = vpop.f32.mrb[23].mxu0 }
 0x120   :  { %v488_v41 = vadd.f32 %v4412_v26, %v487_v40  ;;  %3720 = vmatprep.mubr.msk.f32.mxu1 %vm768_vm2, %v716_v36 }
 0x121   :  { %3721 = vmatmul.mubr.msk.f32.gmra.mrb[20].mxu1 %vm768_vm2, %v717_v38  ;;  %v719_v44 = vmax.f32 %v493_v39, 0.0 }
 0x122   :  { %v718_v42 = vmax.f32 %v488_v41, 0.0  ;;  %v3624_v43 = vpop.f32.mrb[24].mxu0 }
 0x123   :  { %v503_v45 = vadd.f32 %v3624_v43, %v4412_v26  ;;  %v497_v46 = vpop.f32.mrb[25].mxu0 }
 0x124   :  { %v498_v47 = vadd.f32 %v4412_v26, %v497_v46  ;;  %3723 = vmatprep.mubr.msk.f32.mxu1 %vm768_vm2, %v718_v42 }
 0x125   :  { %3724 = vmatmul.mubr.msk.f32.gmra.mrb[22].mxu1 %vm768_vm2, %v719_v44  ;;  %v721_v50 = vmax.f32 %v503_v45, 0.0 }
 0x126   :  { %v720_v48 = vmax.f32 %v498_v47, 0.0  ;;  %v3627_v49 = vpop.f32.mrb[26].mxu0 }
 0x127   :  { %v513_v21 = vadd.f32 %v3627_v49, %v4412_v26  ;;  %v507_v51 = vpop.f32.mrb[27].mxu0 }
 0x128   :  { %v508_v52 = vadd.f32 %v4412_v26, %v507_v51  ;;  %3726 = vmatprep.mubr.msk.f32.mxu1 %vm768_vm2, %v720_v48 }
 0x129   :  { %3727 = vmatmul.mubr.msk.f32.gmra.mrb[24].mxu1 %vm768_vm2, %v721_v50  ;;  %v723_v55 = vmax.f32 %v513_v21, 0.0 }
 0x12a   :  { %v722_v53 = vmax.f32 %v508_v52, 0.0  ;;  %v3630_v54 = vpop.f32.mrb[28].mxu0 }
 0x12b   :  { %v523_v56 = vadd.f32 %v3630_v54, %v4412_v26  ;;  %v517_v57 = vpop.f32.mrb[29].mxu0 }
 0x12c   :  { %v518_v58 = vadd.f32 %v4412_v26, %v517_v57  ;;  %3729 = vmatprep.mubr.msk.f32.mxu1 %vm768_vm2, %v722_v53 }
 0x12d   :  { %3730 = vmatmul.mubr.msk.f32.gmra.mrb[26].mxu1 %vm768_vm2, %v723_v55  ;;  %v725_v61 = vmax.f32 %v523_v56, 0.0 }
 0x12e   :  { %v724_v59 = vmax.f32 %v518_v58, 0.0  ;;  %v3633_v60 = vpop.f32.mrb[30].mxu0 }
 0x12f   :  { %v533_v62 = vadd.f32 %v3633_v60, %v4412_v26  ;;  %v527_v63 = vpop.f32.mrb[31].mxu0 }
 0x130   :  { %v528_v0 = vadd.f32 %v4412_v26, %v527_v63  ;;  %3732 = vmatprep.mubr.msk.f32.mxu1 %vm768_vm2, %v724_v59 }
 0x131   :  { %3733 = vmatmul.mubr.msk.f32.gmra.mrb[28].mxu1 %vm768_vm2, %v725_v61  ;;  %v727_v3 = vmax.f32 %v533_v62, 0.0 }
 0x132   :  { %v726_v1 = vmax.f32 %v528_v0, 0.0  ;;  %v3636_v2 = vpop.f32.mrb[32].mxu0 }
 0x133   :  { %v543_v4 = vadd.f32 %v3636_v2, %v4412_v26  ;;  %v537_v5 = vpop.f32.mrb[33].mxu0 }
 0x134   :  { %v538_v6 = vadd.f32 %v4412_v26, %v537_v5  ;;  %3735 = vmatprep.mubr.msk.f32.mxu1 %vm768_vm2, %v726_v1 }
 0x135   :  { %3736 = vmatmul.mubr.msk.f32.gmra.mrb[30].mxu1 %vm768_vm2, %v727_v3  ;;  %v729_v8 = vmax.f32 %v543_v4, 0.0 }
 0x136   :  { %v728_v7 = vmax.f32 %v538_v6, 0.0  ;;  %v3639_v19 = vpop.f32.mrb[34].mxu0 }
 0x137   :  { %v553_v9 = vadd.f32 %v3639_v19, %v4412_v26  ;;  %v547_v10 = vpop.f32.mrb[35].mxu0 }
 0x138   :  { %v548_v11 = vadd.f32 %v4412_v26, %v547_v10  ;;  %3738 = vmatprep.mubr.msk.f32.mxu1 %vm768_vm2, %v728_v7 }
 0x139   :  { %3739 = vmatmul.mubr.msk.f32.gmra.mrb[32].mxu1 %vm768_vm2, %v729_v8  ;;  %v731_v18 = vmax.f32 %v553_v9, 0.0 }
 0x13a   :  { %v730_v12 = vmax.f32 %v548_v11, 0.0  ;;  %v3642_v14 = vpop.f32.mrb[36].mxu0 }
 0x13b   :  { %v563_v20 = vadd.f32 %v3642_v14, %v4412_v26  ;;  %v557_v23 = vpop.f32.mrb[37].mxu0 }
 0x13c   :  { %v558_v24 = vadd.f32 %v4412_v26, %v557_v23  ;;  %3741 = vmatprep.mubr.msk.f32.mxu1 %vm768_vm2, %v730_v12 }
 0x13d   :  { %3742 = vmatmul.mubr.msk.f32.gmra.mrb[34].mxu1 %vm768_vm2, %v731_v18  ;;  %v733_v28 = vmax.f32 %v563_v20, 0.0 }
 0x13e   :  { %v732_v25 = vmax.f32 %v558_v24, 0.0  ;;  %v3645_v27 = vpop.f32.mrb[38].mxu0 }
 0x13f   :  { %v573_v29 = vadd.f32 %v3645_v27, %v4412_v26  ;;  %v567_v30 = vpop.f32.mrb[39].mxu0 }
 0x140   :  { %v568_v22 = vadd.f32 %v4412_v26, %v567_v30  ;;  %3744 = vmatprep.mubr.msk.f32.mxu1 %vm768_vm2, %v732_v25 }
 0x141   :  { %3745 = vmatmul.mubr.msk.f32.gmra.mrb[36].mxu1 %vm768_vm2, %v733_v28  ;;  %v735_v33 = vmax.f32 %v573_v29, 0.0 }
 0x142   :  { %v734_v31 = vmax.f32 %v568_v22, 0.0  ;;  %v3648_v32 = vpop.f32.mrb[40].mxu0 }
 0x143   :  { %v583_v34 = vadd.f32 %v3648_v32, %v4412_v26  ;;  %v577_v35 = vpop.f32.mrb[41].mxu0 }
 0x144   :  { %v578_v36 = vadd.f32 %v4412_v26, %v577_v35  ;;  %3747 = vmatprep.mubr.msk.f32.mxu1 %vm768_vm2, %v734_v31 }
 0x145   :  { %3748 = vmatmul.mubr.msk.f32.gmra.mrb[38].mxu1 %vm768_vm2, %v735_v33  ;;  %v737_v39 = vmax.f32 %v583_v34, 0.0 }
 0x146   :  { %v736_v37 = vmax.f32 %v578_v36, 0.0  ;;  %v3651_v38 = vpop.f32.mrb[42].mxu0 }
 0x147   :  { %v593_v40 = vadd.f32 %v3651_v38, %v4412_v26  ;;  %v587_v41 = vpop.f32.mrb[43].mxu0 }
 0x148   :  { %v588_v42 = vadd.f32 %v4412_v26, %v587_v41  ;;  %3750 = vmatprep.mubr.msk.f32.mxu1 %vm768_vm2, %v736_v37 }
 0x149   :  { %3751 = vmatmul.mubr.msk.f32.gmra.mrb[40].mxu1 %vm768_vm2, %v737_v39  ;;  %v739_v45 = vmax.f32 %v593_v40, 0.0 }
 0x14a   :  { %v738_v43 = vmax.f32 %v588_v42, 0.0  ;;  %v3654_v44 = vpop.f32.mrb[44].mxu0 }
 0x14b   :  { %v603_v46 = vadd.f32 %v3654_v44, %v4412_v26  ;;  %v597_v47 = vpop.f32.mrb[45].mxu0 }
 0x14c   :  { %v598_v48 = vadd.f32 %v4412_v26, %v597_v47  ;;  %3753 = vmatprep.mubr.msk.f32.mxu1 %vm768_vm2, %v738_v43 }
 0x14d   :  { %3754 = vmatmul.mubr.msk.f32.gmra.mrb[42].mxu1 %vm768_vm2, %v739_v45  ;;  %v741_v21 = vmax.f32 %v603_v46, 0.0  ;;  %v4570_v46 = vpop.permute.xlu1 %1453 }
 0x14e   :  { %v740_v49 = vmax.f32 %v598_v48, 0.0  ;;  %v3657_v50 = vpop.f32.mrb[46].mxu0 }
 0x14f   :  { %v613_v51 = vadd.f32 %v3657_v50, %v4412_v26  ;;  %v607_v52 = vpop.f32.mrb[47].mxu0 }
 0x150   :  { %v608_v53 = vadd.f32 %v4412_v26, %v607_v52  ;;  %3756 = vmatprep.mubr.msk.f32.mxu1 %vm768_vm2, %v740_v49 }
 0x151   :  { %3757 = vmatmul.mubr.msk.f32.gmra.mrb[44].mxu1 %vm768_vm2, %v741_v21  ;;  %v743_v56 = vmax.f32 %v613_v51, 0.0  ;;  %v4572_v47 = vpop.permute.xlu1 %1464 }
 0x152   :  { %v742_v54 = vmax.f32 %v608_v53, 0.0  ;;  %v3660_v55 = vpop.f32.mrb[48].mxu0 }
 0x153   :  { %v623_v57 = vadd.f32 %v3660_v55, %v4412_v26  ;;  %v617_v58 = vpop.f32.mrb[49].mxu0 }
 0x154   :  { %v618_v59 = vadd.f32 %v4412_v26, %v617_v58  ;;  %3759 = vmatprep.mubr.msk.f32.mxu1 %vm768_vm2, %v742_v54 }
 0x155   :  { %3760 = vmatmul.mubr.msk.f32.gmra.mrb[46].mxu1 %vm768_vm2, %v743_v56  ;;  %v745_v62 = vmax.f32 %v623_v57, 0.0  ;;  %v4574_v48 = vpop.permute.xlu1 %1475 }
 0x156   :  { %v744_v60 = vmax.f32 %v618_v59, 0.0  ;;  %v3663_v61 = vpop.f32.mrb[50].mxu0 }
 0x157   :  { %v633_v63 = vadd.f32 %v3663_v61, %v4412_v26  ;;  %v627_v0 = vpop.f32.mrb[51].mxu0 }
 0x158   :  { %v628_v1 = vadd.f32 %v4412_v26, %v627_v0  ;;  %3762 = vmatprep.mubr.msk.f32.mxu1 %vm768_vm2, %v744_v60 }
 0x159   :  { %3763 = vmatmul.mubr.msk.f32.gmra.mrb[48].mxu1 %vm768_vm2, %v745_v62  ;;  %v747_v4 = vmax.f32 %v633_v63, 0.0  ;;  %v4576_v49 = vpop.permute.xlu1 %1527 }
 0x15a   :  { %v746_v2 = vmax.f32 %v628_v1, 0.0  ;;  %v3666_v3 = vpop.f32.mrb[52].mxu0 }
 0x15b   :  { %v643_v5 = vadd.f32 %v3666_v3, %v4412_v26  ;;  %v637_v6 = vpop.f32.mrb[53].mxu0 }
 0x15c   :  { %v638_v7 = vadd.f32 %v4412_v26, %v637_v6  ;;  %3765 = vmatprep.mubr.msk.f32.mxu1 %vm768_vm2, %v746_v2 }
 0x15d   :  { %3766 = vmatmul.mubr.msk.f32.gmra.mrb[50].mxu1 %vm768_vm2, %v747_v4  ;;  %v749_v9 = vmax.f32 %v643_v5, 0.0  ;;  %v4578_v50 = vpop.permute.xlu1 %1537 }
 0x15e   :  { %v748_v19 = vmax.f32 %v638_v7, 0.0  ;;  %v3669_v8 = vpop.f32.mrb[54].mxu0 }
 0x15f   :  { %v653_v10 = vadd.f32 %v3669_v8, %v4412_v26  ;;  %v647_v11 = vpop.f32.mrb[55].mxu0 }
 0x160   :  { %v648_v12 = vadd.f32 %v4412_v26, %v647_v11  ;;  %3768 = vmatprep.mubr.msk.f32.mxu1 %vm768_vm2, %v748_v19 }
 0x161   :  { %3769 = vmatmul.mubr.msk.f32.gmra.mrb[52].mxu1 %vm768_vm2, %v749_v9  ;;  %v751_v20 = vmax.f32 %v653_v10, 0.0  ;;  %v4585_v21 = vpop.permute.xlu1 %1548 }
 0x162   :  { %v750_v14 = vmax.f32 %v648_v12, 0.0  ;;  %v3672_v18 = vpop.f32.mrb[56].mxu0 }
 0x163   :  { %v663_v23 = vadd.f32 %v3672_v18, %v4412_v26  ;;  %v657_v24 = vpop.f32.mrb[57].mxu0 }
 0x164   :  { %v658_v25 = vadd.f32 %v4412_v26, %v657_v24  ;;  %3771 = vmatprep.mubr.msk.f32.mxu1 %vm768_vm2, %v750_v14 }
 0x165   :  { %3772 = vmatmul.mubr.msk.f32.gmra.mrb[54].mxu1 %vm768_vm2, %v751_v20  ;;  %v753_v29 = vmax.f32 %v663_v23, 0.0  ;;  %v4596_v58 = vpop.permute.xlu1 %1559 }
 0x166   :  { %v752_v27 = vmax.f32 %v658_v25, 0.0  ;;  %v3675_v28 = vpop.f32.mrb[58].mxu0 }
 0x167   :  { %v673_v30 = vadd.f32 %v3675_v28, %v4412_v26  ;;  %v667_v22 = vpop.f32.mrb[59].mxu0 }
 0x168   :  { %v668_v31 = vadd.f32 %v4412_v26, %v667_v22  ;;  %3774 = vmatprep.mubr.msk.f32.mxu1 %vm768_vm2, %v752_v27 }
 0x169   :  { %3775 = vmatmul.mubr.msk.f32.gmra.mrb[56].mxu1 %vm768_vm2, %v753_v29  ;;  %v755_v34 = vmax.f32 %v673_v30, 0.0  ;;  %v4610_v0 = vpop.permute.xlu1 %1643 }
 0x16a   :  { %v754_v32 = vmax.f32 %v668_v31, 0.0  ;;  %v3678_v33 = vpop.f32.mrb[60].mxu0 }
 0x16b   :  { %v683_v35 = vadd.f32 %v3678_v33, %v4412_v26  ;;  %v677_v36 = vpop.f32.mrb[61].mxu0 }
 0x16c   :  { %v678_v37 = vadd.f32 %v4412_v26, %v677_v36  ;;  %3777 = vmatprep.mubr.msk.f32.mxu1 %vm768_vm2, %v754_v32 }
 0x16d   :  { %3778 = vmatmul.mubr.msk.f32.gmra.mrb[58].mxu1 %vm768_vm2, %v755_v34  ;;  %v757_v40 = vmax.f32 %v683_v35, 0.0  ;;  %v4624_v19 = vpop.permute.xlu1 %1705 }
 0x16e   :  { %v756_v38 = vmax.f32 %v678_v37, 0.0  ;;  %v3681_v39 = vpop.f32.mrb[62].mxu0 }
 0x16f   :  { %v693_v41 = vadd.f32 %v3681_v39, %v4412_v26  ;;  %v687_v42 = vpop.f32.mrb[63].mxu0 }
 0x170   :  { %v688_v43 = vadd.f32 %v4412_v26, %v687_v42  ;;  %3780 = vmatprep.mubr.msk.f32.mxu1 %vm768_vm2, %v756_v38  ;;  %v4583_v26 = vld [vmem:[%s6313_s4 + $0x1] ss:$0 sm:$0xff]  ;;  %s4801_s4 = sshll.u32 %s4759_s0, 2 }
 0x171   :  { %3781 = vmatmul.mubr.msk.f32.gmra.mrb[60].mxu1 %vm768_vm2, %v757_v40  ;;  %v759_v45 = vmax.f32 %v693_v41, 0.0  ;;  %v4638_v14 = vpop.permute.xlu1 %1716  ;;  %6354 = sst [smem:[#allocation10_spill]] %s4801_s4  ;;  %s2035_s11 = sadd.s32 1, %s4801_s4 }
 0x172   :  { %v758_v44 = vmax.f32 %v688_v43, 0.0 }
 0x174   :  { %3783 = vmatprep.mubr.msk.f32.mxu1 %vm768_vm2, %v758_v44 }
 0x175   :  { %3784 = vmatmul.mubr.msk.f32.gmra.mrb[62].mxu1 %vm768_vm2, %v759_v45  ;;  %v4652_v29 = vpop.permute.xlu1 %1727 }
 0x179   :  { %v4666_v34 = vpop.permute.xlu1 %1789 }
 0x17d   :  { %v4680_v42 = vpop.permute.xlu1 %1800 }
 0x1cc   :  { %v3692_v51 = vpop.f32.mrb[0].mxu1 }
 0x1cd   :  { %v1033_v52 = vadd.f32 %v3692_v51, %v4583_v26  ;;  %v1027_v53 = vpop.f32.mrb[1].mxu1 }
 0x1ce   :  { %v1028_v54 = vadd.f32 %v4583_v26, %v1027_v53  ;;  %v4694_v53 = vpop.permute.xlu1 %1811 }
 0x1cf   :  { %1347 = vst [vmem:[%s6315_s6 + $0x8] sm:$0xff] %v1033_v52 }
 0x1d0   :  { %1346 = vst [vmem:[%s6315_s6] sm:$0xff] %v1028_v54  ;;  %v3695_v55 = vpop.f32.mrb[2].mxu1 }
 0x1d1   :  { %v1043_v56 = vadd.f32 %v3695_v55, %v4583_v26  ;;  %v1037_v57 = vpop.f32.mrb[3].mxu1 }
 0x1d2   :  { %v1038_v59 = vadd.f32 %v4583_v26, %v1037_v57  ;;  %v4700_v57 = vpop.permute.xlu0 %2147 }
 0x1d3   :  { %1349 = vst [vmem:[%s6315_s6 + $0x18] sm:$0xff] %v1043_v56 }
 0x1d4   :  { %1348 = vst [vmem:[%s6315_s6 + $0x10] sm:$0xff] %v1038_v59  ;;  %v3698_v60 = vpop.f32.mrb[4].mxu1 }
 0x1d5   :  { %v1053_v61 = vadd.f32 %v3698_v60, %v4583_v26  ;;  %v1047_v62 = vpop.f32.mrb[5].mxu1 }
 0x1d6   :  { %v1048_v63 = vadd.f32 %v4583_v26, %v1047_v62 }
 0x1d7   :  { %1351 = vst [vmem:[%s6315_s6 + $0x28] sm:$0xff] %v1053_v61 }
 0x1d8   :  { %1350 = vst [vmem:[%s6315_s6 + $0x20] sm:$0xff] %v1048_v63  ;;  %v3701_v1 = vpop.f32.mrb[6].mxu1  ;;  %v4710_v63 = vpop.permute.xlu1 %1873 }
 0x1d9   :  { %v1063_v2 = vadd.f32 %v3701_v1, %v4583_v26  ;;  %v1057_v3 = vpop.f32.mrb[7].mxu1 }
 0x1da   :  { %v1058_v4 = vadd.f32 %v4583_v26, %v1057_v3 }
 0x1db   :  { %1353 = vst [vmem:[%s6315_s6 + $0x38] sm:$0xff] %v1063_v2  ;;  %v4716_v2 = vpop.permute.xlu0 %1621 }
 0x1dc   :  { %1352 = vst [vmem:[%s6315_s6 + $0x30] sm:$0xff] %v1058_v4  ;;  %v3704_v5 = vpop.f32.mrb[8].mxu1 }
 0x1dd   :  { %v1073_v6 = vadd.f32 %v3704_v5, %v4583_v26  ;;  %v1067_v7 = vpop.f32.mrb[9].mxu1 }
 0x1de   :  { %v1068_v8 = vadd.f32 %v4583_v26, %v1067_v7  ;;  %v4726_v7 = vpop.permute.xlu1 %1895 }
 0x1df   :  { %1355 = vst [vmem:[%s6315_s6 + $0x48] sm:$0xff] %v1073_v6 }
 0x1e0   :  { %1354 = vst [vmem:[%s6315_s6 + $0x40] sm:$0xff] %v1068_v8  ;;  %v3707_v9 = vpop.f32.mrb[10].mxu1 }
 0x1e1   :  { %v1083_v10 = vadd.f32 %v3707_v9, %v4583_v26  ;;  %v1077_v11 = vpop.f32.mrb[11].mxu1 }
 0x1e2   :  { %v1078_v12 = vadd.f32 %v4583_v26, %v1077_v11  ;;  %v4736_v11 = vpop.permute.xlu0 %2041 }
 0x1e3   :  { %1357 = vst [vmem:[%s6315_s6 + $0x58] sm:$0xff] %v1083_v10 }
 0x1e4   :  { %1356 = vst [vmem:[%s6315_s6 + $0x50] sm:$0xff] %v1078_v12  ;;  %v3710_v18 = vpop.f32.mrb[12].mxu1 }
 0x1e5   :  { %v1093_v20 = vadd.f32 %v3710_v18, %v4583_v26  ;;  %v1087_v23 = vpop.f32.mrb[13].mxu1 }
 0x1e6   :  { %v1088_v24 = vadd.f32 %v4583_v26, %v1087_v23 }
 0x1e7   :  { %1359 = vst [vmem:[%s6315_s6 + $0x68] sm:$0xff] %v1093_v20 }
 0x1e8   :  { %1358 = vst [vmem:[%s6315_s6 + $0x60] sm:$0xff] %v1088_v24  ;;  %v3713_v25 = vpop.f32.mrb[14].mxu1  ;;  %v4746_v24 = vpop.permute.xlu1 %1957 }
 0x1e9   :  { %v1103_v27 = vadd.f32 %v3713_v25, %v4583_v26  ;;  %v1097_v28 = vpop.f32.mrb[15].mxu1 }
 0x1ea   :  { %v1098_v30 = vadd.f32 %v4583_v26, %v1097_v28 }
 0x1eb   :  { %1361 = vst [vmem:[%s6315_s6 + $0x78] sm:$0xff] %v1103_v27  ;;  %v4761_v27 = vpop.permute.xlu0 %2209 }
 0x1ec   :  { %1360 = vst [vmem:[%s6315_s6 + $0x70] sm:$0xff] %v1098_v30  ;;  %v3716_v22 = vpop.f32.mrb[16].mxu1  ;;  %v1410_v30 = vlaneseq }
 0x1ed   :  { %v1113_v31 = vadd.f32 %v3716_v22, %v4583_v26  ;;  %v1107_v32 = vpop.f32.mrb[17].mxu1 }
 0x1ee   :  { %v1108_v33 = vadd.f32 %v4583_v26, %v1107_v32 }
 0x1ef   :  { %1363 = vst [vmem:[%s6315_s6 + $0x88] sm:$0xff] %v1113_v31 }
 0x1f0   :  { %1362 = vst [vmem:[%s6315_s6 + $0x80] sm:$0xff] %v1108_v33  ;;  %v3719_v35 = vpop.f32.mrb[18].mxu1  ;;  %v4777_v33 = vpop.permute.xlu1 %1968 }
 0x1f1   :  { %v1123_v36 = vadd.f32 %v3719_v35, %v4583_v26  ;;  %v1117_v37 = vpop.f32.mrb[19].mxu1 }
 0x1f2   :  { %v1118_v38 = vadd.f32 %v4583_v26, %v1117_v37 }
 0x1f3   :  { %1365 = vst [vmem:[%s6315_s6 + $0x98] sm:$0xff] %v1123_v36  ;;  %v4783_v36 = vand.u32 127, %v1410_v30 }
 0x1f4   :  { %1364 = vst [vmem:[%s6315_s6 + $0x90] sm:$0xff] %v1118_v38  ;;  %v3722_v39 = vpop.f32.mrb[20].mxu1 }
 0x1f5   :  { %v1133_v40 = vadd.f32 %v3722_v39, %v4583_v26  ;;  %v1127_v41 = vpop.f32.mrb[21].mxu1  ;;  %v1448_v39 = vstv %s1447_s13  ;;  %s4827_s13 = sshll.u32 %s4772_s14, 2 }
 0x1f6   :  { %v1128_v43 = vadd.f32 %v4583_v26, %v1127_v41  ;;  %vm1449_vm3 = vcmp.eq.s32.totalorder %v4783_v36, %v1448_v39  ;;  %6357 = sst [smem:[#allocation11_spill]] %s4827_s13  ;;  %v1437_v39 = vstv %s4757_s9  ;;  %s2214_s16 = sadd.s32 2, %s4827_s13 }
 0x1f7   :  { %1367 = vst [vmem:[%s6315_s6 + $0xa8] sm:$0xff] %v1133_v40  ;;  %v4787_v40 = vpop.permute.xlu0 %1632  ;;  %vm4921_vm14 = vcmp.eq.s32.totalorder %v4783_v36, %v1437_v39 }
 0x1f8   :  { %1366 = vst [vmem:[%s6315_s6 + $0xa0] sm:$0xff] %v1128_v43  ;;  %v3725_v44 = vpop.f32.mrb[22].mxu1  ;;  %v1521_v43 = vstv %s4767_s12 }
 0x1f9   :  { %v1143_v45 = vadd.f32 %v3725_v44, %v4583_v26  ;;  %v1137_v51 = vpop.f32.mrb[23].mxu1  ;;  %v1532_v44 = vstv %s1531_s3  ;;  %vm4817_vm4 = vcmp.eq.s32.totalorder %v4783_v36, %v1521_v43  ;;  %s4838_s3 = sld [smem:[#allocation2 + $0x13]] }
 0x1fa   :  { %v1138_v52 = vadd.f32 %v4583_v26, %v1137_v51  ;;  %v1459_v51 = vstv %s1458_s19  ;;  %vm1533_vm5 = vcmp.eq.s32.totalorder %v4783_v36, %v1532_v44  ;;  %s2203_s19 = sadd.s32 1, %s4827_s13 }
 0x1fb   :  { %1369 = vst [vmem:[%s6315_s6 + $0xb8] sm:$0xff] %v1143_v45  ;;  %vm1460_vm6 = vcmp.eq.s32.totalorder %v4783_v36, %v1459_v51  ;;  %v1554_v51 = vstv %s1553_s26  ;;  %s4944_s26 = sshll.u32 %s4861_s23, 2 }
 0x1fc   :  { %1368 = vst [vmem:[%s6315_s6 + $0xb0] sm:$0xff] %v1138_v52  ;;  %v3728_v54 = vpop.f32.mrb[24].mxu1  ;;  %v4810_v52 = vpop.permute.xlu1 %1979  ;;  %vm1555_vm15 = vcmp.eq.s32.totalorder %v4783_v36, %v1554_v51  ;;  %6362 = sst [smem:[#allocation14_spill]] %s4944_s26 }
 0x1fd   :  { %v1153_v55 = vadd.f32 %v3728_v54, %v4583_v26  ;;  %v1147_v56 = vpop.f32.mrb[25].mxu1 }
 0x1fe   :  { %v1148_v59 = vadd.f32 %v4583_v26, %v1147_v56 }
 0x1ff   :  { %1371 = vst [vmem:[%s6315_s6 + $0xc8] sm:$0xff] %v1153_v55  ;;  %s1669_s7 = sadd.s32 48, %s4838_s3 }
 0x200   :  { %1370 = vst [vmem:[%s6315_s6 + $0xc0] sm:$0xff] %v1148_v59  ;;  %v3731_v60 = vpop.f32.mrb[26].mxu1 }
 0x201   :  { %v1163_v61 = vadd.f32 %v3731_v60, %v4583_v26  ;;  %v1157_v62 = vpop.f32.mrb[27].mxu1  ;;  %v1543_v60 = vstv %s1542_s1  ;;  %s1794_s1 = sadd.s32 2, %s4944_s26 }
 0x202   :  { %v1158_v1 = vadd.f32 %v4583_v26, %v1157_v62  ;;  %vm1544_vm7 = vcmp.eq.s32.totalorder %v4783_v36, %v1543_v60 }
 0x203   :  { %1373 = vst [vmem:[%s6315_s6 + $0xd8] sm:$0xff] %v1163_v61  ;;  %v4030_v61 = vmov 0.0  }
 0x204   :  { %1372 = vst [vmem:[%s6315_s6 + $0xd0] sm:$0xff] %v1158_v1  ;;  %v3734_v3 = vpop.f32.mrb[28].mxu1  ;;  %v3283_v62 = vsel %vm1449_vm3, 1.0, %v4030_v61  ;;  %v2142_v1 = vstv %s2141_s27  ;;  %s1805_s27 = sadd.s32 3, %s4944_s26 }
 0x205   :  { %v1173_v4 = vadd.f32 %v3734_v3, %v4583_v26  ;;  %v1167_v5 = vpop.f32.mrb[29].mxu1  ;;  %v1470_v3 = vstv %s1469_s30  ;;  %vm2143_vm9 = vcmp.eq.s32.totalorder %v4783_v36, %v2142_v1  ;;  %s2119_s30 = sadd.s32 1, %s4791_s20 }
 0x206   :  { %v1168_v6 = vadd.f32 %v4583_v26, %v1167_v5  ;;  %vm1471_vm8 = vcmp.eq.s32.totalorder %v4783_v36, %v1470_v3  ;;  %v3349_v44 = vsel %vm2143_vm9, 1.0, %v4030_v61 }
 0x207   :  { %1375 = vst [vmem:[%s6315_s6 + $0xe8] sm:$0xff] %v1173_v4  ;;  %v4836_v4 = vpop.permute.xlu0 %1884 }
 0x208   :  { %1374 = vst [vmem:[%s6315_s6 + $0xe0] sm:$0xff] %v1168_v6  ;;  %v3737_v8 = vpop.f32.mrb[30].mxu1  ;;  %v1616_v6 = vstv %s1615_s8  ;;  %s4885_s8 = sshll.u32 %s4822_s10, 2 }
 0x209   :  { %v1183_v9 = vadd.f32 %v3737_v8, %v4583_v26  ;;  %v1177_v10 = vpop.f32.mrb[31].mxu1  ;;  %v3290_v8 = vsel %vm4817_vm4, 1.0, %v4030_v61  ;;  %vm1617_vm10 = vcmp.eq.s32.totalorder %v4783_v36, %v1616_v6  ;;  %6358 = sst [smem:[#allocation12_spill]] %s4885_s8  ;;  %s1878_s15 = sadd.s32 2, %s4885_s8  ;;  %v2215_v6 = vstv %s2214_s16 }
 0x20a   :  { %v1178_v12 = vadd.f32 %v4583_v26, %v1177_v10  ;;  %vm2216_vm2 = vcmp.eq.s32.totalorder %v4783_v36, %v2215_v6 }
 0x20b   :  { %1377 = vst [vmem:[%s6315_s6 + $0xf8] sm:$0xff] %v1183_v9  ;;  %v3291_v9 = vsel %vm1533_vm5, 1.0, %v4030_v61 }
 0x20c   :  { %1376 = vst [vmem:[%s6315_s6 + $0xf0] sm:$0xff] %v1178_v12  ;;  %v3740_v18 = vpop.f32.mrb[32].mxu1  ;;  %v1540_v30 = vmul.f32 %v3291_v9, %v4578_v50  ;;  %v1627_v50 = vstv %s1626_s22  ;;  %v4931_v9 = vmul.f32 %v3349_v44, %v4700_v57  ;;  %s1783_s22 = sadd.s32 1, %s4944_s26  ;;  %v6330_v44 = vstv %s4794_s21 }
 0x20d   :  { %v1193_v20 = vadd.f32 %v3740_v18, %v4583_v26  ;;  %v1187_v23 = vpop.f32.mrb[33].mxu1  ;;  %v2036_v18 = vstv %s2035_s11  ;;  %s1637_s11 = sadd.s32 3, %s4794_s21  ;;  %vm1628_vm13 = vcmp.eq.s32.totalorder %v4783_v36, %v1627_v50  ;;  %vm5014_vm4 = vcmp.eq.s32.totalorder %v4783_v36, %v6330_v44  ;;  %s2173_s21 = sadd.s32 48, %s4772_s14 }
 0x20e   :  { %v1188_v25 = vadd.f32 %v4583_v26, %v1187_v23  ;;  %v4854_v23 = vmul.f32 %v3283_v62, %v4570_v46  ;;  %v1530_v46 = vmul.f32 %v3290_v8, %v4576_v49  ;;  %vm2037_vm11 = vcmp.eq.s32.totalorder %v4783_v36, %v2036_v18 }
 0x20f   :  { %1379 = vst [vmem:[%s6315_s6 + $0x108] sm:$0xff] %v1193_v20  ;;  %v1638_v60 = vstv %s1637_s11  ;;  %s4959_s11 = sld [smem:[#allocation2 + $0x16]]  ;;  %v1795_v62 = vstv %s1794_s1 }
 0x210   :  { %1378 = vst [vmem:[%s6315_s6 + $0x100] sm:$0xff] %v1188_v25  ;;  %v3743_v28 = vpop.f32.mrb[34].mxu1  ;;  %v3284_v25 = vsel %vm1460_vm6, 1.0, %v4030_v61  ;;  %vm1639_vm0 = vcmp.eq.s32.totalorder %v4783_v36, %v1638_v60 }
 0x211   :  { %v1203_v22 = vadd.f32 %v3743_v28, %v4583_v26  ;;  %v1197_v31 = vpop.f32.mrb[35].mxu1  ;;  %v4863_v28 = vpop.permute.xlu1 %2031  ;;  %v4882_v49 = vmul.f32 %v3284_v25, %v4572_v47  ;;  %v3285_v47 = vsel %vm1471_vm8, 1.0, %v4030_v61  ;;  %v3293_v25 = vsel %vm1555_vm15, 1.0, %v4030_v61 }
 0x212   :  { %v1198_v32 = vadd.f32 %v4583_v26, %v1197_v31  ;;  %v2204_v31 = vstv %s2203_s19  ;;  %s4912_s19 = sshll.u32 %s4838_s3, 2  ;;  %v3301_v50 = vsel %vm1639_vm0, 1.0, %v4030_v61  ;;  %vm1796_vm8 = vcmp.eq.s32.totalorder %v4783_v36, %v1795_v62  ;;  %s1488_s3 = sadd.s32 4, %s4757_s9 }
 0x213   :  { %1381 = vst [vmem:[%s6315_s6 + $0x118] sm:$0xff] %v1203_v22  ;;  %vm2205_vm12 = vcmp.eq.s32.totalorder %v4783_v36, %v2204_v31  ;;  %6359 = sst [smem:[#allocation13_spill]] %s4912_s19  ;;  %s1699_s25 = sadd.s32 1, %s4912_s19  ;;  %v5008_v60 = vmul.f32 %v3301_v50, %v4610_v0  ;;  %v6327_v62 = vstv %s4801_s4 }
 0x214   :  { %1380 = vst [vmem:[%s6315_s6 + $0x110] sm:$0xff] %v1198_v32  ;;  %v3746_v35 = vpop.f32.mrb[36].mxu1  ;;  %v3292_v32 = vsel %vm1544_vm7, 1.0, %v4030_v61  ;;  %v3355_v18 = vsel %vm2205_vm12, 1.0, %v4030_v61  ;;  %s1710_s17 = sadd.s32 2, %s4912_s19  ;;  %s1721_s18 = sadd.s32 3, %s4912_s19 }
 0x215   :  { %v1213_v37 = vadd.f32 %v3746_v35, %v4583_v26  ;;  %v1207_v38 = vpop.f32.mrb[37].mxu1  ;;  %v1551_v56 = vmul.f32 %v3292_v32, %v4585_v21  ;;  %v4925_v1 = vpop.permute.xlu1 %2052  ;;  %v1700_v32 = vstv %s1699_s25  ;;  %v1711_v51 = vstv %s1710_s17  ;;  %s1867_s25 = sadd.s32 1, %s4885_s8  ;;  %s5248_s17 = sld [smem:[#allocation2]] }
 0x216   :  { %v1208_v41 = vadd.f32 %v4583_v26, %v1207_v38  ;;  %v4888_v38 = vpop.permute.xlu0 %2220  ;;  %vm1701_vm3 = vcmp.eq.s32.totalorder %v4783_v36, %v1700_v32  ;;  %vm1712_vm5 = vcmp.eq.s32.totalorder %v4783_v36, %v1711_v51  ;;  %v1868_v0 = vstv %s1867_s25  ;;  %s1889_s25 = sadd.s32 3, %s4885_s8 }
 0x217   :  { %1383 = vst [vmem:[%s6315_s6 + $0x128] sm:$0xff] %v1213_v37  ;;  %vm1869_vm9 = vcmp.eq.s32.totalorder %v4783_v36, %v1868_v0 }
 0x218   :  { %1382 = vst [vmem:[%s6315_s6 + $0x120] sm:$0xff] %v1208_v41  ;;  %v3749_v45 = vpop.f32.mrb[38].mxu1 }
 0x219   :  { %v1223_v54 = vadd.f32 %v3749_v45, %v4583_v26  ;;  %v1217_v55 = vpop.f32.mrb[39].mxu1  ;;  %v3299_v45 = vsel %vm1617_vm10, 1.0, %v4030_v61 }
 0x21a   :  { %v1218_v59 = vadd.f32 %v4583_v26, %v1217_v55  ;;  %v1541_v55 = vadd.f32 %v1540_v30, %v1530_v46 }
 0x21b   :  { %1385 = vst [vmem:[%s6315_s6 + $0x138] sm:$0xff] %v1223_v54  ;;  %v3339_v54 = vsel %vm2037_vm11, 1.0, %v4030_v61  ;;  %s1414_s2 = scalar_lea.vmem %s6315_s6, %s5248_s17 }
 0x21c   :  { %1384 = vst [vmem:[%s6315_s6 + $0x130] sm:$0xff] %v1218_v59  ;;  %v3752_v5 = vpop.f32.mrb[40].mxu1  ;;  %v4950_v57 = vmul.f32 %v3339_v54, %v4736_v11  ;;  %v4974_v31 = vadd.f32 %v1551_v56, %v1541_v55  ;;  %v1722_v55 = vstv %s1721_s18  ;;  %s2046_s18 = sadd.s32 2, %s4801_s4 }
 0x21d   :  { %v1233_v10 = vadd.f32 %v3752_v5, %v4583_v26  ;;  %v1227_v12 = vpop.f32.mrb[41].mxu1  ;;  %v1879_v5 = vstv %s1878_s15  ;;  %vm1723_vm6 = vcmp.eq.s32.totalorder %v4783_v36, %v1722_v55 }
 0x21e   :  { %v1228_v20 = vadd.f32 %v4583_v26, %v1227_v12  ;;  %v4937_v12 = vmul.f32 %v3299_v45, %v4716_v2  ;;  %v1444_v2 = vpop.permute.xlu0 %1443  ;;  %vm1880_vm1 = vcmp.eq.s32.totalorder %v4783_v36, %v1879_v5  ;;  %v3356_v45 = vsel %vm2216_vm2, 1.0, %v4030_v61 }
 0x21f   :  { %1387 = vst [vmem:[%s6315_s6 + $0x148] sm:$0xff] %v1233_v10  ;;  %v4934_v10 = vmul.f32 %v3285_v47, %v4574_v48  ;;  %v3300_v48 = vsel %vm1628_vm13, 1.0, %v4030_v61  ;;  %v4993_v47 = vmul.f32 %v3293_v25, %v4596_v58  ;;  %v1784_v58 = vstv %s1783_s22  ;;  %s5036_s22 = sshll.u32 %s4959_s11, 2 }
 0x220   :  { %1386 = vst [vmem:[%s6315_s6 + $0x140] sm:$0xff] %v1228_v20  ;;  %v3755_v22 = vpop.f32.mrb[42].mxu1  ;;  %v3282_v20 = vsel %vm4921_vm14, 1.0, %v4030_v61  ;;  %v5020_v5 = vmul.f32 %v3356_v45, %v4888_v38  ;;  %vm1785_vm7 = vcmp.eq.s32.totalorder %v4783_v36, %v1784_v58  ;;  %6365 = sst [smem:[#allocation15_spill]] %s5036_s22  ;;  %v3308_v25 = vsel %vm1712_vm5, 1.0, %v4030_v61  ;;  %s1951_s15 = sadd.s32 1, %s5036_s22 }
 0x221   :  { %v1243_v35 = vadd.f32 %v3755_v22, %v4583_v26  ;;  %v1237_v37 = vpop.f32.mrb[43].mxu1  ;;  %v4972_v22 = vmul.f32 %v3355_v18, %v4761_v27  ;;  %v4987_v27 = vpop.permute.xlu1 %2063  ;;  %v3307_v18 = vsel %vm1701_vm3, 1.0, %v4030_v61  ;;  %v3309_v50 = vsel %vm1723_vm6, 1.0, %v4030_v61  ;;  %s1962_s1 = sadd.s32 2, %s5036_s22  ;;  %s1973_s16 = sadd.s32 3, %s5036_s22 }
 0x222   :  { %v1238_v41 = vadd.f32 %v4583_v26, %v1237_v37  ;;  %v4980_v37 = vmul.f32 %v3300_v48, %v4787_v40  ;;  %v3324_v40 = vsel %vm1880_vm1, 1.0, %v4030_v61  ;;  %v3298_v48 = vsel %vm5014_vm4, 1.0, %v4030_v61 }
 0x223   :  { %1389 = vst [vmem:[%s6315_s6 + $0x158] sm:$0xff] %v1243_v35  ;;  %v5056_v32 = vmul.f32 %v3307_v18, %v4624_v19  ;;  %v3316_v19 = vsel %vm1796_vm8, 1.0, %v4030_v61  ;;  %v5079_v51 = vmul.f32 %v3308_v25, %v4638_v14  ;;  %v1952_v14 = vstv %s1951_s15  ;;  %s5269_s15 = sld [smem:[#allocation2 + $0x1a]] }
 0x224   :  { %1388 = vst [vmem:[%s6315_s6 + $0x150] sm:$0xff] %v1238_v41  ;;  %v3758_v59 = vpop.f32.mrb[44].mxu1  ;;  %v1446_v41 = vmul.f32 %v3282_v20, %v1444_v2  ;;  %vm1953_vm13 = vcmp.eq.s32.totalorder %v4783_v36, %v1952_v14  ;;  %vm5133_vm14 = vcmp.eq.s32.totalorder %v4783_v36, %v6327_v62  ;;  %v6325_v25 = vstv %s4791_s20 }
 0x225   :  { %v1253_v21 = vadd.f32 %v3758_v59, %v4583_v26  ;;  %v1247_v3 = vpop.f32.mrb[45].mxu1  ;;  %v5046_v2 = vpop.permute.xlu1 %2115  ;;  %vm5175_vm1 = vcmp.eq.s32.totalorder %v4783_v36, %v6325_v25 }
 0x226   :  { %v1248_v8 = vadd.f32 %v4583_v26, %v1247_v3  ;;  %v1457_v6 = vadd.f32 %v4854_v23, %v1446_v41  ;;  %v1612_v23 = vpop.permute.xlu0 %1611  ;;  %v3315_v41 = vsel %vm1785_vm7, 1.0, %v4030_v61 }
 0x227   :  { %1391 = vst [vmem:[%s6315_s6 + $0x168] sm:$0xff] %v1253_v21 }
 0x228   :  { %1390 = vst [vmem:[%s6315_s6 + $0x160] sm:$0xff] %v1248_v8  ;;  %v3761_v11 = vpop.f32.mrb[46].mxu1  ;;  %v5028_v8 = vmul.f32 %v3324_v40, %v4836_v4  ;;  %v1806_v4 = vstv %s1805_s27  ;;  %v1890_v40 = vstv %s1889_s25  ;;  %s2057_s27 = sadd.s32 3, %s4801_s4  ;;  %s5267_s25 = sld [smem:[#allocation2 + $0x5]] }
 0x229   :  { %v1263_v46 = vadd.f32 %v3761_v11, %v4583_v26  ;;  %v1257_v30 = vpop.f32.mrb[47].mxu1  ;;  %vm1807_vm10 = vcmp.eq.s32.totalorder %v4783_v36, %v1806_v4  ;;  %vm1891_vm12 = vcmp.eq.s32.totalorder %v4783_v36, %v1890_v40  ;;  %v5111_v18 = vpop.permute.xlu1 %2125  ;;  %v3331_v40 = vsel %vm1953_vm13, 1.0, %v4030_v61  ;;  %s1501_s4 = sadd.s32 48, %s4733_s24  ;;  %s6389_s24 = sld [smem:[#allocation10_spill]] }
 0x22a   :  { %v1258_v35 = vadd.f32 %v4583_v26, %v1257_v30  ;;  %v5107_v0 = vsel %vm1807_vm10, 1.0, %v4030_v61  ;;  %vm1420_vm13 = vcmask 1040384  }
 0x22b   :  { %1393 = vst [vmem:[%s6315_s6 + $0x178] sm:$0xff] %v1263_v46  ;;  %v1689_v46 = vstv %s4912_s19  ;;  %s2257_s19 = sadd.s32 48, %s5269_s15 }
 0x22c   :  { %1392 = vst [vmem:[%s6315_s6 + $0x170] sm:$0xff] %v1258_v35  ;;  %v3764_v54 = vpop.f32.mrb[48].mxu1  ;;  %v5059_v35 = vadd.f32 %v4882_v49, %v1457_v6  ;;  %v1614_v49 = vmul.f32 %v3298_v48, %v1612_v23  ;;  %vm5088_vm11 = vcmp.eq.s32.totalorder %v4783_v36, %v1689_v46  ;;  %v5102_v6 = vmul.f32 %v3316_v19, %v4680_v42 }
 0x22d   :  { %v1273_v56 = vadd.f32 %v3764_v54, %v4583_v26  ;;  %v1267_v59 = vpop.f32.mrb[49].mxu1  ;;  %v3323_v54 = vsel %vm1869_vm9, 1.0, %v4030_v61  ;;  %v1963_v23 = vstv %s1962_s1  ;;  %v5147_v19 = vstv %s1973_s16  ;;  %s2130_s1 = sadd.s32 2, %s4791_s20  ;;  %s5289_s16 = sld [smem:[#allocation2 + $0x9]] }
 0x22e   :  { %v1268_v3 = vadd.f32 %v4583_v26, %v1267_v59  ;;  %v5094_v59 = vmul.f32 %v3309_v50, %v4652_v29  ;;  %v1696_v29 = vpop.permute.xlu0 %1695  ;;  %v5120_v42 = vadd.f32 %v4937_v12, %v1614_v49  ;;  %v6328_v12 = vstv %s4944_s26  ;;  %s1837_s20 = sadd.s32 48, %s4822_s10 }
 0x22f   :  { %1395 = vst [vmem:[%s6315_s6 + $0x188] sm:$0xff] %v1273_v56  ;;  %vm1964_vm15 = vcmp.eq.s32.totalorder %v4783_v36, %v1963_v23  ;;  %vm5164_vm0 = vcmp.eq.s32.totalorder %v4783_v36, %v6328_v12  ;;  %vm1975_vm8 = vcmp.eq.s32.totalorder %v4783_v36, %v5147_v19  ;;  %v1479_v19 = vadd.f32 %v4934_v10, %v5059_v35 }
 0x230   :  { %1394 = vst [vmem:[%s6315_s6 + $0x180] sm:$0xff] %v1268_v3  ;;  %v3767_v38 = vpop.f32.mrb[50].mxu1  ;;  %v5099_v3 = vmul.f32 %v3315_v41, %v4666_v34  ;;  %v5117_v34 = vmul.f32 %v3323_v54, %v4710_v63  ;;  %v3338_v54 = vsel %vm5133_vm14, 1.0, %v4030_v61  ;;  %v2047_v63 = vstv %s2046_s18  ;;  %s5297_s18 = sld [smem:[#allocation2 + $0x2]] }
 0x231   :  { %v1283_v20 = vadd.f32 %v3767_v38, %v4583_v26  ;;  %v1277_v11 = vpop.f32.mrb[51].mxu1  ;;  %v3306_v38 = vsel %vm5088_vm11, 1.0, %v4030_v61  ;;  %v3332_v17 = vsel %vm1964_vm15, 1.0, %v4030_v61  ;;  %v3314_v16 = vsel %vm5164_vm0, 1.0, %v4030_v61 }
 0x232   :  { %v1278_v30 = vadd.f32 %v4583_v26, %v1277_v11  ;;  %v5142_v11 = vsel %vm1891_vm12, 1.0, %v4030_v61  ;;  %v1698_v41 = vmul.f32 %v3306_v38, %v1696_v29  ;;  %v1780_v49 = vpop.permute.xlu0 %1779  ;;  %v2034_v23 = vmul.f32 %v3338_v54, %v4863_v28 }
 0x233   :  { %1397 = vst [vmem:[%s6315_s6 + $0x198] sm:$0xff] %v1283_v20  ;;  %vm2048_vm6 = vcmp.eq.s32.totalorder %v4783_v36, %v2047_v63  ;;  %v1417_v35 = vstv %s1416_s5 }
 0x234   :  { %1396 = vst [vmem:[%s6315_s6 + $0x190] sm:$0xff] %v1278_v30  ;;  %v3770_v45 = vpop.f32.mrb[52].mxu1  ;;  %v2120_v30 = vstv %s2119_s30  ;;  %v3340_v15 = vsel %vm2048_vm6, 1.0, %v4030_v61  ;;  %v2045_v63 = vadd.f32 %v4950_v57, %v2034_v23  ;;  %v1814_v57 = vmul.f32 %v5107_v0, %v4694_v53  ;;  %s5287_s30 = sld [smem:[#allocation2 + $0x1]] }
 0x235   :  { %v1293_v58 = vadd.f32 %v3770_v45, %v4583_v26  ;;  %v1287_v56 = vpop.f32.mrb[53].mxu1  ;;  %v6326_v45 = vstv %s4827_s13  ;;  %vm2121_vm2 = vcmp.eq.s32.totalorder %v4783_v36, %v2120_v30  ;;  %v1971_v53 = vmul.f32 %v3332_v17, %v4777_v33 }
 0x236   :  { %v1288_v21 = vadd.f32 %v4583_v26, %v1287_v56  ;;  %vm5185_vm3 = vcmp.eq.s32.totalorder %v4783_v36, %v6326_v45  ;;  %v1864_v13 = vpop.permute.xlu0 %1863  ;;  %v3333_v17 = vsel %vm1975_vm8, 1.0, %v4030_v61  ;;  %vm1418_vm12 = vcmp.eq.s32.totalorder %v4783_v36, %v1417_v35  ;;  %s1583_s17 = scalar_lea.vmem %s6315_s6, %s5297_s18 }
 0x237   :  { %1399 = vst [vmem:[%s6315_s6 + $0x1a8] sm:$0xff] %v1293_v58  ;;  %v1857_v58 = vstv %s4885_s8  ;;  %v3354_v30 = vsel %vm5185_vm3, 1.0, %v4030_v61  ;;  %s1835_s8 = scalar_lea.vmem %s6315_s6, %s5267_s25  ;;  %s1921_s25 = sadd.s32 48, %s4959_s11 }
 0x238   :  { %1398 = vst [vmem:[%s6315_s6 + $0x1a0] sm:$0xff] %v1288_v21  ;;  %v3773_v4 = vpop.f32.mrb[54].mxu1  ;;  %v2137_v21 = vpop.permute.xlu1 %2136  ;;  %vm5203_vm4 = vcmp.eq.s32.totalorder %v4783_v36, %v1857_v58  ;;  %s1572_s11 = sadd.s32 4, %s4767_s12  ;;  %s5487_s12 = sld [smem:[#allocation2 + $0x8]] }
 0x239   :  { %v1303_v48 = vadd.f32 %v3773_v4, %v4583_v26  ;;  %v1297_v20 = vpop.f32.mrb[55].mxu1  ;;  %v6329_v4 = vstv %s5036_s22  ;;  %v3322_v25 = vsel %vm5203_vm4, 1.0, %v4030_v61 }
 0x23a   :  { %v1298_v50 = vadd.f32 %v4583_v26, %v1297_v20  ;;  %vm5224_vm5 = vcmp.eq.s32.totalorder %v4783_v36, %v6329_v4  ;;  %v1948_v44 = vpop.permute.xlu0 %1947  ;;  %s1499_s26 = scalar_lea.vmem %s6315_s6, %s5287_s30  ;;  %s2005_s30 = sadd.s32 48, %s4759_s0 }
 0x23b   :  { %1401 = vst [vmem:[%s6315_s6 + $0x1b8] sm:$0xff] %v1303_v48  ;;  %v2131_v48 = vstv %s2130_s1  ;;  %s2225_s1 = sadd.s32 3, %s4827_s13  ;;  %v3330_v20 = vsel %vm5224_vm5, 1.0, %v4030_v61  ;;  %s1585_s13 = sadd.s32 48, %s4751_s29  ;;  %vm5458_vm5 = vcmp.ge.s32.totalorder %v4783_v36, %v1437_v39 }
 0x23c   :  { %1400 = vst [vmem:[%s6315_s6 + $0x1b0] sm:$0xff] %v1298_v50  ;;  %v3776_v56 = vpop.f32.mrb[56].mxu1  ;;  %vm2132_vm7 = vcmp.eq.s32.totalorder %v4783_v36, %v2131_v48  ;;  %v2200_v54 = vpop.permute.xlu1 %2199  ;;  %v2226_v4 = vstv %s2225_s1  ;;  %v1950_v48 = vmul.f32 %v3330_v20, %v1948_v44  ;;  %v1636_v44 = vadd.f32 %v4980_v37, %v5120_v42  ;;  %s5299_s1 = sld [smem:[#allocation2 + $0xa]]  ;;  %s5357_s29 = sld [smem:[#allocation2 + $0x4]] }
 0x23d   :  { %v1313_v29 = vadd.f32 %v3776_v56, %v4583_v26  ;;  %v1307_v38 = vpop.f32.mrb[57].mxu1  ;;  %v5194_v56 = vadd.f32 %v5056_v32, %v1698_v41  ;;  %v3346_v32 = vsel %vm5175_vm1, 1.0, %v4030_v61  ;;  %v3347_v41 = vsel %vm2121_vm2, 1.0, %v4030_v61 }
 0x23e   :  { %v1308_v50 = vadd.f32 %v4583_v26, %v1307_v38  ;;  %v2058_v38 = vstv %s2057_s27  ;;  %v2118_v62 = vmul.f32 %v3346_v32, %v5046_v2  ;;  %v2128_v12 = vmul.f32 %v3347_v41, %v5111_v18  ;;  %s5246_s27 = sld [smem:[#allocation2 + $0x3]] }
 0x23f   :  { %1403 = vst [vmem:[%s6315_s6 + $0x1c8] sm:$0xff] %v1313_v29  ;;  %v2202_v2 = vmul.f32 %v3354_v30, %v2200_v54  ;;  %vm2059_vm9 = vcmp.eq.s32.totalorder %v4783_v36, %v2058_v38  ;;  %v1866_v32 = vmul.f32 %v3322_v25, %v1864_v13  ;;  %vm2227_vm10 = vcmp.eq.s32.totalorder %v4783_v36, %v2226_v4 }
 0x240   :  { %1402 = vst [vmem:[%s6315_s6 + $0x1c0] sm:$0xff] %v1308_v50  ;;  %v3779_v28 = vpop.f32.mrb[58].mxu1  ;;  %v1782_v50 = vmul.f32 %v3314_v16, %v1780_v49  ;;  %v3348_v16 = vsel %vm2132_vm7, 1.0, %v4030_v61  ;;  %v1960_v49 = vmul.f32 %v3331_v40, %v4746_v24  ;;  %v2129_v40 = vadd.f32 %v2128_v12, %v2118_v62 }
 0x241   :  { %v1323_v14 = vadd.f32 %v3779_v28, %v4583_v26  ;;  %v1317_v29 = vpop.f32.mrb[59].mxu1  ;;  %v2139_v13 = vmul.f32 %v3348_v16, %v2137_v21  ;;  %v3341_v25 = vsel %vm2059_vm9, 1.0, %v4030_v61  ;;  %v1877_v37 = vadd.f32 %v5117_v34, %v1866_v32 }
 0x242   :  { %v1318_v45 = vadd.f32 %v4583_v26, %v1317_v29  ;;  %v1793_v24 = vadd.f32 %v5099_v3, %v1782_v50  ;;  %v2232_v3 = vpop.permute.xlu1 %2231  ;;  %v1720_v12 = vadd.f32 %v5079_v51, %v5194_v56  ;;  %v1961_v33 = vadd.f32 %v1960_v49, %v1950_v48  ;;  %s2255_s14 = scalar_lea.vmem %s6315_s6, %s5299_s1  ;;  %s2076_s1 = sadd.s32 4, %s6389_s24 }
 0x243   :  { %1405 = vst [vmem:[%s6315_s6 + $0x1d8] sm:$0xff] %v1323_v14  ;;  %v2066_v4 = vmul.f32 %v3341_v25, %v4987_v27  ;;  %v2140_v51 = vadd.f32 %v2139_v13, %v2129_v40  ;;  %v1898_v56 = vmul.f32 %v5142_v11, %v4726_v7  ;;  %v1670_v30 = vstv %s1669_s7  ;;  %s1753_s7 = sadd.s32 48, %s4861_s23  ;;  %s5379_s23 = sld [smem:[#allocation2 + $0x6]] }
 0x244   :  { %1404 = vst [vmem:[%s6315_s6 + $0x1d0] sm:$0xff] %v1318_v45  ;;  %v3782_v18 = vpop.f32.mrb[60].mxu1  ;;  %v2055_v45 = vmul.f32 %v3340_v15, %v4925_v1  ;;  %v2213_v1 = vadd.f32 %v4972_v22, %v2202_v2  ;;  %v3357_v22 = vsel %vm2227_vm10, 1.0, %v4030_v61  ;;  %v1804_v23 = vadd.f32 %v5102_v6, %v1793_v24  ;;  %s1667_s22 = scalar_lea.vmem %s6315_s6, %s5246_s27 }
 0x245   :  { %v1333_v41 = vadd.f32 %v3782_v18, %v4583_v26  ;;  %v1327_v55 = vpop.f32.mrb[61].mxu1  ;;  %v2234_v6 = vmul.f32 %v3357_v22, %v2232_v3  ;;  %v1972_v54 = vadd.f32 %v1971_v53, %v1961_v33  ;;  %v5345_v10 = vadd.f32 %v5094_v59, %v1720_v12 }
 0x246   :  { %v1328_v28 = vadd.f32 %v4583_v26, %v1327_v55  ;;  %v2056_v21 = vadd.f32 %v2055_v45, %v2045_v63  ;;  %v2224_v27 = vadd.f32 %v5020_v5, %v2213_v1  ;;  %v5342_v5 = vadd.f32 %v5008_v60, %v1636_v44 }
 0x247   :  { %1407 = vst [vmem:[%s6315_s6 + $0x1e8] sm:$0xff] %v1333_v41  ;;  %v1838_v60 = vstv %s1837_s20  ;;  %v1502_v11 = vstv %s1501_s4  ;;  %v5368_v14 = vstv %s2173_s21  ;;  %vm1671_vm11 = vcmp.eq.s32.totalorder %v4783_v36, %v1670_v30 }
 0x248   :  { %1406 = vst [vmem:[%s6315_s6 + $0x1e0] sm:$0xff] %v1328_v28  ;;  %v3785_v62 = vpop.f32.mrb[62].mxu1  ;;  %v5352_v7 = vadd.f32 %v2066_v4, %v2056_v21  ;;  %v5362_v59 = vadd.f32 %v2234_v6, %v2224_v27  ;;  %v5377_v38 = vstv %s2257_s19  ;;  %vm1839_vm14 = vcmp.eq.s32.totalorder %v4783_v36, %v1838_v60  ;;  %s2171_s19 = scalar_lea.vmem %s6315_s6, %s5289_s16  ;;  %s6381_s16 = sld [smem:[#allocation12_spill]] }
 0x249   :  { %v1343_v0 = vadd.f32 %v3785_v62, %v4583_v26  ;;  %v1337_v42 = vpop.f32.mrb[63].mxu1  ;;  %v5383_v50 = vstv %s1753_s7  ;;  %vm1503_vm15 = vcmp.eq.s32.totalorder %v4783_v36, %v1502_v11  ;;  %s6380_s7 = sld [smem:[#allocation13_spill]]  ;;  %vm2175_vm0 = vcmp.eq.s32.totalorder %v4783_v36, %v5368_v14 }
 0x24a   :  { %v1338_v34 = vadd.f32 %v4583_v26, %v1337_v42  ;;  %v5325_v26 = vadd.f32 %v4993_v47, %v4974_v31  ;;  %v1982_v31 = vmul.f32 %v3333_v17, %v4810_v52  ;;  %v1888_v47 = vadd.f32 %v5028_v8, %v1877_v37 }
 0x24b   :  { %1409 = vst [vmem:[%s6315_s6 + $0x1f8] sm:$0xff] %v1343_v0  ;;  %v5355_v52 = vadd.f32 %v4931_v9, %v2140_v51  ;;  %v5360_v8 = vadd.f32 %v1814_v57, %v1804_v23  ;;  %v5370_v9 = vstv %s1585_s13  ;;  %v5410_v18 = vstv %s1921_s25  ;;  %s5443_s25 = sld [smem:[#allocation2 + $0x7]]  ;;  %s1751_s13 = scalar_lea.vmem %s6315_s6, %s5357_s29 }
 0x24c   :  { %1408 = vst [vmem:[%s6315_s6 + $0x1f0] sm:$0xff] %v1338_v34  ;;  %v5375_v29 = vadd.f32 %v1898_v56, %v1888_v47  ;;  %v5386_v20 = vadd.f32 %v1982_v31, %v1972_v54  ;;  %vm1587_vm1 = vcmp.eq.s32.totalorder %v4783_v36, %v5370_v9  ;;  %vm2259_vm2 = vcmp.eq.s32.totalorder %v4783_v36, %v5377_v38 }
 0x24d   :  { %vm1755_vm3 = vcmp.eq.s32.totalorder %v4783_v36, %v5383_v50  ;;  %v5431_v28 = vstv %s1488_s3  ;;  %vm1923_vm4 = vcmp.eq.s32.totalorder %v4783_v36, %v5410_v18  ;;  %v5441_v40 = vstv %s1572_s11  ;;  %s6384_s3 = sld [smem:[#allocation14_spill]] }
 0x24e   :  { %v5447_v13 = vstv %s2005_s30  ;;  %s1908_s20 = sadd.s32 4, %s6381_s16  ;;  %vm1490_vm6 = vcmp.lt.s32.totalorder %v4783_v36, %v5431_v28  ;;  %vm5473_vm7 = vcmp.ge.s32.totalorder %v4783_v36, %v1521_v43  ;;  %vm1574_vm8 = vcmp.lt.s32.totalorder %v4783_v36, %v5441_v40  ;;  %s3375_s30 = sld [smem:[#allocation2 + $0xc]] }
 0x24f   :  { %s1740_s18 = sadd.s32 4, %s6380_s7  ;;  %vm2007_vm9 = vcmp.eq.s32.totalorder %v4783_v36, %v5447_v13  ;;  %v5489_v43 = vstv %s1908_s20  ;;  %vm5513_vm10 = vcmp.ge.s32.totalorder %v4783_v36, %v1689_v46  ;;  %v6440_v54 = vmov 1   ;;  %s3367_s20 = sld [smem:[#allocation2 + $0xb]] }
 0x250   :  { %v5477_v39 = vstv %s1740_s18  ;;  %s5860_s16 = sshll.u32 %s5269_s15, 2  ;;  %s5980_s7 = sld [smem:[#allocation2 + $0x2d]] }
 0x251   :  { %s2003_s27 = scalar_lea.vmem %s6315_s6, %s5443_s25  ;;  %s6438_s25 = sld [smem:[#allocation16_spill]] }
 0x252   :  { %s2298_s15 = sadd.s32 2, %s5860_s16 }
 0x253   :  { %v1668_v15 = vld [vmem:[%s1667_s22] sm:$0x1]  ;;  %s1824_s29 = sadd.s32 4, %s6384_s3  ;;  %s1919_s22 = scalar_lea.vmem %s6315_s6, %s5379_s23 }
 0x254   :  { %v1415_v16 = vld [vmem:[%s1414_s2] sm:$0x1]  ;;  %v1672_v49 = vsel %vm1671_vm11, %v1668_v15, 0.0  ;;  %s2089_s2 = sadd.s32 48, %s4749_s28  ;;  %s6383_s28 = sld [smem:[#allocation15_spill]]  ;;  %v5466_v37 = vsub.f32 %v1668_v15, %v5345_v10  ;;  %vm1742_vm11 = vcmp.lt.s32.totalorder %v4783_v36, %v5477_v39  ;;  %v5521_v27 = vstv %s1824_s29 }
 0x255   :  { %v5399_v2 = vld [vmem:[%s1835_s8] sm:$0x1]  ;;  %v1419_v32 = vsel %vm1418_vm12, %v1415_v16, 0.0  ;;  %v1480_v41 = vsub.f32 %v1415_v16, %v1479_v19  ;;  %v1673_v63 = vsel %vm1420_vm13, %v1672_v49, 0.0  ;;  %v5462_v53 = vstv %s2089_s2  ;;  %s2087_s2 = scalar_lea.vmem %s6315_s6, %s5487_s12  ;;  %s6413_s8 = sld [smem:[#allocation11_spill]] }
 0x256   :  { %v1500_v55 = vld [vmem:[%s1499_s26] sm:$0x1]  ;;  %v1421_v48 = vsel %vm1420_vm13, %v1419_v32, 0.0  ;;  %1674 = vadd.xlane.f32.xlu1 %v1673_v63  ;;  %s6382_s26 = sld [smem:[#allocation9_spill]]  ;;  %v1840_v45 = vsel %vm1839_vm14, %v5399_v2, 0.0  ;;  %v1735_v6 = vmul.f32 0.5, %v5466_v37  ;;  %v5526_v19 = vsub.f32 %v5399_v2, %v5375_v29 }
 0x257   :  { %1422 = vadd.xlane.f32.xlu0 %v1421_v48  ;;  %v1504_v24 = vsel %vm1503_vm15, %v1500_v55, 0.0  ;;  %v1483_v57 = vmul.f32 0.5, %v1480_v41  ;;  %v1564_v44 = vsub.f32 %v1500_v55, %v5325_v26  ;;  %v2172_v25 = vld [vmem:[%s2171_s19] sm:$0x1]  ;;  %v1841_v22 = vsel %vm1420_vm13, %v1840_v45, 0.0  ;;  %vm5559_vm15 = vmand %vm5458_vm5, %vm1490_vm6  ;;  %s5797_s12 = sld [smem:[#allocation2 + $0x1c]]  ;;  %s2423_s19 = scalar_lea.vmem %s6315_s6, %s3375_s30 }
 0x258   :  { %v1584_v1 = vld [vmem:[%s1583_s17] sm:$0x1]  ;;  %v1505_v0 = vsel %vm1420_vm13, %v1504_v24, 0.0  ;;  %v2176_v12 = vsel %vm2175_vm0, %v2172_v25, 0.0  ;;  %v1481_v4 = vand.u32 2147483647, %v1480_v41  ;;  %v5529_v56 = vsub.f32 %v2172_v25, %v5362_v59 }
 0x259   :  { %v1567_v42 = vmul.f32 0.5, %v1564_v44  ;;  %v1588_v17 = vsel %vm1587_vm1, %v1584_v1, 0.0  ;;  %v5504_v34 = vld [vmem:[%s2255_s14] sm:$0x1]  ;;  %v1484_v23 = vmul.f32 %v1483_v57, %v1480_v41  ;;  %v1565_v46 = vand.u32 2147483647, %v1564_v44 }
 0x25a   :  { %s1992_s9 = sadd.s32 4, %s6383_s28  ;;  %1842 = vadd.xlane.f32.xlu1 %v1841_v22  ;;  %v1752_v21 = vld [vmem:[%s1751_s13] sm:$0x1]  ;;  %v2177_v31 = vsel %vm1420_vm13, %v2176_v12, 0.0  ;;  %v1589_v47 = vsel %vm1420_vm13, %v1588_v17, 0.0  ;;  %vm5533_vm12 = vcmp.lt.f32.partialorder %v1481_v4, 1.0  ;;  %vm2091_vm14 = vcmp.eq.s32.totalorder %v4783_v36, %v5462_v53 }
 0x25b   :  { %1506 = vadd.xlane.f32.xlu0 %v1505_v0  ;;  %v5519_v26 = vstv %s1992_s9  ;;  %v3286_v30 = vadd.f32 -0.5, %v1481_v4  ;;  %v2260_v10 = vsel %vm2259_vm2, %v5504_v34, 0.0  ;;  %v1756_v35 = vsel %vm1755_vm3, %v1752_v21, 0.0  ;;  %v1920_v60 = vld [vmem:[%s1919_s22] sm:$0x1]  ;;  %s2244_s5 = sadd.s32 4, %s6413_s8 }
 0x25c   :  { %s1656_s0 = sadd.s32 4, %s6382_s26  ;;  %v1568_v59 = vmul.f32 %v1567_v42, %v1564_v44  ;;  %v3294_v11 = vadd.f32 -0.5, %v1565_v46  ;;  %v1648_v14 = vsub.f32 %v1584_v1, %v5342_v5  ;;  %vm5563_vm0 = vcmp.lt.f32.partialorder %v1565_v46, 1.0  ;;  %v2004_v48 = vld [vmem:[%s2003_s27] sm:$0x1]  ;;  %s6424_s14 = sld [smem:[#allocation8_spill]] }
 0x25d   :  { %v5497_v33 = vstv %s1656_s0  ;;  %v1486_v9 = vsel %vm5533_vm12, %v1484_v23, %v3286_v30  ;;  %v1733_v50 = vand.u32 2147483647, %v5466_v37  ;;  %vm5571_vm1 = vcmp.ge.s32.totalorder %v4783_v36, %v1857_v58  ;;  %v2088_v42 = vld [vmem:[%s2087_s2] sm:$0x1]  ;;  %s2339_s0 = scalar_lea.vmem %s6315_s6, %s3367_s20  ;;  %s2425_s11 = sadd.s32 48, %s5797_s12 }
 0x25e   :  { %2178 = vadd.xlane.f32.xlu1 %v2177_v31  ;;  %vm1910_vm2 = vcmp.lt.s32.totalorder %v4783_v36, %v5489_v43  ;;  %v1903_v15 = vmul.f32 0.5, %v5526_v19  ;;  %v5579_v16 = vmul.f32 0.5, %v5529_v56  ;;  %v1816_v2 = vsub.f32 %v1752_v21, %v5360_v8  ;;  %s2287_s2 = sadd.s32 1, %s5860_s16  ;;  %s3409_s9 = sld [smem:[#allocation2 + $0x21]] }
 0x25f   :  { %1590 = vadd.xlane.f32.xlu0 %v1589_v47  ;;  %v6400_v49 = vstv %s6382_s26  ;;  %vm1658_vm5 = vcmp.lt.s32.totalorder %v4783_v36, %v5497_v33  ;;  %v5591_v58 = vstv %s2076_s1  ;;  %v2261_v41 = vsel %vm1420_vm13, %v2260_v10, 0.0  ;;  %s3408_s26 = sld [smem:[#allocation2 + $0x30]]  ;;  %s3414_s30 = sld [smem:[#allocation2 + $0x33]] }
 0x260   :  { %vm5585_vm3 = vcmp.ge.s32.totalorder %v4783_v36, %v6400_v49  ;;  %v1757_v55 = vsel %vm1420_vm13, %v1756_v35, 0.0  ;;  %v1924_v8 = vsel %vm1923_vm4, %v1920_v60, 0.0  ;;  %v1984_v63 = vsub.f32 %v1920_v60, %v5386_v20  ;;  %vm5612_vm4 = vmand %vm5473_vm7, %vm1574_vm8  ;;  %s3418_s1 = sld [smem:[#allocation2 + $0x35]]  ;;  %s5956_s13 = sld [smem:[#allocation2 + $0x29]] }
 0x261   :  { %v1492_v28 = vsel %vm5559_vm15, %v1486_v9, 0.0  ;;  %v1570_v45 = vsel %vm5563_vm0, %v1568_v59, %v3294_v11  ;;  %v1736_v18 = vmul.f32 %v1735_v6, %v5466_v37  ;;  %v3310_v24 = vadd.f32 -0.5, %v1733_v50  ;;  %vm1659_vm0 = vmand %vm5585_vm3, %vm1658_vm5  ;;  %v5803_v11 = vld [vmem:[%s2423_s19] sm:$0x1]  ;;  %s3413_s19 = sld [smem:[#allocation2 + $0x23]]  ;;  %s3417_s17 = sld [smem:[#allocation2 + $0x25]] }
 0x262   :  { %2262 = vadd.xlane.f32.xlu1 %v2261_v41  ;;  %v1651_v57 = vmul.f32 0.5, %v1648_v14  ;;  %vm5617_vm6 = vcmp.lt.f32.partialorder %v1733_v50, 1.0  ;;  %v1901_v25 = vand.u32 2147483647, %v5526_v19  ;;  %v1649_v1 = vand.u32 2147483647, %v1648_v14 }
 0x263   :  { %1758 = vadd.xlane.f32.xlu0 %v1757_v55  ;;  %v6407_v62 = vstv %s6383_s28  ;;  %vm1994_vm7 = vcmp.lt.s32.totalorder %v4783_v36, %v5519_v26  ;;  %v1819_v3 = vmul.f32 0.5, %v1816_v2  ;;  %v1925_v37 = vsel %vm1420_vm13, %v1924_v8, 0.0  ;;  %s2160_s18 = sadd.s32 4, %s6424_s14  ;;  %s3407_s28 = sld [smem:[#allocation2 + $0x20]] }
 0x264   :  { %vm5625_vm12 = vcmp.ge.s32.totalorder %v4783_v36, %v6407_v62  ;;  %v2008_v22 = vsel %vm2007_vm9, %v2004_v48, 0.0  ;;  %v2068_v0 = vsub.f32 %v2004_v48, %v5352_v7  ;;  %v6410_v12 = vstv %s6384_s3  ;;  %vm1743_vm9 = vmand %vm5513_vm10, %vm1742_vm11  ;;  %s5778_s3 = sld [smem:[#allocation2 + $0x1b]]  ;;  %s2780_s27 = scalar_lea.vmem %s6315_s6, %s3409_s9 }
 0x265   :  { %vm5639_vm8 = vcmp.ge.s32.totalorder %v4783_v36, %v6410_v12  ;;  %v1493_v21 = vsel %vm1420_vm13, %v1492_v28, 0.0  ;;  %v1987_v4 = vmul.f32 0.5, %v1984_v63  ;;  %v1576_v23 = vsel %vm5612_vm4, %v1570_v45, 0.0  ;;  %vm5718_vm5 = vmand %vm5625_vm12, %vm1994_vm7  ;;  %s2761_s29 = sadd.s32 48, %s3408_s26  ;;  %s5960_s9 = sld [smem:[#allocation2 + $0x3b]] }
 0x266   :  { %v1985_v6 = vand.u32 2147483647, %v1984_v63  ;;  %1494 = vadd.xlane.f32.xlu1 %v1493_v21  ;;  %v1738_v13 = vsel %vm5617_vm6, %v1736_v18, %v3310_v24  ;;  %v1904_v7 = vmul.f32 %v1903_v15, %v5526_v19  ;;  %v3326_v46 = vadd.f32 -0.5, %v1901_v25  ;;  %s2866_s26 = sadd.s32 48, %s3418_s1  ;;  %s2948_s23 = scalar_lea.vmem %s6315_s6, %s5956_s13 }
 0x267   :  { %1926 = vadd.xlane.f32.xlu0 %v1925_v37  ;;  %v1817_v31 = vand.u32 2147483647, %v1816_v2  ;;  %v2009_v47 = vsel %vm1420_vm13, %v2008_v22, 0.0  ;;  %vm5655_vm15 = vcmp.lt.f32.partialorder %v1901_v25, 1.0  ;;  %v1652_v30 = vmul.f32 %v1651_v57, %v1648_v14  ;;  %s2864_s21 = scalar_lea.vmem %s6315_s6, %s3417_s17  ;;  %s3438_s17 = sld [smem:[#allocation2 + $0x3f]] }
 0x268   :  { %v3302_v10 = vadd.f32 -0.5, %v1649_v1  ;;  %v2071_v35 = vmul.f32 0.5, %v2068_v0  ;;  %v2092_v39 = vsel %vm2091_vm14, %v2088_v42, 0.0  ;;  %v2152_v51 = vsub.f32 %v2088_v42, %v5355_v52  ;;  %vm5680_vm14 = vmand %vm5571_vm1, %vm1910_vm2  ;;  %s3383_s1 = sld [smem:[#allocation2 + $0xd]] }
 0x269   :  { %vm5663_vm10 = vcmp.lt.f32.partialorder %v1649_v1, 1.0  ;;  %v1577_v19 = vsel %vm1420_vm13, %v1576_v23, 0.0  ;;  %v1744_v59 = vsel %vm1743_vm9, %v1738_v13, 0.0  ;;  %vm5668_vm11 = vcmp.lt.f32.partialorder %v1985_v6, 1.0  ;;  %s2759_s10 = scalar_lea.vmem %s6315_s6, %s3407_s28  ;;  %s5950_s28 = sld [smem:[#allocation2 + $0x39]] }
 0x26a   :  { %v1988_v14 = vmul.f32 %v1987_v4, %v1984_v63  ;;  %1578 = vadd.xlane.f32.xlu1 %v1577_v19  ;;  %v1906_v53 = vsel %vm5655_vm15, %v1904_v7, %v3326_v46  ;;  %v3334_v9 = vadd.f32 -0.5, %v1985_v6  ;;  %v1820_v29 = vmul.f32 %v1819_v3, %v1816_v2  ;;  %s2341_s4 = sadd.s32 48, %s5778_s3  ;;  %v5793_v19 = vld [vmem:[%s6438_s25 + $0xb] sm:$0x1] }
 0x26b   :  { %2010 = vadd.xlane.f32.xlu0 %v2009_v47  ;;  %v3318_v38 = vadd.f32 -0.5, %v1817_v31  ;;  %v1654_v50 = vsel %vm5663_vm10, %v1652_v30, %v3302_v10  ;;  %vm5691_vm4 = vcmp.lt.f32.partialorder %v1817_v31, 1.0  ;;  %v2069_v5 = vand.u32 2147483647, %v2068_v0  ;;  %v2276_v31 = vld [vmem:[%s6438_s25 + $0xa] sm:$0x1] }
 0x26c   :  { %v2237_v15 = vand.u32 2147483647, %v5529_v56  ;;  %vm1826_vm1 = vcmp.lt.s32.totalorder %v4783_v36, %v5521_v27  ;;  %v6425_v2 = vstv %s6389_s24  ;;  %vm2078_vm3 = vcmp.lt.s32.totalorder %v4783_v36, %v5591_v58  ;;  %s5967_s24 = sld [smem:[#allocation2 + $0x2b]] }
 0x26d   :  { %vm5701_vm2 = vcmp.ge.s32.totalorder %v4783_v36, %v6425_v2  ;;  %v2245_v33 = vstv %s2244_s5  ;;  %v1745_v32 = vsel %vm1420_vm13, %v1744_v59, 0.0  ;;  %v2093_v41 = vsel %vm1420_vm13, %v2092_v39, 0.0  ;;  %vm1827_vm6 = vmand %vm5639_vm8, %vm1826_vm1  ;;  %v5785_v39 = vld [vmem:[%s2339_s0] sm:$0x1]  ;;  %s2328_s5 = sadd.s32 4, %s5860_s16 }
 0x26e   :  { %v2155_v55 = vmul.f32 0.5, %v2152_v51  ;;  %v1912_v8 = vsel %vm5680_vm14, %v1906_v53, 0.0  ;;  %1746 = vadd.xlane.f32.xlu1 %v1745_v32  ;;  %v1660_v63 = vsel %vm1659_vm0, %v1654_v50, 0.0  ;;  %v1990_v48 = vsel %vm5668_vm11, %v1988_v14, %v3334_v9  ;;  %vm2079_vm15 = vmand %vm5701_vm2, %vm2078_vm3 }
 0x26f   :  { %2094 = vadd.xlane.f32.xlu0 %v2093_v41  ;;  %v1822_v45 = vsel %vm5691_vm4, %v1820_v29, %v3318_v38  ;;  %v2072_v20 = vmul.f32 %v2071_v35, %v2068_v0  ;;  %v3342_v18 = vadd.f32 -0.5, %v2069_v5  ;;  %v2240_v26 = vmul.f32 %v5579_v16, %v5529_v56 }
 0x270   :  { %v3358_v24 = vadd.f32 -0.5, %v2237_v15  ;;  %v2153_v57 = vand.u32 2147483647, %v2152_v51  ;;  %vm5732_vm12 = vcmp.lt.f32.partialorder %v2069_v5, 1.0  ;;  %vm5736_vm7 = vcmp.lt.f32.partialorder %v2237_v15, 1.0 }
 0x271   :  { %v6434_v1 = vstv %s6413_s8  ;;  %vm2246_vm8 = vcmp.lt.s32.totalorder %v4783_v36, %v2245_v33  ;;  %v1913_v27 = vsel %vm1420_vm13, %v1912_v8, 0.0  ;;  %v1661_v56 = vsel %vm1420_vm13, %v1660_v63, 0.0  ;;  %s2309_s8 = sadd.s32 3, %s5860_s16 }
 0x272   :  { %vm2243_vm9 = vcmp.ge.s32.totalorder %v4783_v36, %v6434_v1  ;;  %v2161_v16 = vstv %s2160_s18  ;;  %1914 = vadd.xlane.f32.xlu1 %v1913_v27  ;;  %v1996_v62 = vsel %vm5718_vm5, %v1990_v48, 0.0  ;;  %v1828_v40 = vsel %vm1827_vm6, %v1822_v45, 0.0  ;;  %s3391_s18 = sld [smem:[#allocation2 + $0xe]] }
 0x273   :  { %1662 = vadd.xlane.f32.xlu0 %v1661_v56  ;;  %v2074_v3 = vsel %vm5732_vm12, %v2072_v20, %v3342_v18  ;;  %v2242_v37 = vsel %vm5736_vm7, %v2240_v26, %v3358_v24  ;;  %vm2247_vm10 = vmand %vm2243_vm9, %vm2246_vm8  ;;  %v2156_v22 = vmul.f32 %v2155_v55, %v2152_v51  ;;  %v3350_v0 = vadd.f32 -0.5, %v2153_v57 }
 0x274   :  { %vm5757_vm11 = vcmp.lt.f32.partialorder %v2153_v57, 1.0  ;;  %v6437_v12 = vstv %s6424_s14  ;;  %vm2162_vm0 = vcmp.lt.s32.totalorder %v4783_v36, %v2161_v16  ;;  %v1997_v58 = vsel %vm1420_vm13, %v1996_v62, 0.0  ;;  %s5915_s14 = sld [smem:[#allocation2 + $0x1e]] }
 0x275   :  { %vm2159_vm14 = vcmp.ge.s32.totalorder %v4783_v36, %v6437_v12  ;;  %v1829_v17 = vsel %vm1420_vm13, %v1828_v40, 0.0  ;;  %v2080_v21 = vsel %vm2079_vm15, %v2074_v3, 0.0  ;;  %v2248_v4 = vsel %vm2247_vm10, %v2242_v37, 0.0 }
 0x276   :  { %1998 = vadd.xlane.f32.xlu1 %v1997_v58  ;;  %v2158_v23 = vsel %vm5757_vm11, %v2156_v22, %v3350_v0  ;;  %vm2163_vm4 = vmand %vm2159_vm14, %vm2162_vm0  ;;  %v2081_v6 = vsel %vm1420_vm13, %v2080_v21, 0.0  ;;  %v2249_v13 = vsel %vm1420_vm13, %v2248_v4, 0.0  ;;  %v6439_v47 = vmov 2   ;;  %v5840_v21 = vld [vmem:[%s6438_s25 + $0xc] sm:$0x1] }
 0x277   :  { %1830 = vadd.xlane.f32.xlu0 %v1829_v17  ;;  %v2164_v7 = vsel %vm2163_vm4, %v2158_v23, 0.0  ;;  %v6441_v30 = vmov 3   ;;  %v6442_v10 = vmov 0   ;;  %v2342_v35 = vstv %s2341_s4  ;;  %s3410_s4 = sld [smem:[#allocation2 + $0x31]] }
 0x278   :  { %v2165_v46 = vsel %vm1420_vm13, %v2164_v7, 0.0  ;;  %vm2343_vm1 = vcmp.eq.s32.totalorder %v4783_v36, %v2342_v35  ;;  %v2426_v59 = vstv %s2425_s11  ;;  %s2591_s0 = scalar_lea.vmem %s6315_s6, %s3391_s18  ;;  %s5947_s18 = sld [smem:[#allocation2 + $0x27]] }
 0x279   :  { %v2344_v51 = vsel %vm2343_vm1, %v5785_v39, 0.0  ;;  %vm2427_vm2 = vcmp.eq.s32.totalorder %v4783_v36, %v2426_v59 }
 0x27a   :  { %2082 = vadd.xlane.f32.xlu1 %v2081_v6  ;;  %v2345_v60 = vsel %vm1420_vm13, %v2344_v51, 0.0  ;;  %v2428_v14 = vsel %vm2427_vm2, %v5803_v11, 0.0  ;;  %s2593_s20 = sadd.s32 48, %s5915_s14 }
 0x27b   :  { %2250 = vadd.xlane.f32.xlu0 %v2249_v13  ;;  %v2429_v9 = vsel %vm1420_vm13, %v2428_v14, 0.0  ;;  %v5850_v14 = vld [vmem:[%s6438_s25 + $0xd] sm:$0x1] }
 0x27d   :  { %s2782_s22 = sadd.s32 48, %s3410_s4 }
 0x27e   :  { %2166 = vadd.xlane.f32.xlu1 %v2165_v46  ;;  %s2906_s11 = scalar_lea.vmem %s6315_s6, %s5947_s18  ;;  %s3411_s18 = sld [smem:[#allocation2 + $0x22]] }
 0x28f   :  { %2293 = vperm.xlu1 %3839, %v2276_v31  }
 0x291   :  { %2283 = vperm.xlu0 %3837, %v2276_v31  }
 0x293   :  { %3840 = vset.pattern.permute.xlu1 %v6439_v47 }
 0x294   :  { %2304 = vperm.xlu1 %3840, %v2276_v31  }
 0x295   :  { %3843 = vset.pattern.permute.xlu0 %v6440_v54 }
 0x298   :  { %3841 = vset.pattern.permute.xlu1 %v6441_v30 }
 0x299   :  { %2315 = vperm.xlu1 %3841, %v2276_v31  }
 0x29d   :  { %3842 = vset.pattern.permute.xlu1 %v6442_v10 }
 0x2b0   :  { %2346 = vadd.xlane.f32.xlu0 %v2345_v60 }
 0x2c6   :  { %2377 = vperm.xlu0 %3843, %v5793_v19  }
 0x2ca   :  { %3848 = vset.pattern.permute.xlu0 %v6439_v47 }
 0x2e3   :  { %v5807_v53 = vpop.xlane.xlu1 %1674 }
 0x2e4   :  { %v5809_v52 = vpop.xlane.xlu0 %1422  ;;  %v1678_v29 = vand.u32 2147483647, %v5807_v53 }
 0x2e5   :  { %v1426_v38 = vand.u32 2147483647, %v5809_v52  ;;  %2430 = vadd.xlane.f32.xlu0 %v2429_v9 }
 0x2e6   :  { %v1679_v50 = vsub.f32 0.0, %v1678_v29 }
 0x2e7   :  { %v1427_v43 = vsub.f32 0.0, %v1426_v38  ;;  %v5814_v5 = vpop.xlane.xlu1 %1842 }
 0x2e8   :  { %v5816_v15 = vpop.xlane.xlu0 %1506  ;;  %v1680_v49 = vmul.f32 1.442695, %v1679_v50  ;;  %v1846_v33 = vand.u32 2147483647, %v5814_v5 }
 0x2e9   :  { %v1428_v2 = vmul.f32 1.442695, %v1427_v43  ;;  %v1510_v32 = vand.u32 2147483647, %v5816_v15 }
 0x2ea   :  { %v1847_v63 = vsub.f32 0.0, %v1846_v33 }
 0x2eb   :  { %3859 = vpow2.f32 %v1428_v2  ;;  %v1511_v41 = vsub.f32 0.0, %v1510_v32  ;;  %v5820_v55 = vpop.xlane.xlu1 %2178 }
 0x2ec   :  { %v5822_v8 = vpop.xlane.xlu0 %1590  ;;  %v2182_v48 = vand.u32 2147483647, %v5820_v55  ;;  %3861 = vpow2.f32 %v1680_v49  ;;  %v1848_v24 = vmul.f32 1.442695, %v1847_v63 }
 0x2ed   :  { %v1594_v28 = vand.u32 2147483647, %v5822_v8  ;;  %v1512_v45 = vmul.f32 1.442695, %v1511_v41  ;;  %v5857_v41 = vld [vmem:[%s6438_s25 + $0xe] sm:$0x1] }
 0x2ee   :  { %v2183_v57 = vsub.f32 0.0, %v2182_v48 }
 0x2ef   :  { %v1595_v20 = vsub.f32 0.0, %v1594_v28  ;;  %v5826_v18 = vpop.xlane.xlu1 %2262  ;;  %3863 = vpow2.f32 %v1512_v45 }
 0x2f0   :  { %v5828_v26 = vpop.xlane.xlu0 %1758  ;;  %v2266_v25 = vand.u32 2147483647, %v5826_v18  ;;  %v2184_v62 = vmul.f32 1.442695, %v2183_v57 }
 0x2f1   :  { %v1596_v44 = vmul.f32 1.442695, %v1595_v20  ;;  %v1762_v1 = vand.u32 2147483647, %v5828_v26  ;;  %v1424_v20 = vmax.f32 %v5809_v52, 0.0 }
 0x2f2   :  { %v2267_v40 = vsub.f32 0.0, %v2266_v25 }
 0x2f3   :  { %3865 = vpow2.f32 %v1596_v44  ;;  %v1763_v27 = vsub.f32 0.0, %v1762_v1  ;;  %v1495_v56 = vpop.xlane.xlu1 %1494 }
 0x2f4   :  { %v5832_v16 = vpop.xlane.xlu0 %1926  ;;  %3867 = vpow2.f32 %v1848_v24  ;;  %v2268_v4 = vmul.f32 1.442695, %v2267_v40  ;;  %v1508_v24 = vmax.f32 %v5816_v15, 0.0 }
 0x2f5   :  { %v1930_v3 = vand.u32 2147483647, %v5832_v16  ;;  %v3860_v37 = vpop.eup %3859  ;;  %v1764_v0 = vmul.f32 1.442695, %v1763_v27  ;;  %3869 = vpow2.f32 %v2184_v62  ;;  %v2277_v62 = vstv %s5860_s16  ;;  %s2824_s16 = sadd.s32 48, %s3414_s30 }
 0x2f6   :  { %v1430_v22 = vadd.f32 1.0, %v3860_v37  ;;  %v3862_v12 = vpop.eup %3861  ;;  %vm5877_vm3 = vcmp.eq.s32.totalorder %v4783_v36, %v2277_v62  ;;  %vm2327_vm7 = vcmp.ge.s32.totalorder %v4783_v36, %v2277_v62 }
 0x2f7   :  { %v1931_v42 = vsub.f32 0.0, %v1930_v3  ;;  %v1579_v58 = vpop.xlane.xlu1 %1578  ;;  %v1682_v46 = vadd.f32 1.0, %v3862_v12  ;;  %v1425_v12 = vsub.f32 %v1424_v20, %v5809_v52 }
 0x2f8   :  { %v5835_v17 = vpop.xlane.xlu0 %2010  ;;  %v1580_v6 = vadd.f32 %v1579_v58, %v1495_v56  ;;  %3871 = vlog2.f32 %v1430_v22  ;;  %v1509_v58 = vsub.f32 %v1508_v24, %v5816_v15 }
 0x2f9   :  { %v1932_v23 = vmul.f32 1.442695, %v1931_v42  ;;  %v2014_v13 = vand.u32 2147483647, %v5835_v17  ;;  %v3864_v7 = vpop.eup %3863  ;;  %3873 = vpow2.f32 %v1764_v0  ;;  %v2288_v0 = vstv %s2287_s2  ;;  %s3422_s2 = sld [smem:[#allocation2 + $0x37]] }
 0x2fa   :  { %v1514_v31 = vadd.f32 1.0, %v3864_v7  ;;  %vm2289_vm5 = vcmp.eq.s32.totalorder %v4783_v36, %v2288_v0 }
 0x2fb   :  { %2472 = vperm.xlu0 %3848, %v5840_v21   ;;  %3875 = vpow2.f32 %v1932_v23  ;;  %v2015_v35 = vsub.f32 0.0, %v2014_v13  ;;  %v1747_v51 = vpop.xlane.xlu1 %1746 }
 0x2fc   :  { %v5844_v60 = vpop.xlane.xlu0 %2094  ;;  %3877 = vpow2.f32 %v2268_v4  ;;  %v1592_v4 = vmax.f32 %v5822_v8, 0.0 }
 0x2fd   :  { %v2098_v59 = vand.u32 2147483647, %v5844_v60  ;;  %v3866_v9 = vpop.eup %3865  ;;  %3879 = vlog2.f32 %v1514_v31  ;;  %v2016_v29 = vmul.f32 1.442695, %v2015_v35  ;;  %v1676_v31 = vmax.f32 %v5807_v53, 0.0 }
 0x2fe   :  { %v3868_v38 = vpop.eup %3867  ;;  %3881 = vlog2.f32 %v1682_v46  ;;  %v1598_v50 = vadd.f32 1.0, %v3866_v9 }
 0x2ff   :  { %v2099_v43 = vsub.f32 0.0, %v2098_v59  ;;  %3850 = vset.pattern.permute.xlu0 %v6442_v10  ;;  %v1915_v2 = vpop.xlane.xlu1 %1914  ;;  %v1850_v63 = vadd.f32 1.0, %v3868_v38  ;;  %v3870_v48 = vpop.eup %3869 }
 0x300   :  { %2535 = vperm.xlu0 %3850, %v5850_v14   ;;  %v1663_v49 = vpop.xlane.xlu0 %1662  ;;  %3883 = vlog2.f32 %v1598_v50  ;;  %v2186_v7 = vadd.f32 1.0, %v3870_v48 }
 0x301   :  { %v2100_v33 = vmul.f32 1.442695, %v2099_v43  ;;  %v1664_v32 = vadd.f32 %v1663_v49, %v1580_v6  ;;  %3885 = vpow2.f32 %v2016_v29  ;;  %v2299_v29 = vstv %s2298_s15  ;;  %s2990_s15 = scalar_lea.vmem %s6315_s6, %s5967_s24 }
 0x302   :  { %v3872_v45 = vpop.eup %3871  ;;  %v1593_v43 = vsub.f32 %v1592_v4, %v5822_v8  ;;  %v1760_v8 = vmax.f32 %v5828_v26, 0.0  ;;  %vm2300_vm6 = vcmp.eq.s32.totalorder %v4783_v36, %v2299_v29 }
 0x303   :  { %3887 = vpow2.f32 %v2100_v33  ;;  %v1748_v28 = vadd.f32 %v1747_v51, %v1664_v32  ;;  %v1999_v57 = vpop.xlane.xlu1 %1998  ;;  %v3874_v25 = vpop.eup %3873  ;;  %v1432_v3 = vmul.f32 0.6931472, %v3872_v45  ;;  %v1677_v45 = vsub.f32 %v1676_v31, %v5807_v53 }
 0x304   :  { %2619 = vperm.xlu0 %3850, %v5857_v41   ;;  %v1831_v44 = vpop.xlane.xlu0 %1830  ;;  %3889 = vlog2.f32 %v1850_v63  ;;  %v1766_v56 = vadd.f32 1.0, %v3874_v25  ;;  %v1928_v53 = vmax.f32 %v5832_v16, 0.0  ;;  %v1761_v0 = vsub.f32 %v1760_v8, %v5828_v26 }
 0x305   :  { %v1832_v1 = vadd.f32 %v1831_v44, %v1748_v28  ;;  %v3876_v27 = vpop.eup %3875  ;;  %v1433_v51 = vadd.f32 %v1432_v3, %v1425_v12  ;;  %v3363_v3 = vsel %vm2289_vm5, 1.0, %v4030_v61 }
 0x306   :  { %v3878_v40 = vpop.eup %3877  ;;  %v1934_v37 = vadd.f32 1.0, %v3876_v27  ;;  %3891 = vlog2.f32 %v1766_v56  ;;  %v2310_v56 = vstv %s2309_s8  ;;  %s3437_s8 = sld [smem:[#allocation2 + $0x2f]] }
 0x307   :  { %v1916_v22 = vadd.f32 %v1915_v2, %v1832_v1  ;;  %v3880_v42 = vpop.eup %3879  ;;  %v2083_v23 = vpop.xlane.xlu1 %2082  ;;  %v2270_v35 = vadd.f32 1.0, %v3878_v40  ;;  %v1844_v40 = vmax.f32 %v5814_v5, 0.0  ;;  %vm2311_vm12 = vcmp.eq.s32.totalorder %v4783_v36, %v2310_v56 }
 0x308   :  { %3852 = vset.pattern.permute.xlu0 %v6439_v47  ;;  %v3882_v6 = vpop.eup %3881  ;;  %v1516_v13 = vmul.f32 0.6931472, %v3880_v42  ;;  %3893 = vlog2.f32 %v1934_v37  ;;  %v2251_v48 = vpop.xlane.xlu0 %2250  ;;  %v3362_v37 = vsel %vm5877_vm3, 1.0, %v4030_v61 }
 0x309   :  { %v2000_v46 = vadd.f32 %v1999_v57, %v1916_v22  ;;  %2556 = vperm.xlu0 %3852, %v5850_v14   ;;  %v1684_v50 = vmul.f32 0.6931472, %v3882_v6  ;;  %3895 = vlog2.f32 %v2186_v7 }
 0x30a   :  { %v3884_v15 = vpop.eup %3883  ;;  %v1517_v59 = vadd.f32 %v1516_v13, %v1509_v58  ;;  %3897 = vlog2.f32 %v2270_v35  ;;  %v3364_v58 = vsel %vm2300_vm6, 1.0, %v4030_v61  ;;  %v1845_v35 = vsub.f32 %v1844_v40, %v5814_v5 }
 0x30b   :  { %v2084_v9 = vadd.f32 %v2083_v23, %v2000_v46  ;;  %v3886_v38 = vpop.eup %3885  ;;  %v1600_v2 = vmul.f32 0.6931472, %v3884_v15  ;;  %v2167_v49 = vpop.xlane.xlu1 %2166  ;;  %v1685_v25 = vadd.f32 %v1684_v50, %v1677_v45  ;;  %v1929_v15 = vsub.f32 %v1928_v53, %v5832_v16 }
 0x30c   :  { %v1518_v32 = vadd.f32 %v1517_v59, %v1433_v51  ;;  %v2018_v63 = vadd.f32 1.0, %v3886_v38  ;;  %v2012_v51 = vmax.f32 %v5835_v17, 0.0  ;;  %v2180_v5 = vmax.f32 %v5820_v55, 0.0  ;;  %s3074_s13 = scalar_lea.vmem %s6315_s6, %s3437_s8  ;;  %s3399_s8 = sld [smem:[#allocation2 + $0xf]] }
 0x30d   :  { %v3888_v33 = vpop.eup %3887  ;;  %v2168_v28 = vadd.f32 %v2167_v49, %v2084_v9  ;;  %2640 = vperm.xlu0 %3852, %v5857_v41   ;;  %v1601_v20 = vadd.f32 %v1600_v2, %v1593_v43  ;;  %v3365_v9 = vsel %vm2311_vm12, 1.0, %v4030_v61  ;;  %v2096_v43 = vmax.f32 %v5844_v60, 0.0 }
 0x30e   :  { %v2102_v24 = vadd.f32 1.0, %v3888_v33  ;;  %3899 = vlog2.f32 %v2018_v63  ;;  %v3890_v44 = vpop.eup %3889  ;;  %v2329_v40 = vstv %s2328_s5  ;;  %s2822_s5 = scalar_lea.vmem %s6315_s6, %s3413_s19  ;;  %s5972_s19 = sld [smem:[#allocation2 + $0x3d]] }
 0x30f   :  { %v5888_v57 = vadd.f32 %v2251_v48, %v2168_v28  ;;  %v1602_v1 = vadd.f32 %v1601_v20, %v1518_v32  ;;  %v2294_v27 = vpop.permute.xlu1 %2293  ;;  %v1852_v23 = vmul.f32 0.6931472, %v3890_v44  ;;  %v2013_v48 = vsub.f32 %v2012_v51, %v5835_v17 }
 0x310   :  { %3901 = vlog2.f32 %v2102_v24  ;;  %v2284_v22 = vpop.permute.xlu0 %2283  ;;  %v3892_v42 = vpop.eup %3891  ;;  %v2296_v7 = vmul.f32 %v3363_v3, %v2294_v27  ;;  %v2264_v24 = vmax.f32 %v5826_v18, 0.0  ;;  %v2097_v44 = vsub.f32 %v2096_v43, %v5844_v60 }
 0x311   :  { %3856 = vset.pattern.permute.xlu0 %v6441_v30  ;;  %v1686_v12 = vadd.f32 %v1685_v25, %v1602_v1  ;;  %v1768_v6 = vmul.f32 0.6931472, %v3892_v42  ;;  %v2286_v46 = vmul.f32 %v3362_v37, %v2284_v22  ;;  %v1853_v26 = vadd.f32 %v1852_v23, %v1845_v35 }
 0x312   :  { %2651 = vperm.xlu0 %3856, %v5857_v41   ;;  %v3894_v4 = vpop.eup %3893  ;;  %v2181_v17 = vsub.f32 %v2180_v5, %v5820_v55  ;;  %v2265_v42 = vsub.f32 %v2264_v24, %v5826_v18  ;;  %vm2330_vm9 = vcmp.lt.s32.totalorder %v4783_v36, %v2329_v40  ;;  %v2867_v43 = vstv %s2866_s26  ;;  %v2991_v40 = vld [vmem:[%s2990_s15] sm:$0x1]  ;;  %s6082_s15 = sld [smem:[#allocation2 + $0x1f]]  ;;  %s2675_s4 = scalar_lea.vmem %s6315_s6, %s3399_s8 }
 0x313   :  { %v1936_v13 = vmul.f32 0.6931472, %v3894_v4  ;;  %v2305_v31 = vpop.permute.xlu1 %2304  ;;  %v1769_v52 = vadd.f32 %v1768_v6, %v1761_v0  ;;  %v3896_v29 = vpop.eup %3895  ;;  %v2297_v49 = vadd.f32 %v2296_v7, %v2286_v46  ;;  %vm2331_vm15 = vmand %vm2327_vm7, %vm2330_vm9  ;;  %v2594_v7 = vstv %s2593_s20  ;;  %v5931_v46 = vld [vmem:[%s2591_s0] sm:$0x1]  ;;  %s2908_s0 = sadd.s32 48, %s3422_s2  ;;  %s3076_s20 = sadd.s32 48, %s3438_s17 }
 0x314   :  { %v2307_v59 = vmul.f32 %v3364_v58, %v2305_v31  ;;  %v3898_v2 = vpop.eup %3897  ;;  %v2188_v1 = vmul.f32 0.6931472, %v3896_v29  ;;  %vm2595_vm10 = vcmp.eq.s32.totalorder %v4783_v36, %v2594_v7  ;;  %v2762_v31 = vstv %s2761_s29  ;;  %s2507_s17 = scalar_lea.vmem %s6315_s6, %s3383_s1  ;;  %s3423_s1 = sld [smem:[#allocation2 + $0x28]] }
 0x315   :  { %v1770_v38 = vadd.f32 %v1769_v52, %v1686_v12  ;;  %v1937_v50 = vadd.f32 %v1936_v13, %v1929_v15  ;;  %v2272_v53 = vmul.f32 0.6931472, %v3898_v2  ;;  %v2596_v35 = vsel %vm2595_vm10, %v5931_v46, 0.0  ;;  %v2760_v52 = vld [vmem:[%s2759_s10] sm:$0x1]  ;;  %s2950_s10 = sadd.s32 48, %s5950_s28  ;;  %s3032_s28 = scalar_lea.vmem %s6315_s6, %s5980_s7 }
 0x316   :  { %v2308_v45 = vadd.f32 %v2307_v59, %v2297_v49  ;;  %v2189_v60 = vadd.f32 %v2188_v1, %v2181_v17  ;;  %vm2763_vm11 = vcmp.eq.s32.totalorder %v4783_v36, %v2762_v31  ;;  %v2783_v15 = vstv %s2782_s22  ;;  %v3033_v17 = vld [vmem:[%s3032_s28] sm:$0x1]  ;;  %s3428_s7 = sld [smem:[#allocation2 + $0x3a]]  ;;  %s3431_s28 = sld [smem:[#allocation2 + $0x2c]] }
 0x317   :  { %v1854_v32 = vadd.f32 %v1853_v26, %v1770_v38  ;;  %v2273_v23 = vadd.f32 %v2272_v53, %v2265_v42  ;;  %v2597_v51 = vsel %vm1420_vm13, %v2596_v35, 0.0  ;;  %v2764_v59 = vsel %vm2763_vm11, %v2760_v52, 0.0  ;;  %s3427_s2 = sld [smem:[#allocation2 + $0x2a]] }
 0x318   :  { %v3900_v33 = vpop.eup %3899  ;;  %v2316_v63 = vpop.permute.xlu1 %2315  ;;  %vm2784_vm14 = vcmp.eq.s32.totalorder %v4783_v36, %v2783_v15  ;;  %v2825_v29 = vstv %s2824_s16  ;;  %v2765_v26 = vsel %vm1420_vm13, %v2764_v59, 0.0  ;;  %vm2868_vm4 = vcmp.eq.s32.totalorder %v4783_v36, %v2867_v43  ;;  %s2677_s26 = sadd.s32 48, %s6082_s15 }
 0x319   :  { %v2020_v28 = vmul.f32 0.6931472, %v3900_v33  ;;  %v2318_v20 = vmul.f32 %v3365_v9, %v2316_v63  ;;  %v1938_v8 = vadd.f32 %v1937_v50, %v1854_v32  ;;  %v2781_v9 = vld [vmem:[%s2780_s27] sm:$0x1]  ;;  %vm2826_vm0 = vcmp.eq.s32.totalorder %v4783_v36, %v2825_v29  ;;  %s2992_s27 = sadd.s32 48, %s5960_s9 }
 0x31a   :  { %v3902_v16 = vpop.eup %3901  ;;  %v2785_v38 = vsel %vm2784_vm14, %v2781_v9, 0.0  ;;  %v2823_v50 = vld [vmem:[%s2822_s5] sm:$0x1]  ;;  %v2909_v5 = vstv %s2908_s0  ;;  %v2993_v1 = vstv %s2992_s27  ;;  %s3034_s5 = sadd.s32 48, %s5972_s19  ;;  %s6012_s0 = sshll.u32 %s5778_s3, 2 }
 0x31b   :  { %v2104_v25 = vmul.f32 0.6931472, %v3902_v16  ;;  %v2021_v27 = vadd.f32 %v2020_v28, %v2013_v48  ;;  %v2319_v56 = vadd.f32 %v2318_v20, %v2308_v45  ;;  %v2786_v2 = vsel %vm1420_vm13, %v2785_v38, 0.0  ;;  %v2865_v33 = vld [vmem:[%s2864_s21] sm:$0x1]  ;;  %s2371_s9 = sadd.s32 1, %s6012_s0 }
 0x31c   :  { %v2827_v49 = vsel %vm2826_vm0, %v2823_v50, 0.0  ;;  %v2869_v16 = vsel %vm2868_vm4, %v2865_v33, 0.0  ;;  %v2907_v28 = vld [vmem:[%s2906_s11] sm:$0x1]  ;;  %vm2910_vm1 = vcmp.eq.s32.totalorder %v4783_v36, %v2909_v5  ;;  %v2951_v45 = vstv %s2950_s10  ;;  %s2382_s29 = sadd.s32 2, %s6012_s0  ;;  %s2393_s30 = sadd.s32 3, %s6012_s0 }
 0x31d   :  { %v2105_v3 = vadd.f32 %v2104_v25, %v2097_v44  ;;  %v2022_v37 = vadd.f32 %v2021_v27, %v1938_v8  ;;  %v2320_v22 = vsub.f32 %v5504_v34, %v2319_v56  ;;  %v2828_v32 = vsel %vm1420_vm13, %v2827_v49, 0.0  ;;  %v2949_v25 = vld [vmem:[%s2948_s23] sm:$0x1]  ;;  %s2412_s3 = sadd.s32 4, %s6012_s0  ;;  %s6039_s11 = sshll.u32 %s5797_s12, 2 }
 0x31e   :  { %v2870_v24 = vsel %vm1420_vm13, %v2869_v16, 0.0  ;;  %v2911_v8 = vsel %vm2910_vm1, %v2907_v28, 0.0  ;;  %vm2952_vm2 = vcmp.eq.s32.totalorder %v4783_v36, %v2951_v45  ;;  %vm2994_vm3 = vcmp.eq.s32.totalorder %v4783_v36, %v2993_v1  ;;  %s2466_s24 = sadd.s32 2, %s6039_s11  ;;  %s2455_s10 = sadd.s32 1, %s6039_s11 }
 0x31f   :  { %v2106_v12 = vadd.f32 %v2105_v3, %v2022_v37  ;;  %v2321_v58 = vand.u32 2147483647, %v2320_v22  ;;  %v2323_v4 = vmul.f32 0.5, %v2320_v22  ;;  %v2912_v27 = vsel %vm1420_vm13, %v2911_v8, 0.0  ;;  %s2477_s19 = sadd.s32 3, %s6039_s11  ;;  %s6054_s12 = sld [smem:[#allocation2 + $0x1d]] }
 0x320   :  { %v2953_v56 = vsel %vm2952_vm2, %v2949_v25, 0.0  ;;  %v2995_v3 = vsel %vm2994_vm3, %v2991_v40, 0.0  ;;  %v3077_v37 = vstv %s3076_s20  ;;  %v2361_v49 = vstv %s6012_s0  ;;  %s2496_s22 = sadd.s32 4, %s6039_s11  ;;  %s3415_s21 = sld [smem:[#allocation2 + $0x24]] }
 0x321   :  { %v2190_v0 = vadd.f32 %v2189_v60, %v2106_v12  ;;  %vm2322_vm8 = vcmp.lt.f32.partialorder %v2321_v58, 1.0  ;;  %v2324_v55 = vmul.f32 %v2323_v4, %v2320_v22  ;;  %v3366_v6 = vadd.f32 -0.5, %v2321_v58  ;;  %v3075_v12 = vld [vmem:[%s3074_s13] sm:$0x1]  ;;  %s3420_s0 = sld [smem:[#allocation2 + $0x36]]  ;;  %s2971_s20 = sadd.s32 48, %s3428_s7 }
 0x322   :  { %v2954_v53 = vsel %vm1420_vm13, %v2953_v56, 0.0  ;;  %v2996_v22 = vsel %vm1420_vm13, %v2995_v3, 0.0  ;;  %vm3078_vm6 = vcmp.eq.s32.totalorder %v4783_v36, %v3077_v37  ;;  %vm2362_vm7 = vcmp.eq.s32.totalorder %v4783_v36, %v2361_v49 }
 0x323   :  { %v2326_v34 = vsel %vm2322_vm8, %v2324_v55, %v3366_v6  ;;  %v5925_v18 = vadd.f32 %v2273_v23, %v2190_v0  ;;  %v3079_v23 = vsel %vm3078_vm6, %v3075_v12, 0.0  ;;  %v2394_v28 = vstv %s2393_s30  ;;  %s2801_s30 = scalar_lea.vmem %s6315_s6, %s3411_s18 }
 0x324   :  { %v2332_v62 = vsel %vm2331_vm15, %v2326_v34, 0.0  ;;  %v3080_v0 = vsel %vm1420_vm13, %v3079_v23, 0.0  ;;  %vm2395_vm8 = vcmp.eq.s32.totalorder %v4783_v36, %v2394_v28  ;;  %vm2411_vm15 = vcmp.ge.s32.totalorder %v4783_v36, %v2361_v49 }
 0x325   :  { %v2333_v13 = vsel %vm1420_vm13, %v2332_v62, 0.0  ;;  %v2456_v23 = vstv %s2455_s10  ;;  %s2509_s23 = sadd.s32 48, %s6054_s12 }
 0x326   :  { %2334 = vadd.xlane.f32.xlu1 %v2333_v13  ;;  %vm2457_vm1 = vcmp.eq.s32.totalorder %v4783_v36, %v2456_v23  ;;  %v2510_v49 = vstv %s2509_s23 }
 0x327   :  { %s2887_s23 = sadd.s32 48, %s3420_s0  ;;  %s2969_s0 = scalar_lea.vmem %s6315_s6, %s3427_s2 }
 0x331   :  { %2598 = vadd.xlane.f32.xlu0 %v2597_v51 }
 0x335   :  { %2766 = vadd.xlane.f32.xlu0 %v2765_v26 }
 0x337   :  { %2367 = vperm.xlu1 %3842, %v5793_v19  }
 0x339   :  { %2787 = vadd.xlane.f32.xlu0 %v2786_v2 }
 0x33b   :  { %3844 = vset.pattern.permute.xlu1 %v6439_v47 }
 0x33c   :  { %2388 = vperm.xlu1 %3844, %v5793_v19  }
 0x33d   :  { %2829 = vadd.xlane.f32.xlu0 %v2828_v32  ;;  %v2347_v63 = vpop.xlane.xlu0 %2346  ;;  %v2383_v32 = vstv %s2382_s29 }
 0x33e   :  { %v2350_v48 = vand.u32 2147483647, %v2347_v63  ;;  %v2348_v55 = vmax.f32 %v2347_v63, 0.0  ;;  %vm2384_vm9 = vcmp.eq.s32.totalorder %v4783_v36, %v2383_v32 }
 0x33f   :  { %v3372_v45 = vsel %vm2384_vm9, 1.0, %v4030_v61 }
 0x340   :  { %v2351_v20 = vsub.f32 0.0, %v2350_v48  ;;  %3845 = vset.pattern.permute.xlu1 %v6441_v30  ;;  %v2349_v34 = vsub.f32 %v2348_v55, %v2347_v63  ;;  %v3370_v48 = vsel %vm2362_vm7, 1.0, %v4030_v61  ;;  %v2478_v55 = vstv %s2477_s19 }
 0x341   :  { %2871 = vadd.xlane.f32.xlu0 %v2870_v24  ;;  %2399 = vperm.xlu1 %3845, %v5793_v19   ;;  %v3035_v19 = vstv %s3034_s5  ;;  %vm2479_vm2 = vcmp.eq.s32.totalorder %v4783_v36, %v2478_v55  ;;  %vm2511_vm7 = vcmp.eq.s32.totalorder %v4783_v36, %v2510_v49  ;;  %s3412_s5 = sld [smem:[#allocation2 + $0x32]] }
 0x342   :  { %v2352_v44 = vmul.f32 1.442695, %v2351_v20  ;;  %vm3036_vm5 = vcmp.eq.s32.totalorder %v4783_v36, %v3035_v19  ;;  %v2413_v19 = vstv %s2412_s3  ;;  %s3419_s3 = sld [smem:[#allocation2 + $0x26]] }
 0x343   :  { %v3037_v42 = vsel %vm3036_vm5, %v3033_v17, 0.0  ;;  %vm2414_vm10 = vcmp.lt.s32.totalorder %v4783_v36, %v2413_v19 }
 0x344   :  { %3903 = vpow2.f32 %v2352_v44  ;;  %v3038_v4 = vsel %vm1420_vm13, %v3037_v42, 0.0  ;;  %v3373_v44 = vsel %vm2395_vm8, 1.0, %v4030_v61  ;;  %vm2415_vm14 = vmand %vm2411_vm15, %vm2414_vm10 }
 0x345   :  { %2913 = vadd.xlane.f32.xlu0 %v2912_v27  ;;  %3846 = vset.pattern.permute.xlu1 %v6442_v10  ;;  %v2378_v31 = vpop.permute.xlu0 %2377 }
 0x347   :  { %s2803_s13 = sadd.s32 48, %s3412_s5  ;;  %s3432_s5 = sld [smem:[#allocation2 + $0x3c]] }
 0x348   :  { %s2885_s16 = scalar_lea.vmem %s6315_s6, %s3419_s3 }
 0x349   :  { %2955 = vadd.xlane.f32.xlu0 %v2954_v53 }
 0x34d   :  { %2997 = vadd.xlane.f32.xlu0 %v2996_v22  ;;  %s3013_s29 = sadd.s32 48, %s3432_s5 }
 0x34e   :  { %v3904_v60 = vpop.eup %3903 }
 0x34f   :  { %v2354_v58 = vadd.f32 1.0, %v3904_v60 }
 0x351   :  { %3905 = vlog2.f32 %v2354_v58  ;;  %3039 = vadd.xlane.f32.xlu0 %v3038_v4  ;;  %v2445_v4 = vstv %s6039_s11 }
 0x352   :  { %vm2446_vm4 = vcmp.eq.s32.totalorder %v4783_v36, %v2445_v4  ;;  %vm2495_vm3 = vcmp.ge.s32.totalorder %v4783_v36, %v2445_v4 }
 0x355   :  { %3081 = vadd.xlane.f32.xlu0 %v3080_v0 }
 0x35b   :  { %v3906_v6 = vpop.eup %3905 }
 0x35c   :  { %v2356_v62 = vmul.f32 0.6931472, %v3906_v6 }
 0x35e   :  { %v2357_v13 = vadd.f32 %v2356_v62, %v2349_v34  ;;  %v3378_v34 = vsel %vm2446_vm4, 1.0, %v4030_v61  ;;  %v3379_v62 = vsel %vm2457_vm1, 1.0, %v4030_v61 }
 0x360   :  { %v2358_v7 = vadd.f32 %v2357_v13, %v5925_v18  ;;  %v2372_v18 = vstv %s2371_s9  ;;  %s3435_s9 = sld [smem:[#allocation2 + $0x2e]] }
 0x361   :  { %vm2373_vm12 = vcmp.eq.s32.totalorder %v4783_v36, %v2372_v18 }
 0x362   :  { %v3371_v16 = vsel %vm2373_vm12, 1.0, %v4030_v61 }
 0x363   :  { %v2380_v20 = vmul.f32 %v3371_v16, %v2378_v31 }
 0x372   :  { %v2431_v35 = vpop.xlane.xlu0 %2430 }
 0x373   :  { %v2434_v52 = vand.u32 2147483647, %v2431_v35  ;;  %v2432_v29 = vmax.f32 %v2431_v35, 0.0 }
 0x375   :  { %v2435_v15 = vsub.f32 0.0, %v2434_v52  ;;  %v2433_v38 = vsub.f32 %v2432_v29, %v2431_v35 }
 0x377   :  { %v2436_v51 = vmul.f32 1.442695, %v2435_v15 }
 0x379   :  { %3907 = vpow2.f32 %v2436_v51  ;;  %v3381_v51 = vsel %vm2479_vm2, 1.0, %v4030_v61 }
 0x37a   :  { %v2473_v13 = vpop.permute.xlu0 %2472 }
 0x383   :  { %v3908_v59 = vpop.eup %3907 }
 0x384   :  { %v2438_v9 = vadd.f32 1.0, %v3908_v59 }
 0x386   :  { %3909 = vlog2.f32 %v2438_v9 }
 0x390   :  { %v3910_v26 = vpop.eup %3909 }
 0x391   :  { %v2440_v50 = vmul.f32 0.6931472, %v3910_v26 }
 0x393   :  { %v2441_v43 = vadd.f32 %v2440_v50, %v2433_v38  ;;  %v2497_v38 = vstv %s2496_s22  ;;  %s2843_s22 = scalar_lea.vmem %s6315_s6, %s3415_s21 }
 0x394   :  { %vm2498_vm5 = vcmp.lt.s32.totalorder %v4783_v36, %v2497_v38 }
 0x395   :  { %v6009_v2 = vadd.f32 %v2441_v43, %v2358_v7  ;;  %vm2499_vm12 = vmand %vm2495_vm3, %vm2498_vm5 }
 0x3b3   :  { %v2335_v33 = vpop.xlane.xlu1 %2334 }
 0x3b4   :  { %v2336_v5 = vadd.f32 %v2335_v33, %v5888_v57 }
 0x3b7   :  { %v2368_v63 = vpop.permute.xlu1 %2367 }
 0x3b8   :  { %v2370_v24 = vmul.f32 %v3370_v48, %v2368_v63  ;;  %v6065_v63 = vld [vmem:[%s2507_s17] sm:$0x1] }
 0x3b9   :  { %v2512_v48 = vsel %vm2511_vm7, %v6065_v63, 0.0 }
 0x3ba   :  { %v2381_v25 = vadd.f32 %v2380_v20, %v2370_v24  ;;  %v2513_v28 = vsel %vm1420_vm13, %v2512_v48, 0.0 }
 0x3bb   :  { %v2389_v57 = vpop.permute.xlu1 %2388 }
 0x3bc   :  { %v2391_v8 = vmul.f32 %v3372_v45, %v2389_v57  ;;  %v2696_v45 = vld [vmem:[%s6438_s25 + $0xf] sm:$0x1]  ;;  %s3416_s25 = sld [smem:[#allocation2 + $0x34]]  ;;  %v2844_v57 = vld [vmem:[%s2843_s22] sm:$0x1]  ;;  %s3053_s22 = scalar_lea.vmem %s6315_s6, %s3435_s9 }
 0x3bd   :  { %v3054_v23 = vld [vmem:[%s3053_s22] sm:$0x1] }
 0x3be   :  { %v2392_v27 = vadd.f32 %v2391_v8, %v2381_v25  ;;  %v2888_v8 = vstv %s2887_s23  ;;  %s6133_s23 = sshll.u32 %s5915_s14, 2 }
 0x3bf   :  { %vm2889_vm10 = vcmp.eq.s32.totalorder %v4783_v36, %v2888_v8  ;;  %s2623_s27 = sadd.s32 1, %s6133_s23  ;;  %s2645_s14 = sadd.s32 3, %s6133_s23 }
 0x3c0   :  { %v2400_v1 = vpop.permute.xlu1 %2399  ;;  %v2646_v38 = vstv %s2645_s14  ;;  %s2664_s2 = sadd.s32 4, %s6133_s23 }
 0x3c1   :  { %v2402_v56 = vmul.f32 %v3373_v44, %v2400_v1  ;;  %v2886_v1 = vld [vmem:[%s2885_s16] sm:$0x1]  ;;  %vm2647_vm7 = vcmp.eq.s32.totalorder %v4783_v36, %v2646_v38 }
 0x3c2   :  { %s2845_s11 = sadd.s32 48, %s3416_s25  ;;  %s2927_s25 = scalar_lea.vmem %s6315_s6, %s3423_s1 }
 0x3c3   :  { %v2403_v40 = vadd.f32 %v2402_v56, %v2392_v27  ;;  %v2928_v19 = vld [vmem:[%s2927_s25] sm:$0x1]  ;;  %s6129_s1 = sshll.u32 %s6054_s12, 2  ;;  %s2634_s12 = sadd.s32 2, %s6133_s23 }
 0x3c4   :  { %s2550_s7 = sadd.s32 2, %s6129_s1  ;;  %s2561_s17 = sadd.s32 3, %s6129_s1 }
 0x3c5   :  { %v2404_v53 = vsub.f32 %v5785_v39, %v2403_v40  ;;  %v2467_v39 = vstv %s2466_s24  ;;  %s3424_s24 = sld [smem:[#allocation2 + $0x38]]  ;;  %v2890_v40 = vsel %vm2889_vm10, %v2886_v1, 0.0  ;;  %s2580_s16 = sadd.s32 4, %s6129_s1 }
 0x3c6   :  { %vm2468_vm0 = vcmp.eq.s32.totalorder %v4783_v36, %v2467_v39  ;;  %s4031_s25 = smov [#allocation5]  }
 0x3c7   :  { %v2405_v3 = vand.u32 2147483647, %v2404_v53  ;;  %v2407_v17 = vmul.f32 0.5, %v2404_v53  ;;  %v3380_v6 = vsel %vm2468_vm0, 1.0, %v4030_v61 }
 0x3c8   :  { %v2475_v31 = vmul.f32 %v3380_v6, %v2473_v13  ;;  %v2529_v13 = vstv %s6129_s1 }
 0x3c9   :  { %vm2406_vm11 = vcmp.lt.f32.partialorder %v2405_v3, 1.0  ;;  %v2408_v37 = vmul.f32 %v2407_v17, %v2404_v53  ;;  %v3374_v22 = vadd.f32 -0.5, %v2405_v3  ;;  %v2972_v53 = vstv %s2971_s20 }
 0x3ca   :  { %v2891_v3 = vsel %vm1420_vm13, %v2890_v40, 0.0  ;;  %vm2530_vm1 = vcmp.eq.s32.totalorder %v4783_v36, %v2529_v13 }
 0x3cb   :  { %v2410_v42 = vsel %vm2406_vm11, %v2408_v37, %v3374_v22  ;;  %s2929_s8 = sadd.s32 48, %s3424_s24  ;;  %v2970_v37 = vld [vmem:[%s2969_s0] sm:$0x1]  ;;  %v3014_v22 = vstv %s3013_s29 }
 0x3cc   :  { %v2416_v60 = vsel %vm2415_vm14, %v2410_v42, 0.0  ;;  %v2930_v27 = vstv %s2929_s8  ;;  %vm2973_vm14 = vcmp.eq.s32.totalorder %v4783_v36, %v2972_v53  ;;  %vm3015_vm0 = vcmp.eq.s32.totalorder %v4783_v36, %v3014_v22  ;;  %s6171_s8 = sshll.u32 %s6082_s15, 2 }
 0x3cd   :  { %v2417_v12 = vsel %vm1420_vm13, %v2416_v60, 0.0  ;;  %vm2931_vm11 = vcmp.eq.s32.totalorder %v4783_v36, %v2930_v27  ;;  %v2974_v60 = vsel %vm2973_vm14, %v2970_v37, 0.0  ;;  %s2707_s5 = sadd.s32 1, %s6171_s8  ;;  %s2718_s15 = sadd.s32 2, %s6171_s8 }
 0x3ce   :  { %2418 = vadd.xlane.f32.xlu1 %v2417_v12  ;;  %v2932_v17 = vsel %vm2931_vm11, %v2928_v19, 0.0  ;;  %s2729_s18 = sadd.s32 3, %s6171_s8 }
 0x3cf   :  { %v2933_v42 = vsel %vm1420_vm13, %v2932_v17, 0.0  ;;  %v2665_v17 = vstv %s2664_s2 }
 0x3d0   :  { %vm2666_vm11 = vcmp.lt.s32.totalorder %v4783_v36, %v2665_v17 }
 0x3df   :  { %2451 = vperm.xlu1 %3846, %v5840_v21  }
 0x3e3   :  { %3847 = vset.pattern.permute.xlu1 %v6440_v54 }
 0x3e4   :  { %2461 = vperm.xlu1 %3847, %v5840_v21  }
 0x3e8   :  { %3849 = vset.pattern.permute.xlu1 %v6441_v30 }
 0x3e9   :  { %2483 = vperm.xlu1 %3849, %v5840_v21  }
 0x3ed   :  { %3851 = vset.pattern.permute.xlu1 %v6440_v54 }
 0x45b   :  { %v2419_v58 = vpop.xlane.xlu1 %2418 }
 0x45c   :  { %v6044_v0 = vadd.f32 %v2419_v58, %v2336_v5  ;;  %v2975_v58 = vsel %vm1420_vm13, %v2974_v60, 0.0 }
 0x45f   :  { %v2452_v21 = vpop.permute.xlu1 %2451 }
 0x460   :  { %v2454_v35 = vmul.f32 %v3378_v34, %v2452_v21  ;;  %v2536_v34 = vpop.permute.xlu0 %2535 }
 0x463   :  { %v2462_v7 = vpop.permute.xlu1 %2461 }
 0x464   :  { %v2464_v52 = vmul.f32 %v3379_v62, %v2462_v7  ;;  %v2620_v62 = vpop.permute.xlu0 %2619 }
 0x466   :  { %v2465_v15 = vadd.f32 %v2464_v52, %v2454_v35  ;;  %v2613_v52 = vstv %s6133_s23 }
 0x467   :  { %vm2614_vm3 = vcmp.eq.s32.totalorder %v4783_v36, %v2613_v52  ;;  %vm6188_vm10 = vcmp.ge.s32.totalorder %v4783_v36, %v2613_v52 }
 0x468   :  { %v2484_v59 = vpop.permute.xlu1 %2483  ;;  %v2476_v9 = vadd.f32 %v2475_v31, %v2465_v15  ;;  %v2557_v15 = vpop.permute.xlu0 %2556 }
 0x469   :  { %v2486_v29 = vmul.f32 %v3381_v51, %v2484_v59  ;;  %v2551_v51 = vstv %s2550_s7  ;;  %v2635_v59 = vstv %s2634_s12 }
 0x46a   :  { %vm2552_vm5 = vcmp.eq.s32.totalorder %v4783_v36, %v2551_v51 }
 0x46b   :  { %v2487_v26 = vadd.f32 %v2486_v29, %v2476_v9  ;;  %v2624_v29 = vstv %s2623_s27  ;;  %v3388_v48 = vsel %vm2552_vm5, 1.0, %v4030_v61 }
 0x46c   :  { %v2641_v49 = vpop.permute.xlu0 %2640 }
 0x46d   :  { %v2488_v50 = vsub.f32 %v5803_v11, %v2487_v26  ;;  %v3386_v26 = vsel %vm2530_vm1, 1.0, %v4030_v61 }
 0x46f   :  { %v2491_v43 = vmul.f32 0.5, %v2488_v50  ;;  %v2489_v18 = vand.u32 2147483647, %v2488_v50 }
 0x471   :  { %vm2490_vm6 = vcmp.lt.f32.partialorder %v2489_v18, 1.0  ;;  %v2492_v33 = vmul.f32 %v2491_v43, %v2488_v50  ;;  %v3382_v5 = vadd.f32 -0.5, %v2489_v18  ;;  %v3394_v18 = vsel %vm2614_vm3, 1.0, %v4030_v61 }
 0x473   :  { %v2494_v32 = vsel %vm2490_vm6, %v2492_v33, %v3382_v5  ;;  %vm2636_vm6 = vcmp.eq.s32.totalorder %v4783_v36, %v2635_v59  ;;  %v2562_v5 = vstv %s2561_s17 }
 0x474   :  { %v2500_v11 = vsel %vm2499_vm12, %v2494_v32, 0.0  ;;  %vm2625_vm12 = vcmp.eq.s32.totalorder %v4783_v36, %v2624_v29  ;;  %v2538_v32 = vmul.f32 %v3386_v26, %v2536_v34  ;;  %v2730_v29 = vstv %s2729_s18 }
 0x475   :  { %v2501_v16 = vsel %vm1420_vm13, %v2500_v11, 0.0 }
 0x476   :  { %2502 = vadd.xlane.f32.xlu1 %v2501_v16 }
 0x47a   :  { %2514 = vadd.xlane.f32.xlu1 %v2513_v28  ;;  %v3396_v28 = vsel %vm2636_vm6, 1.0, %v4030_v61  ;;  %vm2731_vm6 = vcmp.eq.s32.totalorder %v4783_v36, %v2730_v29 }
 0x48b   :  { %2545 = vperm.xlu1 %3851, %v5850_v14  }
 0x48f   :  { %2629 = vperm.xlu1 %3851, %v5857_v41   ;;  %v2846_v41 = vstv %s2845_s11  ;;  %s3011_s11 = scalar_lea.vmem %s6315_s6, %s3431_s28  ;;  %s2539_s6 = sadd.s32 1, %s6129_s1 }
 0x490   :  { %vm2847_vm15 = vcmp.eq.s32.totalorder %v4783_v36, %v2846_v41  ;;  %v3012_v12 = vld [vmem:[%s3011_s11] sm:$0x1]  ;;  %v2540_v31 = vstv %s2539_s6  ;;  %v2643_v41 = vmul.f32 %v3396_v28, %v2641_v49  ;;  %s3106_s28 = sshll.u32 %s4031_s25, 4  ;;  %s3107_s28 = int_to_ptr.vmem [resolvable:$true] %s3106_s28 }
 0x491   :  { %v2848_v25 = vsel %vm2847_vm15, %v2844_v57, 0.0  ;;  %v3016_v4 = vsel %vm3015_vm0, %v3012_v12, 0.0  ;;  %vm2541_vm2 = vcmp.eq.s32.totalorder %v4783_v36, %v2540_v31  ;;  %v2652_v57 = vpop.permute.xlu0 %2651  ;;  %s3999_s20 = scalar_lea.vmem %s3107_s28, 16  ;;  %p4004_p6 = scmp.lt.s32.totalorder %s3107_s28, %s3107_s28 }
 0x492   :  { %v2849_v56 = vsel %vm1420_vm13, %v2848_v25, 0.0  ;;  %v3017_v21 = vsel %vm1420_vm13, %v3016_v4, 0.0  ;;  %v3387_v50 = vsel %vm2541_vm2, 1.0, %v4030_v61  ;;  %vm2667_vm2 = vmand %vm6188_vm10, %vm2666_vm11  ;;  %p4000_p5 = scmp.ne.s32.totalorder %s3107_s28, %s3999_s20 }
 0x493   :  { %3853 = vset.pattern.permute.xlu1 %v6441_v30 }
 0x494   :  { %2567 = vperm.xlu1 %3853, %v5850_v14   ;;  %v2802_v14 = vld [vmem:[%s2801_s30] sm:$0x1] }
 0x498   :  { %3854 = vset.pattern.permute.xlu1 %v6442_v10 }
 0x499   :  { %2703 = vperm.xlu1 %3854, %v2696_v45  }
 0x49d   :  { %3855 = vset.pattern.permute.xlu1 %v6440_v54  ;;  %v2678_v54 = vstv %s2677_s26  ;;  %s2748_s26 = sadd.s32 4, %s6171_s8 }
 0x49e   :  { %2713 = vperm.xlu1 %3855, %v2696_v45   ;;  %vm2679_vm9 = vcmp.eq.s32.totalorder %v4783_v36, %v2678_v54  ;;  %v2622_v54 = vmul.f32 %v3394_v18, %v2620_v62 }
 0x4a2   :  { %3857 = vset.pattern.permute.xlu1 %v6439_v47  ;;  %v6088_v47 = vld [vmem:[%s2675_s4] sm:$0x1]  ;;  %s3436_s4 = sld [smem:[#allocation2 + $0x3e]] }
 0x4a3   :  { %2724 = vperm.xlu1 %3857, %v2696_v45   ;;  %v2680_v10 = vsel %vm2679_vm9, %v6088_v47, 0.0  ;;  %vm2563_vm9 = vcmp.eq.s32.totalorder %v4783_v36, %v2562_v5 }
 0x4a4   :  { %v2681_v20 = vsel %vm1420_vm13, %v2680_v10, 0.0  ;;  %v3389_v8 = vsel %vm2563_vm9, 1.0, %v4030_v61 }
 0x4a7   :  { %3858 = vset.pattern.permute.xlu1 %v6441_v30  ;;  %v2804_v30 = vstv %s2803_s13 }
 0x4a8   :  { %2735 = vperm.xlu1 %3858, %v2696_v45   ;;  %vm2805_vm8 = vcmp.eq.s32.totalorder %v4783_v36, %v2804_v30  ;;  %s3055_s24 = sadd.s32 48, %s3436_s4  ;;  %v3395_v45 = vsel %vm2625_vm12, 1.0, %v4030_v61  ;;  %v3397_v30 = vsel %vm2647_vm7, 1.0, %v4030_v61  ;;  %s4003_s4 = scalar_lea.vmem %s3107_s28, 32 }
 0x4a9   :  { %v2806_v24 = vsel %vm2805_vm8, %v2802_v14, 0.0  ;;  %v3056_v39 = vstv %s3055_s24  ;;  %v2559_v14 = vmul.f32 %v3388_v48, %v2557_v15  ;;  %vm6177_vm8 = vcmp.ge.s32.totalorder %v4783_v36, %v2529_v13  ;;  %p4005_p7 = scmp.lt.s32.totalorder %s4003_s4, %s3999_s20 }
 0x4aa   :  { %v2807_v44 = vsel %vm1420_vm13, %v2806_v24, 0.0  ;;  %vm3057_vm4 = vcmp.eq.s32.totalorder %v4783_v36, %v3056_v39  ;;  %v2708_v39 = vstv %s2707_s5 }
 0x4ab   :  { %v3058_v55 = vsel %vm3057_vm4, %v3054_v23, 0.0  ;;  %vm2709_vm14 = vcmp.eq.s32.totalorder %v4783_v36, %v2708_v39  ;;  %p4006_p8 = por %p4005_p7, %p4004_p6 }
 0x4ac   :  { %v3059_v6 = vsel %vm1420_vm13, %v3058_v55, 0.0  ;;  %v3403_v15 = vsel %vm2709_vm14, 1.0, %v4030_v61 }
 0x4ad   :  { %p4007_p9 = pnand %p4006_p8, %p4000_p5 }
 0x4cc   :  { %2682 = vadd.xlane.f32.xlu1 %v2681_v20 }
 0x4d0   :  { %2808 = vadd.xlane.f32.xlu1 %v2807_v44  ;;  %v2654_v44 = vmul.f32 %v3397_v30, %v2652_v57 }
 0x4d4   :  { %2850 = vadd.xlane.f32.xlu1 %v2849_v56 }
 0x4d8   :  { %2892 = vadd.xlane.f32.xlu1 %v2891_v3  ;;  %v2581_v3 = vstv %s2580_s16 }
 0x4d9   :  { %vm2582_vm15 = vcmp.lt.s32.totalorder %v4783_v36, %v2581_v3 }
 0x4da   :  { %vm2583_vm4 = vmand %vm6177_vm8, %vm2582_vm15 }
 0x4dc   :  { %2934 = vadd.xlane.f32.xlu1 %v2933_v42 }
 0x4e0   :  { %2976 = vadd.xlane.f32.xlu1 %v2975_v58 }
 0x4e4   :  { %3018 = vadd.xlane.f32.xlu1 %v3017_v21 }
 0x4e8   :  { %3060 = vadd.xlane.f32.xlu1 %v3059_v6  ;;  %v2719_v6 = vstv %s2718_s15 }
 0x4e9   :  { %vm2720_vm5 = vcmp.eq.s32.totalorder %v4783_v36, %v2719_v6 }
 0x503   :  { %v2503_v7 = vpop.xlane.xlu1 %2502 }
 0x504   :  { %v6139_v35 = vadd.f32 %v2503_v7, %v6044_v0 }
 0x507   :  { %v6148_v9 = vpop.xlane.xlu1 %2514 }
 0x508   :  { %v2518_v0 = vand.u32 2147483647, %v6148_v9  ;;  %v2516_v18 = vmax.f32 %v6148_v9, 0.0 }
 0x50a   :  { %v2519_v43 = vsub.f32 0.0, %v2518_v0  ;;  %v2517_v48 = vsub.f32 %v2516_v18, %v6148_v9 }
 0x50b   :  { %v2546_v33 = vpop.permute.xlu1 %2545 }
 0x50c   :  { %v2520_v11 = vmul.f32 1.442695, %v2519_v43  ;;  %v2548_v16 = vmul.f32 %v3387_v50, %v2546_v33  ;;  %v3404_v43 = vsel %vm2720_vm5, 1.0, %v4030_v61 }
 0x50e   :  { %3911 = vpow2.f32 %v2520_v11  ;;  %v2549_v20 = vadd.f32 %v2548_v16, %v2538_v32  ;;  %v3405_v16 = vsel %vm2731_vm6, 1.0, %v4030_v61 }
 0x50f   :  { %v2630_v10 = vpop.permute.xlu1 %2629 }
 0x510   :  { %v2632_v24 = vmul.f32 %v3395_v45, %v2630_v10  ;;  %v2560_v56 = vadd.f32 %v2559_v14, %v2549_v20 }
 0x512   :  { %v2633_v25 = vadd.f32 %v2632_v24, %v2622_v54  ;;  %v2749_v24 = vstv %s2748_s26 }
 0x513   :  { %v2568_v1 = vpop.permute.xlu1 %2567  ;;  %vm2750_vm7 = vcmp.lt.s32.totalorder %v4783_v36, %v2749_v24 }
 0x514   :  { %v2644_v27 = vadd.f32 %v2643_v41, %v2633_v25  ;;  %v2570_v40 = vmul.f32 %v3389_v8, %v2568_v1 }
 0x516   :  { %v2655_v19 = vadd.f32 %v2654_v44, %v2644_v27  ;;  %v2571_v53 = vadd.f32 %v2570_v40, %v2560_v56 }
 0x518   :  { %v3912_v37 = vpop.eup %3911  ;;  %v2656_v42 = vsub.f32 %v5931_v46, %v2655_v19  ;;  %v2572_v60 = vsub.f32 %v6065_v63, %v2571_v53  ;;  %v2704_v12 = vpop.permute.xlu1 %2703  ;;  %v2697_v63 = vstv %s6171_s8 }
 0x519   :  { %v2522_v58 = vadd.f32 1.0, %v3912_v37  ;;  %vm2698_vm3 = vcmp.eq.s32.totalorder %v4783_v36, %v2697_v63  ;;  %vm2747_vm12 = vcmp.ge.s32.totalorder %v4783_v36, %v2697_v63 }
 0x51a   :  { %v2575_v23 = vmul.f32 0.5, %v2572_v60  ;;  %v2573_v21 = vand.u32 2147483647, %v2572_v60  ;;  %v2657_v46 = vand.u32 2147483647, %v2656_v42  ;;  %v2659_v55 = vmul.f32 0.5, %v2656_v42  ;;  %vm2751_vm8 = vmand %vm2747_vm12, %vm2750_vm7 }
 0x51b   :  { %3913 = vlog2.f32 %v2522_v58  ;;  %v3402_v38 = vsel %vm2698_vm3, 1.0, %v4030_v61 }
 0x51c   :  { %vm2574_vm0 = vcmp.lt.f32.partialorder %v2573_v21, 1.0  ;;  %v2576_v34 = vmul.f32 %v2575_v23, %v2572_v60  ;;  %v3390_v62 = vadd.f32 -0.5, %v2573_v21  ;;  %vm2658_vm1 = vcmp.lt.f32.partialorder %v2657_v46, 1.0 }
 0x51d   :  { %v2714_v13 = vpop.permute.xlu1 %2713  ;;  %v2660_v7 = vmul.f32 %v2659_v55, %v2656_v42  ;;  %v3398_v31 = vadd.f32 -0.5, %v2657_v46  ;;  %v2706_v5 = vmul.f32 %v3402_v38, %v2704_v12 }
 0x51e   :  { %v2578_v52 = vsel %vm2574_vm0, %v2576_v34, %v3390_v62  ;;  %v2716_v49 = vmul.f32 %v3403_v15, %v2714_v13 }
 0x51f   :  { %v2584_v51 = vsel %vm2583_vm4, %v2578_v52, 0.0  ;;  %v2662_v59 = vsel %vm2658_vm1, %v2660_v7, %v3398_v31 }
 0x520   :  { %v2585_v0 = vsel %vm1420_vm13, %v2584_v51, 0.0  ;;  %v2668_v26 = vsel %vm2667_vm2, %v2662_v59, 0.0  ;;  %v2717_v45 = vadd.f32 %v2716_v49, %v2706_v5 }
 0x521   :  { %2586 = vadd.xlane.f32.xlu1 %v2585_v0  ;;  %v2669_v50 = vsel %vm1420_vm13, %v2668_v26, 0.0 }
 0x522   :  { %2670 = vadd.xlane.f32.xlu0 %v2669_v50  ;;  %v2725_v33 = vpop.permute.xlu1 %2724 }
 0x523   :  { %v2727_v32 = vmul.f32 %v3404_v43, %v2725_v33 }
 0x525   :  { %v3914_v11 = vpop.eup %3913  ;;  %v2728_v10 = vadd.f32 %v2727_v32, %v2717_v45 }
 0x526   :  { %v2524_v28 = vmul.f32 0.6931472, %v3914_v11 }
 0x527   :  { %v2736_v54 = vpop.permute.xlu1 %2735 }
 0x528   :  { %v2525_v30 = vadd.f32 %v2524_v28, %v2517_v48  ;;  %v2738_v14 = vmul.f32 %v3405_v16, %v2736_v54 }
 0x52a   :  { %v6215_v41 = vadd.f32 %v2525_v30, %v6009_v2  ;;  %v2739_v20 = vadd.f32 %v2738_v14, %v2728_v10  ;;  %v6221_v2 = vpop.xlane.xlu0 %2598 }
 0x52b   :  { %v2602_v56 = vand.u32 2147483647, %v6221_v2 }
 0x52c   :  { %v2740_v57 = vsub.f32 %v6088_v47, %v2739_v20 }
 0x52d   :  { %v2603_v40 = vsub.f32 0.0, %v2602_v56 }
 0x52e   :  { %v2743_v61 = vmul.f32 0.5, %v2740_v57  ;;  %v2741_v9 = vand.u32 2147483647, %v2740_v57  ;;  %v6224_v47 = vpop.xlane.xlu0 %2766 }
 0x52f   :  { %v2769_v36 = vand.u32 2147483647, %v6224_v47  ;;  %v2604_v53 = vmul.f32 1.442695, %v2603_v40 }
 0x530   :  { %vm2742_vm9 = vcmp.lt.f32.partialorder %v2741_v9, 1.0  ;;  %v2744_v8 = vmul.f32 %v2743_v61, %v2740_v57  ;;  %v3406_v44 = vadd.f32 -0.5, %v2741_v9  ;;  %v2600_v61 = vmax.f32 %v6221_v2, 0.0 }
 0x531   :  { %v2770_v3 = vsub.f32 0.0, %v2769_v36  ;;  %3915 = vpow2.f32 %v2604_v53 }
 0x532   :  { %v2746_v25 = vsel %vm2742_vm9, %v2744_v8, %v3406_v44  ;;  %v6227_v19 = vpop.xlane.xlu0 %2787  ;;  %v2601_v53 = vsub.f32 %v2600_v61, %v6221_v2  ;;  %v2768_v2 = vmax.f32 %v6224_v47, 0.0 }
 0x533   :  { %v2752_v1 = vsel %vm2751_vm8, %v2746_v25, 0.0  ;;  %v2790_v17 = vand.u32 2147483647, %v6227_v19  ;;  %v2771_v12 = vmul.f32 1.442695, %v2770_v3 }
 0x534   :  { %v2753_v27 = vsel %vm1420_vm13, %v2752_v1, 0.0  ;;  %vm3096_vm13 = vcmask 0  }
 0x535   :  { %2754 = vadd.xlane.f32.xlu1 %v2753_v27  ;;  %v2791_v39 = vsub.f32 0.0, %v2790_v17 }
 0x536   :  { %v6233_v42 = vpop.xlane.xlu0 %2829 }
 0x537   :  { %v2832_v21 = vand.u32 2147483647, %v6233_v42  ;;  %v2792_v46 = vmul.f32 1.442695, %v2791_v39 }
 0x539   :  { %v2833_v6 = vsub.f32 0.0, %v2832_v21 }
 0x53a   :  { %v6242_v7 = vpop.xlane.xlu0 %2871 }
 0x53b   :  { %v3916_v34 = vpop.eup %3915  ;;  %v2834_v31 = vmul.f32 1.442695, %v2833_v6  ;;  %v2874_v15 = vand.u32 2147483647, %v6242_v7 }
 0x53c   :  { %v2606_v52 = vadd.f32 1.0, %v3916_v34 }
 0x53d   :  { %v2875_v38 = vsub.f32 0.0, %v2874_v15 }
 0x53e   :  { %v6247_v50 = vpop.xlane.xlu0 %2913 }
 0x53f   :  { %v2916_v5 = vand.u32 2147483647, %v6247_v50  ;;  %v2876_v32 = vmul.f32 1.442695, %v2875_v38  ;;  %v2789_v38 = vmax.f32 %v6227_v19, 0.0 }
 0x541   :  { %v2917_v45 = vsub.f32 0.0, %v2916_v5 }
 0x542   :  { %v6253_v30 = vpop.xlane.xlu0 %2955 }
 0x543   :  { %v2918_v8 = vmul.f32 1.442695, %v2917_v45  ;;  %v2958_v44 = vand.u32 2147483647, %v6253_v30 }
 0x559   :  { %v6230_v37 = vpop.xlane.xlu1 %2682 }
 0x55a   :  { %v2686_v22 = vand.u32 2147483647, %v6230_v37  ;;  %v2684_v9 = vmax.f32 %v6230_v37, 0.0 }
 0x55c   :  { %v2687_v60 = vsub.f32 0.0, %v2686_v22  ;;  %v2685_v3 = vsub.f32 %v2684_v9, %v6230_v37  ;;  %v2959_v22 = vsub.f32 0.0, %v2958_v44 }
 0x55d   :  { %v6235_v58 = vpop.xlane.xlu1 %2808 }
 0x55e   :  { %v2688_v4 = vmul.f32 1.442695, %v2687_v60  ;;  %v2811_v23 = vand.u32 2147483647, %v6235_v58  ;;  %v2810_v19 = vmax.f32 %v6235_v58, 0.0 }
 0x560   :  { %3917 = vpow2.f32 %v2688_v4  ;;  %v2812_v55 = vsub.f32 0.0, %v2811_v23 }
 0x561   :  { %3919 = vpow2.f32 %v2771_v12  ;;  %v6239_v63 = vpop.xlane.xlu1 %2850  ;;  %v6263_v12 = vpop.xlane.xlu0 %2997 }
 0x562   :  { %3921 = vpow2.f32 %v2792_v46  ;;  %v2813_v62 = vmul.f32 1.442695, %v2812_v55  ;;  %v2853_v13 = vand.u32 2147483647, %v6239_v63  ;;  %v3000_v37 = vand.u32 2147483647, %v6263_v12 }
 0x564   :  { %3923 = vpow2.f32 %v2813_v62  ;;  %v2854_v51 = vsub.f32 0.0, %v2853_v13  ;;  %v2960_v62 = vmul.f32 1.442695, %v2959_v22 }
 0x565   :  { %v6245_v29 = vpop.xlane.xlu1 %2892  ;;  %3925 = vpow2.f32 %v2834_v31 }
 0x566   :  { %3927 = vlog2.f32 %v2606_v52  ;;  %v2855_v43 = vmul.f32 1.442695, %v2854_v51  ;;  %v2895_v18 = vand.u32 2147483647, %v6245_v29 }
 0x568   :  { %v2896_v11 = vsub.f32 0.0, %v2895_v18 }
 0x569   :  { %v6251_v48 = vpop.xlane.xlu1 %2934 }
 0x56a   :  { %v3918_v59 = vpop.eup %3917  ;;  %v2897_v10 = vmul.f32 1.442695, %v2896_v11  ;;  %v2937_v14 = vand.u32 2147483647, %v6251_v48 }
 0x56b   :  { %v3920_v0 = vpop.eup %3919  ;;  %v2690_v26 = vadd.f32 1.0, %v3918_v59 }
 0x56c   :  { %v2773_v49 = vadd.f32 1.0, %v3920_v0  ;;  %v3922_v33 = vpop.eup %3921  ;;  %v2938_v27 = vsub.f32 0.0, %v2937_v14 }
 0x56d   :  { %3929 = vlog2.f32 %v2690_v26  ;;  %v2794_v16 = vadd.f32 1.0, %v3922_v33  ;;  %v6259_v40 = vpop.xlane.xlu1 %2976 }
 0x56e   :  { %3931 = vpow2.f32 %v2855_v43  ;;  %v3924_v28 = vpop.eup %3923  ;;  %v2939_v4 = vmul.f32 1.442695, %v2938_v27  ;;  %v2979_v23 = vand.u32 2147483647, %v6259_v40  ;;  %v6272_v43 = vpop.xlane.xlu0 %3039 }
 0x56f   :  { %3933 = vlog2.f32 %v2773_v49  ;;  %v3926_v54 = vpop.eup %3925  ;;  %v2815_v24 = vadd.f32 1.0, %v3924_v28  ;;  %v3042_v45 = vand.u32 2147483647, %v6272_v43 }
 0x570   :  { %3935 = vpow2.f32 %v2876_v32  ;;  %v3928_v20 = vpop.eup %3927  ;;  %v2836_v56 = vadd.f32 1.0, %v3926_v54  ;;  %v2980_v31 = vsub.f32 0.0, %v2979_v23 }
 0x571   :  { %3937 = vlog2.f32 %v2794_v16  ;;  %v2608_v25 = vmul.f32 0.6931472, %v3928_v20  ;;  %v6269_v15 = vpop.xlane.xlu1 %3018  ;;  %v3043_v44 = vsub.f32 0.0, %v3042_v45 }
 0x572   :  { %3939 = vpow2.f32 %v2897_v10  ;;  %v2981_v18 = vmul.f32 1.442695, %v2980_v31  ;;  %v3021_v49 = vand.u32 2147483647, %v6269_v15 }
 0x573   :  { %3941 = vlog2.f32 %v2815_v24  ;;  %v2609_v60 = vadd.f32 %v2608_v25, %v2601_v53  ;;  %v6280_v25 = vpop.xlane.xlu0 %3081  ;;  %v3044_v22 = vmul.f32 1.442695, %v3043_v44 }
 0x574   :  { %3943 = vpow2.f32 %v2918_v8  ;;  %v3022_v10 = vsub.f32 0.0, %v3021_v49  ;;  %v2831_v8 = vmax.f32 %v6233_v42, 0.0  ;;  %v2852_v42 = vmax.f32 %v6239_v63, 0.0 }
 0x575   :  { %3945 = vlog2.f32 %v2836_v56  ;;  %v2610_v6 = vadd.f32 %v2609_v60, %v6215_v41  ;;  %v3001_v41 = vsub.f32 0.0, %v3000_v37  ;;  %v6277_v20 = vpop.xlane.xlu1 %3060  ;;  %v3084_v60 = vand.u32 2147483647, %v6280_v25 }
 0x576   :  { %3947 = vpow2.f32 %v2939_v4  ;;  %v3023_v27 = vmul.f32 1.442695, %v3022_v10  ;;  %v3063_v58 = vand.u32 2147483647, %v6277_v20  ;;  %v2915_v49 = vmax.f32 %v6247_v50, 0.0 }
 0x577   :  { %v3930_v57 = vpop.eup %3929  ;;  %v3002_v28 = vmul.f32 1.442695, %v3001_v41 }
 0x578   :  { %v2692_v1 = vmul.f32 0.6931472, %v3930_v57  ;;  %v3932_v36 = vpop.eup %3931  ;;  %v3064_v4 = vsub.f32 0.0, %v3063_v58  ;;  %v2978_v58 = vmax.f32 %v6259_v40, 0.0  ;;  %v3041_v40 = vmax.f32 %v6272_v43, 0.0 }
 0x579   :  { %v3934_v17 = vpop.eup %3933  ;;  %v2857_v21 = vadd.f32 1.0, %v3932_v36 }
 0x57a   :  { %v2693_v39 = vadd.f32 %v2692_v1, %v2685_v3  ;;  %v3936_v46 = vpop.eup %3935  ;;  %v2775_v55 = vmul.f32 0.6931472, %v3934_v17 }
 0x57b   :  { %v3938_v34 = vpop.eup %3937  ;;  %v2878_v52 = vadd.f32 1.0, %v3936_v46  ;;  %3949 = vlog2.f32 %v2857_v21 }
 0x57c   :  { %v2694_v13 = vadd.f32 %v2693_v39, %v2610_v6  ;;  %v3940_v51 = vpop.eup %3939  ;;  %v2776_v59 = vadd.f32 %v2775_v55, %v2768_v2  ;;  %v2796_v0 = vmul.f32 0.6931472, %v3938_v34  ;;  %3951 = vpow2.f32 %v2960_v62 }
 0x57d   :  { %v3942_v26 = vpop.eup %3941  ;;  %3953 = vlog2.f32 %v2878_v52  ;;  %v2899_v5 = vadd.f32 1.0, %v3940_v51  ;;  %v2873_v34 = vmax.f32 %v6242_v7, 0.0  ;;  %v3085_v2 = vsub.f32 0.0, %v3084_v60 }
 0x57e   :  { %v2777_v47 = vadd.f32 %v2776_v59, %v2694_v13  ;;  %v3944_v33 = vpop.eup %3943  ;;  %v2797_v32 = vadd.f32 %v2796_v0, %v2789_v38  ;;  %v2817_v11 = vmul.f32 0.6931472, %v3942_v26  ;;  %3955 = vpow2.f32 %v2981_v18 }
 0x57f   :  { %v3946_v16 = vpop.eup %3945  ;;  %v2920_v14 = vadd.f32 1.0, %v3944_v33  ;;  %3957 = vlog2.f32 %v2899_v5  ;;  %v3065_v62 = vmul.f32 1.442695, %v3064_v4  ;;  %v3086_v59 = vmul.f32 1.442695, %v3085_v2 }
 0x580   :  { %v2798_v54 = vadd.f32 %v2797_v32, %v2777_v47  ;;  %v3948_v24 = vpop.eup %3947  ;;  %v2838_v57 = vmul.f32 0.6931472, %v3946_v16  ;;  %v2818_v61 = vadd.f32 %v2817_v11, %v2810_v19  ;;  %3959 = vpow2.f32 %v3002_v28 }
 0x581   :  { %3961 = vlog2.f32 %v2920_v14  ;;  %v2941_v56 = vadd.f32 1.0, %v3948_v24  ;;  %v2894_v26 = vmax.f32 %v6245_v29, 0.0  ;;  %v2936_v29 = vmax.f32 %v6251_v48, 0.0 }
 0x582   :  { %v2819_v1 = vadd.f32 %v2818_v61, %v2798_v54  ;;  %v2839_v53 = vadd.f32 %v2838_v57, %v2831_v8  ;;  %3963 = vpow2.f32 %v3023_v27  ;;  %v2957_v57 = vmax.f32 %v6253_v30, 0.0 }
 0x583   :  { %3965 = vlog2.f32 %v2941_v56 }
 0x584   :  { %v2840_v39 = vadd.f32 %v2839_v53, %v2819_v1  ;;  %3967 = vpow2.f32 %v3044_v22 }
 0x585   :  { %v3950_v9 = vpop.eup %3949 }
 0x586   :  { %v3952_v36 = vpop.eup %3951  ;;  %v2859_v3 = vmul.f32 0.6931472, %v3950_v9 }
 0x587   :  { %v3954_v17 = vpop.eup %3953  ;;  %v2962_v23 = vadd.f32 1.0, %v3952_v36 }
 0x588   :  { %v3956_v21 = vpop.eup %3955  ;;  %v2880_v46 = vmul.f32 0.6931472, %v3954_v17  ;;  %v2860_v55 = vadd.f32 %v2859_v3, %v2852_v42  ;;  %v2999_v3 = vmax.f32 %v6263_v12, 0.0  ;;  %v3020_v42 = vmax.f32 %v6269_v15, 0.0 }
 0x589   :  { %v3958_v6 = vpop.eup %3957  ;;  %3969 = vlog2.f32 %v2962_v23  ;;  %v2983_v13 = vadd.f32 1.0, %v3956_v21  ;;  %v3062_v12 = vmax.f32 %v6277_v20, 0.0 }
 0x58a   :  { %v2861_v37 = vadd.f32 %v2860_v55, %v2840_v39  ;;  %v3960_v31 = vpop.eup %3959  ;;  %v2881_v52 = vadd.f32 %v2880_v46, %v2873_v34  ;;  %v2901_v51 = vmul.f32 0.6931472, %v3958_v6  ;;  %3971 = vpow2.f32 %v3065_v62 }
 0x58b   :  { %v3962_v63 = vpop.eup %3961  ;;  %v3004_v38 = vadd.f32 1.0, %v3960_v31  ;;  %3973 = vlog2.f32 %v2983_v13  ;;  %v3083_v31 = vmax.f32 %v6280_v25, 0.0 }
 0x58c   :  { %v2882_v0 = vadd.f32 %v2881_v52, %v2861_v37  ;;  %v3964_v41 = vpop.eup %3963  ;;  %v2922_v47 = vmul.f32 0.6931472, %v3962_v63  ;;  %v2902_v7 = vadd.f32 %v2901_v51, %v2894_v26  ;;  %3975 = vpow2.f32 %v3086_v59 }
 0x58d   :  { %v3966_v18 = vpop.eup %3965  ;;  %3977 = vlog2.f32 %v3004_v38  ;;  %v3025_v5 = vadd.f32 1.0, %v3964_v41 }
 0x58e   :  { %v2903_v33 = vadd.f32 %v2902_v7, %v2882_v0  ;;  %v3968_v32 = vpop.eup %3967  ;;  %v2923_v11 = vadd.f32 %v2922_v47, %v2915_v49  ;;  %v2943_v16 = vmul.f32 0.6931472, %v3966_v18 }
 0x58f   :  { %v3046_v54 = vadd.f32 1.0, %v3968_v32  ;;  %3979 = vlog2.f32 %v3025_v5 }
 0x590   :  { %v2924_v45 = vadd.f32 %v2923_v11, %v2903_v33  ;;  %v2944_v14 = vadd.f32 %v2943_v16, %v2936_v29 }
 0x591   :  { %3981 = vlog2.f32 %v3046_v54 }
 0x592   :  { %v2945_v50 = vadd.f32 %v2944_v14, %v2924_v45 }
 0x593   :  { %v3970_v28 = vpop.eup %3969 }
 0x594   :  { %v3972_v19 = vpop.eup %3971  ;;  %v2964_v10 = vmul.f32 0.6931472, %v3970_v28 }
 0x595   :  { %v3974_v24 = vpop.eup %3973  ;;  %v3067_v61 = vadd.f32 1.0, %v3972_v19 }
 0x596   :  { %v3976_v9 = vpop.eup %3975  ;;  %v2965_v8 = vadd.f32 %v2964_v10, %v2957_v57  ;;  %v2985_v44 = vmul.f32 0.6931472, %v3974_v24 }
 0x597   :  { %v3978_v1 = vpop.eup %3977  ;;  %v3088_v56 = vadd.f32 1.0, %v3976_v9  ;;  %3983 = vlog2.f32 %v3067_v61 }
 0x598   :  { %v2966_v27 = vadd.f32 %v2965_v8, %v2945_v50  ;;  %v3006_v48 = vmul.f32 0.6931472, %v3978_v1  ;;  %v2986_v36 = vadd.f32 %v2985_v44, %v2978_v58 }
 0x599   :  { %v3980_v53 = vpop.eup %3979  ;;  %3985 = vlog2.f32 %v3088_v56 }
 0x59a   :  { %v2987_v17 = vadd.f32 %v2986_v36, %v2966_v27  ;;  %v3007_v30 = vadd.f32 %v3006_v48, %v2999_v3  ;;  %v3027_v22 = vmul.f32 0.6931472, %v3980_v53 }
 0x59b   :  { %v3982_v60 = vpop.eup %3981 }
 0x59c   :  { %v3008_v39 = vadd.f32 %v3007_v30, %v2987_v17  ;;  %v3048_v4 = vmul.f32 0.6931472, %v3982_v60  ;;  %v3028_v23 = vadd.f32 %v3027_v22, %v3020_v42 }
 0x59e   :  { %v3029_v46 = vadd.f32 %v3028_v23, %v3008_v39  ;;  %v3049_v55 = vadd.f32 %v3048_v4, %v3041_v40 }
 0x5a0   :  { %v3050_v2 = vadd.f32 %v3049_v55, %v3029_v46 }
 0x5a1   :  { %v3984_v21 = vpop.eup %3983 }
 0x5a2   :  { %v3069_v6 = vmul.f32 0.6931472, %v3984_v21 }
 0x5a3   :  { %v3986_v34 = vpop.eup %3985 }
 0x5a4   :  { %v3090_v62 = vmul.f32 0.6931472, %v3986_v34  ;;  %v3070_v13 = vadd.f32 %v3069_v6, %v3062_v12 }
 0x5a6   :  { %v3071_v52 = vadd.f32 %v3070_v13, %v3050_v2  ;;  %v3091_v51 = vadd.f32 %v3090_v62, %v3083_v31 }
 0x5a8   :  { %v3092_v0 = vadd.f32 %v3091_v51, %v3071_v52 }
 0x5aa   :  { %v3093_v41 = vmul.f32 0.0625, %v3092_v0 }
 0x5ae   :  { %v2587_v37 = vpop.xlane.xlu1 %2586 }
 0x5af   :  { %v2588_v15 = vadd.f32 %v2587_v37, %v6139_v35  ;;  %v2671_v63 = vpop.xlane.xlu0 %2670 }
 0x5b1   :  { %v2672_v59 = vadd.f32 %v2671_v63, %v2588_v15 }
 0x5c2   :  { %v2755_v43 = vpop.xlane.xlu1 %2754 }
 0x5c3   :  { %v2756_v26 = vadd.f32 %v2755_v43, %v2672_v59 }
 0x5c5   :  { %v3094_v38 = vmul.f32 0.125, %v2756_v26 }
 0x5c7   :  { %v3095_v20 = vadd.f32 %v3094_v38, %v3093_v41 }
 0x5c9   :  { %3097 = vst.msk [vmem:[#allocation5] sm:$0x1] %vm3096_vm13, %v3095_v20 }
 0x5ca   :  { %4010 = shalt.err (!%p4007_p9)
}
 0x5cb   :  { %s6449_s0 = sld [smem:[#allocation17_spill]] }
 0x5d1   :  { %s4011_s9 = scalar_lea.hbm %s6449_s0, 16 }
 0x5d2   :  { %p4012_p10 = scmp.ne.s32.totalorder %s6449_s0, %s4011_s9  ;;  %p4015_p11 = scmp.lt.u32.totalorder %s4011_s9, %s6449_s0 }
 0x5d4   :  { %p4017_p12 = pnand %p4015_p11, %p4012_p10 }
 0x5d6   :  { %4020 = shalt.err (!%p4017_p12)
}
 0x5d7   :  { %3109 = dma.vmem_to_hbm [thread:$0]  %s3107_s28, 16, %s6449_s0, [#allocation3]  }
 0x5d8   :  { %4023 = dma.done.wait [#allocation3], 16  }
 0x5d9   :  { %4024 = vsyncadd [#allocation3], 4294967280 }
 0x5da   :  { %3115 = vsyncpa [#allocation3], 1 }
 0x5db   :  { %3116 = vsyncpa [#allocation4], 1 }

</bundles_post_ra>
